<compile_context>
chip_gen: v5e
topology: v5e:2x2
jax: 0.10.0
libtpu: 0.0.40
codegen_flags: <defaults>
</compile_context>

<pallas_src>
import functools

import jax
import jax.numpy as jnp
from jax.experimental import pallas as pl
from jax.experimental.pallas import tpu as pltpu


def _ktv_kernel(l_ref, r_ref, i_ref, out_ref, flat_ref, *,
                k, Hox, Wox, Hoy, Woy, eps_k2):
    # Each input block: (TN, H, W) float32 for TN flattened (B*C) channels.
    xl = l_ref[...]
    xr = r_ref[...]
    xi = i_ref[...]

    # Forward differences (VPU).
    gxl = xl[:, 1:, :] - xl[:, :-1, :]      # (TN, H-1, W)
    gxr = xr[:, 1:, :] - xr[:, :-1, :]
    gxi = xi[:, 1:, :] - xi[:, :-1, :]
    gyl = xl[:, :, 1:] - xl[:, :, :-1]      # (TN, H, W-1)
    gyr = xr[:, :, 1:] - xr[:, :, :-1]
    gyi = xi[:, :, 1:] - xi[:, :, :-1]

    # L1 gradient-difference partial sums (nn.L1Loss numerators).
    sx = jnp.sum(jnp.abs(gxl + gxr - gxi))
    sy = jnp.sum(jnp.abs(gyl + gyr - gyi))

    # Box-filter linearity: only two planes (num, den) get boxed/flattened.
    num_x, den_x = jnp.abs(gxl) + jnp.abs(gxr), jnp.abs(gxi)   # (TN, H-1, W)
    num_y, den_y = jnp.abs(gyl) + jnp.abs(gyr), jnp.abs(gyi)   # (TN, H, W-1)

    # Separable k x k box SUM (the 1/k^2 mean scaling is folded into eps_k2):
    # k-1 shifted adds per axis, pure VPU.
    def box(a, ho, wo):
        r = a[:, 0:ho, :]
        for d in range(1, k):
            r = r + a[:, d:d + ho, :]
        c = r[:, :, 0:wo]
        for d in range(1, k):
            c = c + r[:, :, d:d + wo]
        return c

    bnx = box(num_x, Hox, Wox)     # (TN, Hox, Wox)
    bdx = box(den_x, Hox, Wox)
    bny = box(num_y, Hoy, Woy)     # (TN, Hoy, Woy)
    bdy = box(den_y, Hoy, Woy)

    # Row-major flatten into a lane-dense (TN, 2, L) layout per plane so the x
    # and y maps pair up exactly like PyTorch's .view(B, C, -1) addition.
    # NOTE: for production image sizes (Hox in the hundreds) this unrolled loop
    # should become a pl.loop with grouped lane-aligned stores to bound Mosaic
    # program size; at the shapes exercised here the unrolled form is cheapest.
    for i in range(Hox):
        sl = slice(i * Wox, (i + 1) * Wox)
        flat_ref[0, :, 0:1, sl] = bnx[:, i:i + 1, :]
        flat_ref[1, :, 0:1, sl] = bdx[:, i:i + 1, :]
    for i in range(Hoy):
        sl = slice(i * Woy, (i + 1) * Woy)
        flat_ref[0, :, 1:2, sl] = bny[:, i:i + 1, :]
        flat_ref[1, :, 1:2, sl] = bdy[:, i:i + 1, :]

    f = flat_ref[...]                                   # (2, TN, 2, L)
    num = f[0, :, 0:1, :] + f[0, :, 1:2, :]             # (TN, 1, L)
    den = f[1, :, 0:1, :] + f[1, :, 1:2, :] + eps_k2
    # EUP reciprocal (approx): ~1e-4 rel error on a term scaled by 1e-4.
    ratio_sum = jnp.sum(num * pl.reciprocal(den, approx=True))

    # Pack the three block partial sums into rows 0..2 of one (8,128) tile.
    rid = jax.lax.broadcasted_iota(jnp.int32, (8, 128), 0)
    tile = jnp.where(rid == 0, ratio_sum, 0.0)
    tile = jnp.where(rid == 1, sx, tile)
    tile = jnp.where(rid == 2, sy, tile)
    out_ref[0] = tile


def _largest_divisor_leq(n, cap):
    cap = max(1, min(int(n), int(cap)))
    for d in range(cap, 0, -1):
        if n % d == 0:
            return d
    return 1


def ktv_loss_pallas(out_l, out_r, input_i, kernel_size=10, eps=1e-6,
                    channel_block=None):
    B, C, H, W = out_l.shape
    assert out_r.shape == out_l.shape and input_i.shape == out_l.shape
    k = int(kernel_size)
    assert H == W, "KTVLoss normx + normy addition requires H == W"
    assert 1 <= k <= H - 1

    Hox, Wox = H - k, W - k + 1
    Hoy, Woy = H - k + 1, W - k
    L = Hox * Wox                      # == Hoy * Woy since H == W
    N = B * C

    # --- Per-chip VMEM budgeting (v7x: 64 MiB physical; v5e/v6e: 128 MiB) ---
    try:
        info = pltpu.get_tpu_info()
        vmem_cap = int(getattr(info, "vmem_capacity_bytes", 64 * 1024 * 1024))
    except Exception:
        vmem_cap = 64 * 1024 * 1024    # conservative (v7x) default
    vmem_limit = int(min(vmem_cap * 3 // 4, 96 * 1024 * 1024))

    # Live-set estimate per grid step, in units of one f32 channel slab
    # (H*W*4 bytes): double-buffered inputs (2*3) + gradients (6) + abs/num/den
    # (4) + box intermediates (~8) + flat scratch (~4)  =>  ~26 slabs.
    per_chan = H * W * 4
    live_factor = 26
    tn_cap = max(1, (vmem_limit // 2) // (live_factor * per_chan))
    if channel_block is not None:
        tn_cap = min(tn_cap, int(channel_block))

    # Pick TN as a divisor of N (no HBM-side padding, no masking needed).
    TN = _largest_divisor_leq(N, tn_cap)
    # v7x megacore: ensure the "parallel" channel-grid axis has >= 2 steps so
    # both TensorCores get work (no-op on single-TC v5e/v6e).
    if N // TN < 2 and N > 1:
        TN = _largest_divisor_leq(N, max(1, N // 2))
    G = N // TN

    # Keep all arithmetic in f32 (v5e VPU has no bf16; eps accuracy). The
    # reshape (B,C,H,W)->(N,H,W) is metadata-only; no extra HBM copy.
    f32 = jnp.float32
    l3 = out_l.astype(f32).reshape(N, H, W)
    r3 = out_r.astype(f32).reshape(N, H, W)
    i3 = input_i.astype(f32).reshape(N, H, W)

    kernel = functools.partial(_ktv_kernel, k=k, Hox=Hox, Wox=Wox, Hoy=Hoy,
                               Woy=Woy, eps_k2=float(eps) * k * k)

    def img_spec():
        return pl.BlockSpec((TN, H, W), lambda g: (g, 0, 0))

    partials = pl.pallas_call(
        kernel,
        out_shape=jax.ShapeDtypeStruct((G, 8, 128), jnp.float32),
        grid_spec=pltpu.PrefetchScalarGridSpec(
            num_scalar_prefetch=0,
            grid=(G,),
            in_specs=[img_spec(), img_spec(), img_spec()],
            out_specs=pl.BlockSpec((1, 8, 128), lambda g: (g, 0, 0)),
            scratch_shapes=[pltpu.VMEM((2, TN, 2, L), jnp.float32)],
        ),
        compiler_params=pltpu.CompilerParams(
            dimension_semantics=("parallel",),
            vmem_limit_bytes=vmem_limit,
        ),
    )(l3, r3, i3)

    # Tiny scalar glue: combine per-block partial sums into the final means.
    ratio_total = jnp.sum(partials[:, 0, 0])
    sx_total = jnp.sum(partials[:, 1, 0])
    sy_total = jnp.sum(partials[:, 2, 0])

    norm_loss = ratio_total / (N * L)
    grad_diffx = sx_total / (N * (H - 1) * W)
    grad_diffy = sy_total / (N * H * (W - 1))
    return norm_loss * 0.0001 + grad_diffx + grad_diffy


def ktv_loss_ref(out_l, out_r, input_i, kernel_size=10, eps=1e-6):
    """Pure-JAX mirror of the PyTorch forward, for verification."""
    k = kernel_size

    def grads(x):
        return x[..., 1:, :] - x[..., :-1, :], x[..., 1:] - x[..., :-1]

    def box_mean_abs(g):
        s = jax.lax.reduce_window(jnp.abs(g), 0.0, jax.lax.add,
                                  (1, 1, k, k), (1, 1, 1, 1), 'VALID')
        return (s / (k * k)).reshape(g.shape[0], g.shape[1], -1)

    def norm_k(x):
        gx, gy = grads(x)
        return box_mean_abs(gx), box_mean_abs(gy)

    lnx, lny = norm_k(out_l)
    rnx, rny = norm_k(out_r)
    inx, iny = norm_k(input_i)
    norm_l = lnx + lny
    norm_r = rnx + rny
    norm_t = inx + iny + eps
    norm_loss = jnp.mean(norm_l / norm_t + norm_r / norm_t)
    olx, oly = grads(out_l)
    orx, ory = grads(out_r)
    ix, iy = grads(input_i)
    gdx = jnp.mean(jnp.abs(olx + orx - ix))
    gdy = jnp.mean(jnp.abs(oly + ory - iy))
    return norm_loss * 0.0001 + gdx + gdy


if __name__ == "__main__":
    key = jax.random.PRNGKey(0)
    kl, kr, ki = jax.random.split(key, 3)
    B, C, H, W = 2, 4, 16, 16
    out_l = jax.random.normal(kl, (B, C, H, W), jnp.float32)
    out_r = jax.random.normal(kr, (B, C, H, W), jnp.float32)
    input_i = jax.random.normal(ki, (B, C, H, W), jnp.float32)

    loss = ktv_loss_pallas(out_l, out_r, input_i, kernel_size=10)
    loss = jax.block_until_ready(loss)

    ref = ktv_loss_ref(out_l, out_r, input_i, kernel_size=10)
    assert jnp.allclose(loss, ref, rtol=1e-3, atol=1e-5), (float(loss), float(ref))
    print("KERNEL_OK")
</pallas_src>

<mosaic_0001>
module attributes {stable_mosaic.version = 11 : i64} {
  func.func @_ktv_kernel(%arg0: i32, %arg1: memref<4x16x16xf32, #tpu.memory_space<vmem>>, %arg2: memref<4x16x16xf32, #tpu.memory_space<vmem>>, %arg3: memref<4x16x16xf32, #tpu.memory_space<vmem>>, %arg4: memref<1x8x128xf32, #tpu.memory_space<vmem>>, %arg5: memref<2x4x2x42xf32, #tpu.memory_space<vmem>>) attributes {dimension_semantics = [#tpu.dimension_semantics<parallel>], iteration_bounds = array<i64: 2>, scalar_prefetch = 0 : i64, scratch_operands = 1 : i64, tpu.core_type = #tpu.core_type<tc>, window_params = [{transform_indices = @transform_0, window_bounds = array<i64: 4, 16, 16>}, {transform_indices = @transform_1, window_bounds = array<i64: 4, 16, 16>}, {transform_indices = @transform_2, window_bounds = array<i64: 4, 16, 16>}, {transform_indices = @transform_3, window_bounds = array<i64: 1, 8, 128>}]} {
    %c0 = arith.constant 0 : index
    %c0_0 = arith.constant 0 : index
    %c0_1 = arith.constant 0 : index
    %0 = vector.load %arg1[%c0, %c0_0, %c0_1] : memref<4x16x16xf32, #tpu.memory_space<vmem>>, vector<4x16x16xf32>
    %c0_2 = arith.constant 0 : index
    %c0_3 = arith.constant 0 : index
    %c0_4 = arith.constant 0 : index
    %1 = vector.load %arg2[%c0_2, %c0_3, %c0_4] : memref<4x16x16xf32, #tpu.memory_space<vmem>>, vector<4x16x16xf32>
    %c0_5 = arith.constant 0 : index
    %c0_6 = arith.constant 0 : index
    %c0_7 = arith.constant 0 : index
    %2 = vector.load %arg3[%c0_5, %c0_6, %c0_7] : memref<4x16x16xf32, #tpu.memory_space<vmem>>, vector<4x16x16xf32>
    %3 = vector.extract_strided_slice %0 {offsets = [0, 1, 0], sizes = [4, 15, 16], strides = [1, 1, 1]} : vector<4x16x16xf32> to vector<4x15x16xf32>
    %4 = vector.extract_strided_slice %0 {offsets = [0, 0, 0], sizes = [4, 15, 16], strides = [1, 1, 1]} : vector<4x16x16xf32> to vector<4x15x16xf32>
    %5 = arith.subf %3, %4 : vector<4x15x16xf32>
    %6 = vector.extract_strided_slice %1 {offsets = [0, 1, 0], sizes = [4, 15, 16], strides = [1, 1, 1]} : vector<4x16x16xf32> to vector<4x15x16xf32>
    %7 = vector.extract_strided_slice %1 {offsets = [0, 0, 0], sizes = [4, 15, 16], strides = [1, 1, 1]} : vector<4x16x16xf32> to vector<4x15x16xf32>
    %8 = arith.subf %6, %7 : vector<4x15x16xf32>
    %9 = vector.extract_strided_slice %2 {offsets = [0, 1, 0], sizes = [4, 15, 16], strides = [1, 1, 1]} : vector<4x16x16xf32> to vector<4x15x16xf32>
    %10 = vector.extract_strided_slice %2 {offsets = [0, 0, 0], sizes = [4, 15, 16], strides = [1, 1, 1]} : vector<4x16x16xf32> to vector<4x15x16xf32>
    %11 = arith.subf %9, %10 : vector<4x15x16xf32>
    %12 = vector.extract_strided_slice %0 {offsets = [0, 0, 1], sizes = [4, 16, 15], strides = [1, 1, 1]} : vector<4x16x16xf32> to vector<4x16x15xf32>
    %13 = vector.extract_strided_slice %0 {offsets = [0, 0, 0], sizes = [4, 16, 15], strides = [1, 1, 1]} : vector<4x16x16xf32> to vector<4x16x15xf32>
    %14 = arith.subf %12, %13 : vector<4x16x15xf32>
    %15 = vector.extract_strided_slice %1 {offsets = [0, 0, 1], sizes = [4, 16, 15], strides = [1, 1, 1]} : vector<4x16x16xf32> to vector<4x16x15xf32>
    %16 = vector.extract_strided_slice %1 {offsets = [0, 0, 0], sizes = [4, 16, 15], strides = [1, 1, 1]} : vector<4x16x16xf32> to vector<4x16x15xf32>
    %17 = arith.subf %15, %16 : vector<4x16x15xf32>
    %18 = vector.extract_strided_slice %2 {offsets = [0, 0, 1], sizes = [4, 16, 15], strides = [1, 1, 1]} : vector<4x16x16xf32> to vector<4x16x15xf32>
    %19 = vector.extract_strided_slice %2 {offsets = [0, 0, 0], sizes = [4, 16, 15], strides = [1, 1, 1]} : vector<4x16x16xf32> to vector<4x16x15xf32>
    %20 = arith.subf %18, %19 : vector<4x16x15xf32>
    %21 = arith.addf %5, %8 : vector<4x15x16xf32>
    %22 = arith.subf %21, %11 : vector<4x15x16xf32>
    %23 = math.absf %22 : vector<4x15x16xf32>
    %24 = vector.shape_cast %23 : vector<4x15x16xf32> to vector<1x4x15x16xf32>
    %cst = arith.constant dense<0.000000e+00> : vector<1xf32>
    %25 = vector.multi_reduction <add>, %24, %cst [1, 2, 3] : vector<1x4x15x16xf32> to vector<1xf32>
    %26 = vector.shape_cast %25 : vector<1xf32> to vector<1x1x1x1xf32>
    %27 = vector.extract %26[0, 0, 0, 0] : f32 from vector<1x1x1x1xf32>
    %28 = arith.addf %14, %17 : vector<4x16x15xf32>
    %29 = arith.subf %28, %20 : vector<4x16x15xf32>
    %30 = math.absf %29 : vector<4x16x15xf32>
    %31 = vector.shape_cast %30 : vector<4x16x15xf32> to vector<1x4x16x15xf32>
    %cst_8 = arith.constant dense<0.000000e+00> : vector<1xf32>
    %32 = vector.multi_reduction <add>, %31, %cst_8 [1, 2, 3] : vector<1x4x16x15xf32> to vector<1xf32>
    %33 = vector.shape_cast %32 : vector<1xf32> to vector<1x1x1x1xf32>
    %34 = vector.extract %33[0, 0, 0, 0] : f32 from vector<1x1x1x1xf32>
    %35 = math.absf %5 : vector<4x15x16xf32>
    %36 = math.absf %8 : vector<4x15x16xf32>
    %37 = arith.addf %35, %36 : vector<4x15x16xf32>
    %38 = math.absf %11 : vector<4x15x16xf32>
    %39 = math.absf %14 : vector<4x16x15xf32>
    %40 = math.absf %17 : vector<4x16x15xf32>
    %41 = arith.addf %39, %40 : vector<4x16x15xf32>
    %42 = math.absf %20 : vector<4x16x15xf32>
    %43 = vector.extract_strided_slice %37 {offsets = [0, 0, 0], sizes = [4, 6, 16], strides = [1, 1, 1]} : vector<4x15x16xf32> to vector<4x6x16xf32>
    %44 = vector.extract_strided_slice %37 {offsets = [0, 1, 0], sizes = [4, 6, 16], strides = [1, 1, 1]} : vector<4x15x16xf32> to vector<4x6x16xf32>
    %45 = arith.addf %43, %44 : vector<4x6x16xf32>
    %46 = vector.extract_strided_slice %37 {offsets = [0, 2, 0], sizes = [4, 6, 16], strides = [1, 1, 1]} : vector<4x15x16xf32> to vector<4x6x16xf32>
    %47 = arith.addf %45, %46 : vector<4x6x16xf32>
    %48 = vector.extract_strided_slice %37 {offsets = [0, 3, 0], sizes = [4, 6, 16], strides = [1, 1, 1]} : vector<4x15x16xf32> to vector<4x6x16xf32>
    %49 = arith.addf %47, %48 : vector<4x6x16xf32>
    %50 = vector.extract_strided_slice %37 {offsets = [0, 4, 0], sizes = [4, 6, 16], strides = [1, 1, 1]} : vector<4x15x16xf32> to vector<4x6x16xf32>
    %51 = arith.addf %49, %50 : vector<4x6x16xf32>
    %52 = vector.extract_strided_slice %37 {offsets = [0, 5, 0], sizes = [4, 6, 16], strides = [1, 1, 1]} : vector<4x15x16xf32> to vector<4x6x16xf32>
    %53 = arith.addf %51, %52 : vector<4x6x16xf32>
    %54 = vector.extract_strided_slice %37 {offsets = [0, 6, 0], sizes = [4, 6, 16], strides = [1, 1, 1]} : vector<4x15x16xf32> to vector<4x6x16xf32>
    %55 = arith.addf %53, %54 : vector<4x6x16xf32>
    %56 = vector.extract_strided_slice %37 {offsets = [0, 7, 0], sizes = [4, 6, 16], strides = [1, 1, 1]} : vector<4x15x16xf32> to vector<4x6x16xf32>
    %57 = arith.addf %55, %56 : vector<4x6x16xf32>
    %58 = vector.extract_strided_slice %37 {offsets = [0, 8, 0], sizes = [4, 6, 16], strides = [1, 1, 1]} : vector<4x15x16xf32> to vector<4x6x16xf32>
    %59 = arith.addf %57, %58 : vector<4x6x16xf32>
    %60 = vector.extract_strided_slice %37 {offsets = [0, 9, 0], sizes = [4, 6, 16], strides = [1, 1, 1]} : vector<4x15x16xf32> to vector<4x6x16xf32>
    %61 = arith.addf %59, %60 : vector<4x6x16xf32>
    %62 = vector.extract_strided_slice %61 {offsets = [0, 0, 0], sizes = [4, 6, 7], strides = [1, 1, 1]} : vector<4x6x16xf32> to vector<4x6x7xf32>
    %63 = vector.extract_strided_slice %61 {offsets = [0, 0, 1], sizes = [4, 6, 7], strides = [1, 1, 1]} : vector<4x6x16xf32> to vector<4x6x7xf32>
    %64 = arith.addf %62, %63 : vector<4x6x7xf32>
    %65 = vector.extract_strided_slice %61 {offsets = [0, 0, 2], sizes = [4, 6, 7], strides = [1, 1, 1]} : vector<4x6x16xf32> to vector<4x6x7xf32>
    %66 = arith.addf %64, %65 : vector<4x6x7xf32>
    %67 = vector.extract_strided_slice %61 {offsets = [0, 0, 3], sizes = [4, 6, 7], strides = [1, 1, 1]} : vector<4x6x16xf32> to vector<4x6x7xf32>
    %68 = arith.addf %66, %67 : vector<4x6x7xf32>
    %69 = vector.extract_strided_slice %61 {offsets = [0, 0, 4], sizes = [4, 6, 7], strides = [1, 1, 1]} : vector<4x6x16xf32> to vector<4x6x7xf32>
    %70 = arith.addf %68, %69 : vector<4x6x7xf32>
    %71 = vector.extract_strided_slice %61 {offsets = [0, 0, 5], sizes = [4, 6, 7], strides = [1, 1, 1]} : vector<4x6x16xf32> to vector<4x6x7xf32>
    %72 = arith.addf %70, %71 : vector<4x6x7xf32>
    %73 = vector.extract_strided_slice %61 {offsets = [0, 0, 6], sizes = [4, 6, 7], strides = [1, 1, 1]} : vector<4x6x16xf32> to vector<4x6x7xf32>
    %74 = arith.addf %72, %73 : vector<4x6x7xf32>
    %75 = vector.extract_strided_slice %61 {offsets = [0, 0, 7], sizes = [4, 6, 7], strides = [1, 1, 1]} : vector<4x6x16xf32> to vector<4x6x7xf32>
    %76 = arith.addf %74, %75 : vector<4x6x7xf32>
    %77 = vector.extract_strided_slice %61 {offsets = [0, 0, 8], sizes = [4, 6, 7], strides = [1, 1, 1]} : vector<4x6x16xf32> to vector<4x6x7xf32>
    %78 = arith.addf %76, %77 : vector<4x6x7xf32>
    %79 = vector.extract_strided_slice %61 {offsets = [0, 0, 9], sizes = [4, 6, 7], strides = [1, 1, 1]} : vector<4x6x16xf32> to vector<4x6x7xf32>
    %80 = arith.addf %78, %79 : vector<4x6x7xf32>
    %81 = vector.extract_strided_slice %38 {offsets = [0, 0, 0], sizes = [4, 6, 16], strides = [1, 1, 1]} : vector<4x15x16xf32> to vector<4x6x16xf32>
    %82 = vector.extract_strided_slice %38 {offsets = [0, 1, 0], sizes = [4, 6, 16], strides = [1, 1, 1]} : vector<4x15x16xf32> to vector<4x6x16xf32>
    %83 = arith.addf %81, %82 : vector<4x6x16xf32>
    %84 = vector.extract_strided_slice %38 {offsets = [0, 2, 0], sizes = [4, 6, 16], strides = [1, 1, 1]} : vector<4x15x16xf32> to vector<4x6x16xf32>
    %85 = arith.addf %83, %84 : vector<4x6x16xf32>
    %86 = vector.extract_strided_slice %38 {offsets = [0, 3, 0], sizes = [4, 6, 16], strides = [1, 1, 1]} : vector<4x15x16xf32> to vector<4x6x16xf32>
    %87 = arith.addf %85, %86 : vector<4x6x16xf32>
    %88 = vector.extract_strided_slice %38 {offsets = [0, 4, 0], sizes = [4, 6, 16], strides = [1, 1, 1]} : vector<4x15x16xf32> to vector<4x6x16xf32>
    %89 = arith.addf %87, %88 : vector<4x6x16xf32>
    %90 = vector.extract_strided_slice %38 {offsets = [0, 5, 0], sizes = [4, 6, 16], strides = [1, 1, 1]} : vector<4x15x16xf32> to vector<4x6x16xf32>
    %91 = arith.addf %89, %90 : vector<4x6x16xf32>
    %92 = vector.extract_strided_slice %38 {offsets = [0, 6, 0], sizes = [4, 6, 16], strides = [1, 1, 1]} : vector<4x15x16xf32> to vector<4x6x16xf32>
    %93 = arith.addf %91, %92 : vector<4x6x16xf32>
    %94 = vector.extract_strided_slice %38 {offsets = [0, 7, 0], sizes = [4, 6, 16], strides = [1, 1, 1]} : vector<4x15x16xf32> to vector<4x6x16xf32>
    %95 = arith.addf %93, %94 : vector<4x6x16xf32>
    %96 = vector.extract_strided_slice %38 {offsets = [0, 8, 0], sizes = [4, 6, 16], strides = [1, 1, 1]} : vector<4x15x16xf32> to vector<4x6x16xf32>
    %97 = arith.addf %95, %96 : vector<4x6x16xf32>
    %98 = vector.extract_strided_slice %38 {offsets = [0, 9, 0], sizes = [4, 6, 16], strides = [1, 1, 1]} : vector<4x15x16xf32> to vector<4x6x16xf32>
    %99 = arith.addf %97, %98 : vector<4x6x16xf32>
    %100 = vector.extract_strided_slice %99 {offsets = [0, 0, 0], sizes = [4, 6, 7], strides = [1, 1, 1]} : vector<4x6x16xf32> to vector<4x6x7xf32>
    %101 = vector.extract_strided_slice %99 {offsets = [0, 0, 1], sizes = [4, 6, 7], strides = [1, 1, 1]} : vector<4x6x16xf32> to vector<4x6x7xf32>
    %102 = arith.addf %100, %101 : vector<4x6x7xf32>
    %103 = vector.extract_strided_slice %99 {offsets = [0, 0, 2], sizes = [4, 6, 7], strides = [1, 1, 1]} : vector<4x6x16xf32> to vector<4x6x7xf32>
    %104 = arith.addf %102, %103 : vector<4x6x7xf32>
    %105 = vector.extract_strided_slice %99 {offsets = [0, 0, 3], sizes = [4, 6, 7], strides = [1, 1, 1]} : vector<4x6x16xf32> to vector<4x6x7xf32>
    %106 = arith.addf %104, %105 : vector<4x6x7xf32>
    %107 = vector.extract_strided_slice %99 {offsets = [0, 0, 4], sizes = [4, 6, 7], strides = [1, 1, 1]} : vector<4x6x16xf32> to vector<4x6x7xf32>
    %108 = arith.addf %106, %107 : vector<4x6x7xf32>
    %109 = vector.extract_strided_slice %99 {offsets = [0, 0, 5], sizes = [4, 6, 7], strides = [1, 1, 1]} : vector<4x6x16xf32> to vector<4x6x7xf32>
    %110 = arith.addf %108, %109 : vector<4x6x7xf32>
    %111 = vector.extract_strided_slice %99 {offsets = [0, 0, 6], sizes = [4, 6, 7], strides = [1, 1, 1]} : vector<4x6x16xf32> to vector<4x6x7xf32>
    %112 = arith.addf %110, %111 : vector<4x6x7xf32>
    %113 = vector.extract_strided_slice %99 {offsets = [0, 0, 7], sizes = [4, 6, 7], strides = [1, 1, 1]} : vector<4x6x16xf32> to vector<4x6x7xf32>
    %114 = arith.addf %112, %113 : vector<4x6x7xf32>
    %115 = vector.extract_strided_slice %99 {offsets = [0, 0, 8], sizes = [4, 6, 7], strides = [1, 1, 1]} : vector<4x6x16xf32> to vector<4x6x7xf32>
    %116 = arith.addf %114, %115 : vector<4x6x7xf32>
    %117 = vector.extract_strided_slice %99 {offsets = [0, 0, 9], sizes = [4, 6, 7], strides = [1, 1, 1]} : vector<4x6x16xf32> to vector<4x6x7xf32>
    %118 = arith.addf %116, %117 : vector<4x6x7xf32>
    %119 = vector.extract_strided_slice %41 {offsets = [0, 0, 0], sizes = [4, 7, 15], strides = [1, 1, 1]} : vector<4x16x15xf32> to vector<4x7x15xf32>
    %120 = vector.extract_strided_slice %41 {offsets = [0, 1, 0], sizes = [4, 7, 15], strides = [1, 1, 1]} : vector<4x16x15xf32> to vector<4x7x15xf32>
    %121 = arith.addf %119, %120 : vector<4x7x15xf32>
    %122 = vector.extract_strided_slice %41 {offsets = [0, 2, 0], sizes = [4, 7, 15], strides = [1, 1, 1]} : vector<4x16x15xf32> to vector<4x7x15xf32>
    %123 = arith.addf %121, %122 : vector<4x7x15xf32>
    %124 = vector.extract_strided_slice %41 {offsets = [0, 3, 0], sizes = [4, 7, 15], strides = [1, 1, 1]} : vector<4x16x15xf32> to vector<4x7x15xf32>
    %125 = arith.addf %123, %124 : vector<4x7x15xf32>
    %126 = vector.extract_strided_slice %41 {offsets = [0, 4, 0], sizes = [4, 7, 15], strides = [1, 1, 1]} : vector<4x16x15xf32> to vector<4x7x15xf32>
    %127 = arith.addf %125, %126 : vector<4x7x15xf32>
    %128 = vector.extract_strided_slice %41 {offsets = [0, 5, 0], sizes = [4, 7, 15], strides = [1, 1, 1]} : vector<4x16x15xf32> to vector<4x7x15xf32>
    %129 = arith.addf %127, %128 : vector<4x7x15xf32>
    %130 = vector.extract_strided_slice %41 {offsets = [0, 6, 0], sizes = [4, 7, 15], strides = [1, 1, 1]} : vector<4x16x15xf32> to vector<4x7x15xf32>
    %131 = arith.addf %129, %130 : vector<4x7x15xf32>
    %132 = vector.extract_strided_slice %41 {offsets = [0, 7, 0], sizes = [4, 7, 15], strides = [1, 1, 1]} : vector<4x16x15xf32> to vector<4x7x15xf32>
    %133 = arith.addf %131, %132 : vector<4x7x15xf32>
    %134 = vector.extract_strided_slice %41 {offsets = [0, 8, 0], sizes = [4, 7, 15], strides = [1, 1, 1]} : vector<4x16x15xf32> to vector<4x7x15xf32>
    %135 = arith.addf %133, %134 : vector<4x7x15xf32>
    %136 = vector.extract_strided_slice %41 {offsets = [0, 9, 0], sizes = [4, 7, 15], strides = [1, 1, 1]} : vector<4x16x15xf32> to vector<4x7x15xf32>
    %137 = arith.addf %135, %136 : vector<4x7x15xf32>
    %138 = vector.extract_strided_slice %137 {offsets = [0, 0, 0], sizes = [4, 7, 6], strides = [1, 1, 1]} : vector<4x7x15xf32> to vector<4x7x6xf32>
    %139 = vector.extract_strided_slice %137 {offsets = [0, 0, 1], sizes = [4, 7, 6], strides = [1, 1, 1]} : vector<4x7x15xf32> to vector<4x7x6xf32>
    %140 = arith.addf %138, %139 : vector<4x7x6xf32>
    %141 = vector.extract_strided_slice %137 {offsets = [0, 0, 2], sizes = [4, 7, 6], strides = [1, 1, 1]} : vector<4x7x15xf32> to vector<4x7x6xf32>
    %142 = arith.addf %140, %141 : vector<4x7x6xf32>
    %143 = vector.extract_strided_slice %137 {offsets = [0, 0, 3], sizes = [4, 7, 6], strides = [1, 1, 1]} : vector<4x7x15xf32> to vector<4x7x6xf32>
    %144 = arith.addf %142, %143 : vector<4x7x6xf32>
    %145 = vector.extract_strided_slice %137 {offsets = [0, 0, 4], sizes = [4, 7, 6], strides = [1, 1, 1]} : vector<4x7x15xf32> to vector<4x7x6xf32>
    %146 = arith.addf %144, %145 : vector<4x7x6xf32>
    %147 = vector.extract_strided_slice %137 {offsets = [0, 0, 5], sizes = [4, 7, 6], strides = [1, 1, 1]} : vector<4x7x15xf32> to vector<4x7x6xf32>
    %148 = arith.addf %146, %147 : vector<4x7x6xf32>
    %149 = vector.extract_strided_slice %137 {offsets = [0, 0, 6], sizes = [4, 7, 6], strides = [1, 1, 1]} : vector<4x7x15xf32> to vector<4x7x6xf32>
    %150 = arith.addf %148, %149 : vector<4x7x6xf32>
    %151 = vector.extract_strided_slice %137 {offsets = [0, 0, 7], sizes = [4, 7, 6], strides = [1, 1, 1]} : vector<4x7x15xf32> to vector<4x7x6xf32>
    %152 = arith.addf %150, %151 : vector<4x7x6xf32>
    %153 = vector.extract_strided_slice %137 {offsets = [0, 0, 8], sizes = [4, 7, 6], strides = [1, 1, 1]} : vector<4x7x15xf32> to vector<4x7x6xf32>
    %154 = arith.addf %152, %153 : vector<4x7x6xf32>
    %155 = vector.extract_strided_slice %137 {offsets = [0, 0, 9], sizes = [4, 7, 6], strides = [1, 1, 1]} : vector<4x7x15xf32> to vector<4x7x6xf32>
    %156 = arith.addf %154, %155 : vector<4x7x6xf32>
    %157 = vector.extract_strided_slice %42 {offsets = [0, 0, 0], sizes = [4, 7, 15], strides = [1, 1, 1]} : vector<4x16x15xf32> to vector<4x7x15xf32>
    %158 = vector.extract_strided_slice %42 {offsets = [0, 1, 0], sizes = [4, 7, 15], strides = [1, 1, 1]} : vector<4x16x15xf32> to vector<4x7x15xf32>
    %159 = arith.addf %157, %158 : vector<4x7x15xf32>
    %160 = vector.extract_strided_slice %42 {offsets = [0, 2, 0], sizes = [4, 7, 15], strides = [1, 1, 1]} : vector<4x16x15xf32> to vector<4x7x15xf32>
    %161 = arith.addf %159, %160 : vector<4x7x15xf32>
    %162 = vector.extract_strided_slice %42 {offsets = [0, 3, 0], sizes = [4, 7, 15], strides = [1, 1, 1]} : vector<4x16x15xf32> to vector<4x7x15xf32>
    %163 = arith.addf %161, %162 : vector<4x7x15xf32>
    %164 = vector.extract_strided_slice %42 {offsets = [0, 4, 0], sizes = [4, 7, 15], strides = [1, 1, 1]} : vector<4x16x15xf32> to vector<4x7x15xf32>
    %165 = arith.addf %163, %164 : vector<4x7x15xf32>
    %166 = vector.extract_strided_slice %42 {offsets = [0, 5, 0], sizes = [4, 7, 15], strides = [1, 1, 1]} : vector<4x16x15xf32> to vector<4x7x15xf32>
    %167 = arith.addf %165, %166 : vector<4x7x15xf32>
    %168 = vector.extract_strided_slice %42 {offsets = [0, 6, 0], sizes = [4, 7, 15], strides = [1, 1, 1]} : vector<4x16x15xf32> to vector<4x7x15xf32>
    %169 = arith.addf %167, %168 : vector<4x7x15xf32>
    %170 = vector.extract_strided_slice %42 {offsets = [0, 7, 0], sizes = [4, 7, 15], strides = [1, 1, 1]} : vector<4x16x15xf32> to vector<4x7x15xf32>
    %171 = arith.addf %169, %170 : vector<4x7x15xf32>
    %172 = vector.extract_strided_slice %42 {offsets = [0, 8, 0], sizes = [4, 7, 15], strides = [1, 1, 1]} : vector<4x16x15xf32> to vector<4x7x15xf32>
    %173 = arith.addf %171, %172 : vector<4x7x15xf32>
    %174 = vector.extract_strided_slice %42 {offsets = [0, 9, 0], sizes = [4, 7, 15], strides = [1, 1, 1]} : vector<4x16x15xf32> to vector<4x7x15xf32>
    %175 = arith.addf %173, %174 : vector<4x7x15xf32>
    %176 = vector.extract_strided_slice %175 {offsets = [0, 0, 0], sizes = [4, 7, 6], strides = [1, 1, 1]} : vector<4x7x15xf32> to vector<4x7x6xf32>
    %177 = vector.extract_strided_slice %175 {offsets = [0, 0, 1], sizes = [4, 7, 6], strides = [1, 1, 1]} : vector<4x7x15xf32> to vector<4x7x6xf32>
    %178 = arith.addf %176, %177 : vector<4x7x6xf32>
    %179 = vector.extract_strided_slice %175 {offsets = [0, 0, 2], sizes = [4, 7, 6], strides = [1, 1, 1]} : vector<4x7x15xf32> to vector<4x7x6xf32>
    %180 = arith.addf %178, %179 : vector<4x7x6xf32>
    %181 = vector.extract_strided_slice %175 {offsets = [0, 0, 3], sizes = [4, 7, 6], strides = [1, 1, 1]} : vector<4x7x15xf32> to vector<4x7x6xf32>
    %182 = arith.addf %180, %181 : vector<4x7x6xf32>
    %183 = vector.extract_strided_slice %175 {offsets = [0, 0, 4], sizes = [4, 7, 6], strides = [1, 1, 1]} : vector<4x7x15xf32> to vector<4x7x6xf32>
    %184 = arith.addf %182, %183 : vector<4x7x6xf32>
    %185 = vector.extract_strided_slice %175 {offsets = [0, 0, 5], sizes = [4, 7, 6], strides = [1, 1, 1]} : vector<4x7x15xf32> to vector<4x7x6xf32>
    %186 = arith.addf %184, %185 : vector<4x7x6xf32>
    %187 = vector.extract_strided_slice %175 {offsets = [0, 0, 6], sizes = [4, 7, 6], strides = [1, 1, 1]} : vector<4x7x15xf32> to vector<4x7x6xf32>
    %188 = arith.addf %186, %187 : vector<4x7x6xf32>
    %189 = vector.extract_strided_slice %175 {offsets = [0, 0, 7], sizes = [4, 7, 6], strides = [1, 1, 1]} : vector<4x7x15xf32> to vector<4x7x6xf32>
    %190 = arith.addf %188, %189 : vector<4x7x6xf32>
    %191 = vector.extract_strided_slice %175 {offsets = [0, 0, 8], sizes = [4, 7, 6], strides = [1, 1, 1]} : vector<4x7x15xf32> to vector<4x7x6xf32>
    %192 = arith.addf %190, %191 : vector<4x7x6xf32>
    %193 = vector.extract_strided_slice %175 {offsets = [0, 0, 9], sizes = [4, 7, 6], strides = [1, 1, 1]} : vector<4x7x15xf32> to vector<4x7x6xf32>
    %194 = arith.addf %192, %193 : vector<4x7x6xf32>
    %195 = vector.extract_strided_slice %80 {offsets = [0, 0, 0], sizes = [4, 1, 7], strides = [1, 1, 1]} : vector<4x6x7xf32> to vector<4x1x7xf32>
    %c0_9 = arith.constant 0 : index
    %c0_10 = arith.constant 0 : index
    %c0_11 = arith.constant 0 : index
    %c0_12 = arith.constant 0 : index
    %196 = vector.load %arg5[%c0_9, %c0_10, %c0_11, %c0_12] : memref<2x4x2x42xf32, #tpu.memory_space<vmem>>, vector<1x4x1x7xf32>
    %197 = vector.shape_cast %196 : vector<1x4x1x7xf32> to vector<4x1x7xf32>
    %198 = vector.shape_cast %195 : vector<4x1x7xf32> to vector<1x4x1x7xf32>
    tpu.vector_store %arg5[%c0_9, %c0_10, %c0_11, %c0_12], %198 {strides = array<i32>} : memref<2x4x2x42xf32, #tpu.memory_space<vmem>>, vector<1x4x1x7xf32>,
    %199 = vector.extract_strided_slice %118 {offsets = [0, 0, 0], sizes = [4, 1, 7], strides = [1, 1, 1]} : vector<4x6x7xf32> to vector<4x1x7xf32>
    %c1 = arith.constant 1 : index
    %c0_13 = arith.constant 0 : index
    %c0_14 = arith.constant 0 : index
    %c0_15 = arith.constant 0 : index
    %200 = vector.load %arg5[%c1, %c0_13, %c0_14, %c0_15] : memref<2x4x2x42xf32, #tpu.memory_space<vmem>>, vector<1x4x1x7xf32>
    %201 = vector.shape_cast %200 : vector<1x4x1x7xf32> to vector<4x1x7xf32>
    %202 = vector.shape_cast %199 : vector<4x1x7xf32> to vector<1x4x1x7xf32>
    tpu.vector_store %arg5[%c1, %c0_13, %c0_14, %c0_15], %202 {strides = array<i32>} : memref<2x4x2x42xf32, #tpu.memory_space<vmem>>, vector<1x4x1x7xf32>,
    %203 = vector.extract_strided_slice %80 {offsets = [0, 1, 0], sizes = [4, 1, 7], strides = [1, 1, 1]} : vector<4x6x7xf32> to vector<4x1x7xf32>
    %c0_16 = arith.constant 0 : index
    %c0_17 = arith.constant 0 : index
    %c0_18 = arith.constant 0 : index
    %c7 = arith.constant 7 : index
    %204 = vector.load %arg5[%c0_16, %c0_17, %c0_18, %c7] : memref<2x4x2x42xf32, #tpu.memory_space<vmem>>, vector<1x4x1x7xf32>
    %205 = vector.shape_cast %204 : vector<1x4x1x7xf32> to vector<4x1x7xf32>
    %206 = vector.shape_cast %203 : vector<4x1x7xf32> to vector<1x4x1x7xf32>
    tpu.vector_store %arg5[%c0_16, %c0_17, %c0_18, %c7], %206 {strides = array<i32>} : memref<2x4x2x42xf32, #tpu.memory_space<vmem>>, vector<1x4x1x7xf32>,
    %207 = vector.extract_strided_slice %118 {offsets = [0, 1, 0], sizes = [4, 1, 7], strides = [1, 1, 1]} : vector<4x6x7xf32> to vector<4x1x7xf32>
    %c1_19 = arith.constant 1 : index
    %c0_20 = arith.constant 0 : index
    %c0_21 = arith.constant 0 : index
    %c7_22 = arith.constant 7 : index
    %208 = vector.load %arg5[%c1_19, %c0_20, %c0_21, %c7_22] : memref<2x4x2x42xf32, #tpu.memory_space<vmem>>, vector<1x4x1x7xf32>
    %209 = vector.shape_cast %208 : vector<1x4x1x7xf32> to vector<4x1x7xf32>
    %210 = vector.shape_cast %207 : vector<4x1x7xf32> to vector<1x4x1x7xf32>
    tpu.vector_store %arg5[%c1_19, %c0_20, %c0_21, %c7_22], %210 {strides = array<i32>} : memref<2x4x2x42xf32, #tpu.memory_space<vmem>>, vector<1x4x1x7xf32>,
    %211 = vector.extract_strided_slice %80 {offsets = [0, 2, 0], sizes = [4, 1, 7], strides = [1, 1, 1]} : vector<4x6x7xf32> to vector<4x1x7xf32>
    %c0_23 = arith.constant 0 : index
    %c0_24 = arith.constant 0 : index
    %c0_25 = arith.constant 0 : index
    %c14 = arith.constant 14 : index
    %212 = vector.load %arg5[%c0_23, %c0_24, %c0_25, %c14] : memref<2x4x2x42xf32, #tpu.memory_space<vmem>>, vector<1x4x1x7xf32>
    %213 = vector.shape_cast %212 : vector<1x4x1x7xf32> to vector<4x1x7xf32>
    %214 = vector.shape_cast %211 : vector<4x1x7xf32> to vector<1x4x1x7xf32>
    tpu.vector_store %arg5[%c0_23, %c0_24, %c0_25, %c14], %214 {strides = array<i32>} : memref<2x4x2x42xf32, #tpu.memory_space<vmem>>, vector<1x4x1x7xf32>,
    %215 = vector.extract_strided_slice %118 {offsets = [0, 2, 0], sizes = [4, 1, 7], strides = [1, 1, 1]} : vector<4x6x7xf32> to vector<4x1x7xf32>
    %c1_26 = arith.constant 1 : index
    %c0_27 = arith.constant 0 : index
    %c0_28 = arith.constant 0 : index
    %c14_29 = arith.constant 14 : index
    %216 = vector.load %arg5[%c1_26, %c0_27, %c0_28, %c14_29] : memref<2x4x2x42xf32, #tpu.memory_space<vmem>>, vector<1x4x1x7xf32>
    %217 = vector.shape_cast %216 : vector<1x4x1x7xf32> to vector<4x1x7xf32>
    %218 = vector.shape_cast %215 : vector<4x1x7xf32> to vector<1x4x1x7xf32>
    tpu.vector_store %arg5[%c1_26, %c0_27, %c0_28, %c14_29], %218 {strides = array<i32>} : memref<2x4x2x42xf32, #tpu.memory_space<vmem>>, vector<1x4x1x7xf32>,
    %219 = vector.extract_strided_slice %80 {offsets = [0, 3, 0], sizes = [4, 1, 7], strides = [1, 1, 1]} : vector<4x6x7xf32> to vector<4x1x7xf32>
    %c0_30 = arith.constant 0 : index
    %c0_31 = arith.constant 0 : index
    %c0_32 = arith.constant 0 : index
    %c21 = arith.constant 21 : index
    %220 = vector.load %arg5[%c0_30, %c0_31, %c0_32, %c21] : memref<2x4x2x42xf32, #tpu.memory_space<vmem>>, vector<1x4x1x7xf32>
    %221 = vector.shape_cast %220 : vector<1x4x1x7xf32> to vector<4x1x7xf32>
    %222 = vector.shape_cast %219 : vector<4x1x7xf32> to vector<1x4x1x7xf32>
    tpu.vector_store %arg5[%c0_30, %c0_31, %c0_32, %c21], %222 {strides = array<i32>} : memref<2x4x2x42xf32, #tpu.memory_space<vmem>>, vector<1x4x1x7xf32>,
    %223 = vector.extract_strided_slice %118 {offsets = [0, 3, 0], sizes = [4, 1, 7], strides = [1, 1, 1]} : vector<4x6x7xf32> to vector<4x1x7xf32>
    %c1_33 = arith.constant 1 : index
    %c0_34 = arith.constant 0 : index
    %c0_35 = arith.constant 0 : index
    %c21_36 = arith.constant 21 : index
    %224 = vector.load %arg5[%c1_33, %c0_34, %c0_35, %c21_36] : memref<2x4x2x42xf32, #tpu.memory_space<vmem>>, vector<1x4x1x7xf32>
    %225 = vector.shape_cast %224 : vector<1x4x1x7xf32> to vector<4x1x7xf32>
    %226 = vector.shape_cast %223 : vector<4x1x7xf32> to vector<1x4x1x7xf32>
    tpu.vector_store %arg5[%c1_33, %c0_34, %c0_35, %c21_36], %226 {strides = array<i32>} : memref<2x4x2x42xf32, #tpu.memory_space<vmem>>, vector<1x4x1x7xf32>,
    %227 = vector.extract_strided_slice %80 {offsets = [0, 4, 0], sizes = [4, 1, 7], strides = [1, 1, 1]} : vector<4x6x7xf32> to vector<4x1x7xf32>
    %c0_37 = arith.constant 0 : index
    %c0_38 = arith.constant 0 : index
    %c0_39 = arith.constant 0 : index
    %c28 = arith.constant 28 : index
    %228 = vector.load %arg5[%c0_37, %c0_38, %c0_39, %c28] : memref<2x4x2x42xf32, #tpu.memory_space<vmem>>, vector<1x4x1x7xf32>
    %229 = vector.shape_cast %228 : vector<1x4x1x7xf32> to vector<4x1x7xf32>
    %230 = vector.shape_cast %227 : vector<4x1x7xf32> to vector<1x4x1x7xf32>
    tpu.vector_store %arg5[%c0_37, %c0_38, %c0_39, %c28], %230 {strides = array<i32>} : memref<2x4x2x42xf32, #tpu.memory_space<vmem>>, vector<1x4x1x7xf32>,
    %231 = vector.extract_strided_slice %118 {offsets = [0, 4, 0], sizes = [4, 1, 7], strides = [1, 1, 1]} : vector<4x6x7xf32> to vector<4x1x7xf32>
    %c1_40 = arith.constant 1 : index
    %c0_41 = arith.constant 0 : index
    %c0_42 = arith.constant 0 : index
    %c28_43 = arith.constant 28 : index
    %232 = vector.load %arg5[%c1_40, %c0_41, %c0_42, %c28_43] : memref<2x4x2x42xf32, #tpu.memory_space<vmem>>, vector<1x4x1x7xf32>
    %233 = vector.shape_cast %232 : vector<1x4x1x7xf32> to vector<4x1x7xf32>
    %234 = vector.shape_cast %231 : vector<4x1x7xf32> to vector<1x4x1x7xf32>
    tpu.vector_store %arg5[%c1_40, %c0_41, %c0_42, %c28_43], %234 {strides = array<i32>} : memref<2x4x2x42xf32, #tpu.memory_space<vmem>>, vector<1x4x1x7xf32>,
    %235 = vector.extract_strided_slice %80 {offsets = [0, 5, 0], sizes = [4, 1, 7], strides = [1, 1, 1]} : vector<4x6x7xf32> to vector<4x1x7xf32>
    %c0_44 = arith.constant 0 : index
    %c0_45 = arith.constant 0 : index
    %c0_46 = arith.constant 0 : index
    %c35 = arith.constant 35 : index
    %236 = vector.load %arg5[%c0_44, %c0_45, %c0_46, %c35] : memref<2x4x2x42xf32, #tpu.memory_space<vmem>>, vector<1x4x1x7xf32>
    %237 = vector.shape_cast %236 : vector<1x4x1x7xf32> to vector<4x1x7xf32>
    %238 = vector.shape_cast %235 : vector<4x1x7xf32> to vector<1x4x1x7xf32>
    tpu.vector_store %arg5[%c0_44, %c0_45, %c0_46, %c35], %238 {strides = array<i32>} : memref<2x4x2x42xf32, #tpu.memory_space<vmem>>, vector<1x4x1x7xf32>,
    %239 = vector.extract_strided_slice %118 {offsets = [0, 5, 0], sizes = [4, 1, 7], strides = [1, 1, 1]} : vector<4x6x7xf32> to vector<4x1x7xf32>
    %c1_47 = arith.constant 1 : index
    %c0_48 = arith.constant 0 : index
    %c0_49 = arith.constant 0 : index
    %c35_50 = arith.constant 35 : index
    %240 = vector.load %arg5[%c1_47, %c0_48, %c0_49, %c35_50] : memref<2x4x2x42xf32, #tpu.memory_space<vmem>>, vector<1x4x1x7xf32>
    %241 = vector.shape_cast %240 : vector<1x4x1x7xf32> to vector<4x1x7xf32>
    %242 = vector.shape_cast %239 : vector<4x1x7xf32> to vector<1x4x1x7xf32>
    tpu.vector_store %arg5[%c1_47, %c0_48, %c0_49, %c35_50], %242 {strides = array<i32>} : memref<2x4x2x42xf32, #tpu.memory_space<vmem>>, vector<1x4x1x7xf32>,
    %243 = vector.extract_strided_slice %156 {offsets = [0, 0, 0], sizes = [4, 1, 6], strides = [1, 1, 1]} : vector<4x7x6xf32> to vector<4x1x6xf32>
    %c0_51 = arith.constant 0 : index
    %c0_52 = arith.constant 0 : index
    %c1_53 = arith.constant 1 : index
    %c0_54 = arith.constant 0 : index
    %244 = vector.load %arg5[%c0_51, %c0_52, %c1_53, %c0_54] : memref<2x4x2x42xf32, #tpu.memory_space<vmem>>, vector<1x4x1x6xf32>
    %245 = vector.shape_cast %244 : vector<1x4x1x6xf32> to vector<4x1x6xf32>
    %246 = vector.shape_cast %243 : vector<4x1x6xf32> to vector<1x4x1x6xf32>
    tpu.vector_store %arg5[%c0_51, %c0_52, %c1_53, %c0_54], %246 {strides = array<i32>} : memref<2x4x2x42xf32, #tpu.memory_space<vmem>>, vector<1x4x1x6xf32>,
    %247 = vector.extract_strided_slice %194 {offsets = [0, 0, 0], sizes = [4, 1, 6], strides = [1, 1, 1]} : vector<4x7x6xf32> to vector<4x1x6xf32>
    %c1_55 = arith.constant 1 : index
    %c0_56 = arith.constant 0 : index
    %c1_57 = arith.constant 1 : index
    %c0_58 = arith.constant 0 : index
    %248 = vector.load %arg5[%c1_55, %c0_56, %c1_57, %c0_58] : memref<2x4x2x42xf32, #tpu.memory_space<vmem>>, vector<1x4x1x6xf32>
    %249 = vector.shape_cast %248 : vector<1x4x1x6xf32> to vector<4x1x6xf32>
    %250 = vector.shape_cast %247 : vector<4x1x6xf32> to vector<1x4x1x6xf32>
    tpu.vector_store %arg5[%c1_55, %c0_56, %c1_57, %c0_58], %250 {strides = array<i32>} : memref<2x4x2x42xf32, #tpu.memory_space<vmem>>, vector<1x4x1x6xf32>,
    %251 = vector.extract_strided_slice %156 {offsets = [0, 1, 0], sizes = [4, 1, 6], strides = [1, 1, 1]} : vector<4x7x6xf32> to vector<4x1x6xf32>
    %c0_59 = arith.constant 0 : index
    %c0_60 = arith.constant 0 : index
    %c1_61 = arith.constant 1 : index
    %c6 = arith.constant 6 : index
    %252 = vector.load %arg5[%c0_59, %c0_60, %c1_61, %c6] : memref<2x4x2x42xf32, #tpu.memory_space<vmem>>, vector<1x4x1x6xf32>
    %253 = vector.shape_cast %252 : vector<1x4x1x6xf32> to vector<4x1x6xf32>
    %254 = vector.shape_cast %251 : vector<4x1x6xf32> to vector<1x4x1x6xf32>
    tpu.vector_store %arg5[%c0_59, %c0_60, %c1_61, %c6], %254 {strides = array<i32>} : memref<2x4x2x42xf32, #tpu.memory_space<vmem>>, vector<1x4x1x6xf32>,
    %255 = vector.extract_strided_slice %194 {offsets = [0, 1, 0], sizes = [4, 1, 6], strides = [1, 1, 1]} : vector<4x7x6xf32> to vector<4x1x6xf32>
    %c1_62 = arith.constant 1 : index
    %c0_63 = arith.constant 0 : index
    %c1_64 = arith.constant 1 : index
    %c6_65 = arith.constant 6 : index
    %256 = vector.load %arg5[%c1_62, %c0_63, %c1_64, %c6_65] : memref<2x4x2x42xf32, #tpu.memory_space<vmem>>, vector<1x4x1x6xf32>
    %257 = vector.shape_cast %256 : vector<1x4x1x6xf32> to vector<4x1x6xf32>
    %258 = vector.shape_cast %255 : vector<4x1x6xf32> to vector<1x4x1x6xf32>
    tpu.vector_store %arg5[%c1_62, %c0_63, %c1_64, %c6_65], %258 {strides = array<i32>} : memref<2x4x2x42xf32, #tpu.memory_space<vmem>>, vector<1x4x1x6xf32>,
    %259 = vector.extract_strided_slice %156 {offsets = [0, 2, 0], sizes = [4, 1, 6], strides = [1, 1, 1]} : vector<4x7x6xf32> to vector<4x1x6xf32>
    %c0_66 = arith.constant 0 : index
    %c0_67 = arith.constant 0 : index
    %c1_68 = arith.constant 1 : index
    %c12 = arith.constant 12 : index
    %260 = vector.load %arg5[%c0_66, %c0_67, %c1_68, %c12] : memref<2x4x2x42xf32, #tpu.memory_space<vmem>>, vector<1x4x1x6xf32>
    %261 = vector.shape_cast %260 : vector<1x4x1x6xf32> to vector<4x1x6xf32>
    %262 = vector.shape_cast %259 : vector<4x1x6xf32> to vector<1x4x1x6xf32>
    tpu.vector_store %arg5[%c0_66, %c0_67, %c1_68, %c12], %262 {strides = array<i32>} : memref<2x4x2x42xf32, #tpu.memory_space<vmem>>, vector<1x4x1x6xf32>,
    %263 = vector.extract_strided_slice %194 {offsets = [0, 2, 0], sizes = [4, 1, 6], strides = [1, 1, 1]} : vector<4x7x6xf32> to vector<4x1x6xf32>
    %c1_69 = arith.constant 1 : index
    %c0_70 = arith.constant 0 : index
    %c1_71 = arith.constant 1 : index
    %c12_72 = arith.constant 12 : index
    %264 = vector.load %arg5[%c1_69, %c0_70, %c1_71, %c12_72] : memref<2x4x2x42xf32, #tpu.memory_space<vmem>>, vector<1x4x1x6xf32>
    %265 = vector.shape_cast %264 : vector<1x4x1x6xf32> to vector<4x1x6xf32>
    %266 = vector.shape_cast %263 : vector<4x1x6xf32> to vector<1x4x1x6xf32>
    tpu.vector_store %arg5[%c1_69, %c0_70, %c1_71, %c12_72], %266 {strides = array<i32>} : memref<2x4x2x42xf32, #tpu.memory_space<vmem>>, vector<1x4x1x6xf32>,
    %267 = vector.extract_strided_slice %156 {offsets = [0, 3, 0], sizes = [4, 1, 6], strides = [1, 1, 1]} : vector<4x7x6xf32> to vector<4x1x6xf32>
    %c0_73 = arith.constant 0 : index
    %c0_74 = arith.constant 0 : index
    %c1_75 = arith.constant 1 : index
    %c18 = arith.constant 18 : index
    %268 = vector.load %arg5[%c0_73, %c0_74, %c1_75, %c18] : memref<2x4x2x42xf32, #tpu.memory_space<vmem>>, vector<1x4x1x6xf32>
    %269 = vector.shape_cast %268 : vector<1x4x1x6xf32> to vector<4x1x6xf32>
    %270 = vector.shape_cast %267 : vector<4x1x6xf32> to vector<1x4x1x6xf32>
    tpu.vector_store %arg5[%c0_73, %c0_74, %c1_75, %c18], %270 {strides = array<i32>} : memref<2x4x2x42xf32, #tpu.memory_space<vmem>>, vector<1x4x1x6xf32>,
    %271 = vector.extract_strided_slice %194 {offsets = [0, 3, 0], sizes = [4, 1, 6], strides = [1, 1, 1]} : vector<4x7x6xf32> to vector<4x1x6xf32>
    %c1_76 = arith.constant 1 : index
    %c0_77 = arith.constant 0 : index
    %c1_78 = arith.constant 1 : index
    %c18_79 = arith.constant 18 : index
    %272 = vector.load %arg5[%c1_76, %c0_77, %c1_78, %c18_79] : memref<2x4x2x42xf32, #tpu.memory_space<vmem>>, vector<1x4x1x6xf32>
    %273 = vector.shape_cast %272 : vector<1x4x1x6xf32> to vector<4x1x6xf32>
    %274 = vector.shape_cast %271 : vector<4x1x6xf32> to vector<1x4x1x6xf32>
    tpu.vector_store %arg5[%c1_76, %c0_77, %c1_78, %c18_79], %274 {strides = array<i32>} : memref<2x4x2x42xf32, #tpu.memory_space<vmem>>, vector<1x4x1x6xf32>,
    %275 = vector.extract_strided_slice %156 {offsets = [0, 4, 0], sizes = [4, 1, 6], strides = [1, 1, 1]} : vector<4x7x6xf32> to vector<4x1x6xf32>
    %c0_80 = arith.constant 0 : index
    %c0_81 = arith.constant 0 : index
    %c1_82 = arith.constant 1 : index
    %c24 = arith.constant 24 : index
    %276 = vector.load %arg5[%c0_80, %c0_81, %c1_82, %c24] : memref<2x4x2x42xf32, #tpu.memory_space<vmem>>, vector<1x4x1x6xf32>
    %277 = vector.shape_cast %276 : vector<1x4x1x6xf32> to vector<4x1x6xf32>
    %278 = vector.shape_cast %275 : vector<4x1x6xf32> to vector<1x4x1x6xf32>
    tpu.vector_store %arg5[%c0_80, %c0_81, %c1_82, %c24], %278 {strides = array<i32>} : memref<2x4x2x42xf32, #tpu.memory_space<vmem>>, vector<1x4x1x6xf32>,
    %279 = vector.extract_strided_slice %194 {offsets = [0, 4, 0], sizes = [4, 1, 6], strides = [1, 1, 1]} : vector<4x7x6xf32> to vector<4x1x6xf32>
    %c1_83 = arith.constant 1 : index
    %c0_84 = arith.constant 0 : index
    %c1_85 = arith.constant 1 : index
    %c24_86 = arith.constant 24 : index
    %280 = vector.load %arg5[%c1_83, %c0_84, %c1_85, %c24_86] : memref<2x4x2x42xf32, #tpu.memory_space<vmem>>, vector<1x4x1x6xf32>
    %281 = vector.shape_cast %280 : vector<1x4x1x6xf32> to vector<4x1x6xf32>
    %282 = vector.shape_cast %279 : vector<4x1x6xf32> to vector<1x4x1x6xf32>
    tpu.vector_store %arg5[%c1_83, %c0_84, %c1_85, %c24_86], %282 {strides = array<i32>} : memref<2x4x2x42xf32, #tpu.memory_space<vmem>>, vector<1x4x1x6xf32>,
    %283 = vector.extract_strided_slice %156 {offsets = [0, 5, 0], sizes = [4, 1, 6], strides = [1, 1, 1]} : vector<4x7x6xf32> to vector<4x1x6xf32>
    %c0_87 = arith.constant 0 : index
    %c0_88 = arith.constant 0 : index
    %c1_89 = arith.constant 1 : index
    %c30 = arith.constant 30 : index
    %284 = vector.load %arg5[%c0_87, %c0_88, %c1_89, %c30] : memref<2x4x2x42xf32, #tpu.memory_space<vmem>>, vector<1x4x1x6xf32>
    %285 = vector.shape_cast %284 : vector<1x4x1x6xf32> to vector<4x1x6xf32>
    %286 = vector.shape_cast %283 : vector<4x1x6xf32> to vector<1x4x1x6xf32>
    tpu.vector_store %arg5[%c0_87, %c0_88, %c1_89, %c30], %286 {strides = array<i32>} : memref<2x4x2x42xf32, #tpu.memory_space<vmem>>, vector<1x4x1x6xf32>,
    %287 = vector.extract_strided_slice %194 {offsets = [0, 5, 0], sizes = [4, 1, 6], strides = [1, 1, 1]} : vector<4x7x6xf32> to vector<4x1x6xf32>
    %c1_90 = arith.constant 1 : index
    %c0_91 = arith.constant 0 : index
    %c1_92 = arith.constant 1 : index
    %c30_93 = arith.constant 30 : index
    %288 = vector.load %arg5[%c1_90, %c0_91, %c1_92, %c30_93] : memref<2x4x2x42xf32, #tpu.memory_space<vmem>>, vector<1x4x1x6xf32>
    %289 = vector.shape_cast %288 : vector<1x4x1x6xf32> to vector<4x1x6xf32>
    %290 = vector.shape_cast %287 : vector<4x1x6xf32> to vector<1x4x1x6xf32>
    tpu.vector_store %arg5[%c1_90, %c0_91, %c1_92, %c30_93], %290 {strides = array<i32>} : memref<2x4x2x42xf32, #tpu.memory_space<vmem>>, vector<1x4x1x6xf32>,
    %291 = vector.extract_strided_slice %156 {offsets = [0, 6, 0], sizes = [4, 1, 6], strides = [1, 1, 1]} : vector<4x7x6xf32> to vector<4x1x6xf32>
    %c0_94 = arith.constant 0 : index
    %c0_95 = arith.constant 0 : index
    %c1_96 = arith.constant 1 : index
    %c36 = arith.constant 36 : index
    %292 = vector.load %arg5[%c0_94, %c0_95, %c1_96, %c36] : memref<2x4x2x42xf32, #tpu.memory_space<vmem>>, vector<1x4x1x6xf32>
    %293 = vector.shape_cast %292 : vector<1x4x1x6xf32> to vector<4x1x6xf32>
    %294 = vector.shape_cast %291 : vector<4x1x6xf32> to vector<1x4x1x6xf32>
    tpu.vector_store %arg5[%c0_94, %c0_95, %c1_96, %c36], %294 {strides = array<i32>} : memref<2x4x2x42xf32, #tpu.memory_space<vmem>>, vector<1x4x1x6xf32>,
    %295 = vector.extract_strided_slice %194 {offsets = [0, 6, 0], sizes = [4, 1, 6], strides = [1, 1, 1]} : vector<4x7x6xf32> to vector<4x1x6xf32>
    %c1_97 = arith.constant 1 : index
    %c0_98 = arith.constant 0 : index
    %c1_99 = arith.constant 1 : index
    %c36_100 = arith.constant 36 : index
    %296 = vector.load %arg5[%c1_97, %c0_98, %c1_99, %c36_100] : memref<2x4x2x42xf32, #tpu.memory_space<vmem>>, vector<1x4x1x6xf32>
    %297 = vector.shape_cast %296 : vector<1x4x1x6xf32> to vector<4x1x6xf32>
    %298 = vector.shape_cast %295 : vector<4x1x6xf32> to vector<1x4x1x6xf32>
    tpu.vector_store %arg5[%c1_97, %c0_98, %c1_99, %c36_100], %298 {strides = array<i32>} : memref<2x4x2x42xf32, #tpu.memory_space<vmem>>, vector<1x4x1x6xf32>,
    %c0_101 = arith.constant 0 : index
    %c0_102 = arith.constant 0 : index
    %c0_103 = arith.constant 0 : index
    %c0_104 = arith.constant 0 : index
    %299 = vector.load %arg5[%c0_101, %c0_102, %c0_103, %c0_104] : memref<2x4x2x42xf32, #tpu.memory_space<vmem>>, vector<2x4x2x42xf32>
    %300 = vector.extract_strided_slice %299 {offsets = [0, 0, 0, 0], sizes = [1, 4, 1, 42], strides = [1, 1, 1, 1]} : vector<2x4x2x42xf32> to vector<1x4x1x42xf32>
    %301 = vector.shape_cast %300 : vector<1x4x1x42xf32> to vector<4x1x42xf32>
    %302 = vector.extract_strided_slice %299 {offsets = [0, 0, 1, 0], sizes = [1, 4, 1, 42], strides = [1, 1, 1, 1]} : vector<2x4x2x42xf32> to vector<1x4x1x42xf32>
    %303 = vector.shape_cast %302 : vector<1x4x1x42xf32> to vector<4x1x42xf32>
    %304 = arith.addf %301, %303 : vector<4x1x42xf32>
    %305 = vector.extract_strided_slice %299 {offsets = [1, 0, 0, 0], sizes = [1, 4, 1, 42], strides = [1, 1, 1, 1]} : vector<2x4x2x42xf32> to vector<1x4x1x42xf32>
    %306 = vector.shape_cast %305 : vector<1x4x1x42xf32> to vector<4x1x42xf32>
    %307 = vector.extract_strided_slice %299 {offsets = [1, 0, 1, 0], sizes = [1, 4, 1, 42], strides = [1, 1, 1, 1]} : vector<2x4x2x42xf32> to vector<1x4x1x42xf32>
    %308 = vector.shape_cast %307 : vector<1x4x1x42xf32> to vector<4x1x42xf32>
    %309 = arith.addf %306, %308 : vector<4x1x42xf32>
    %cst_105 = arith.constant 9.99999974E-5 : f32
    %310 = vector.broadcast %cst_105 : f32 to vector<4x1x42xf32>
    %311 = arith.addf %309, %310 : vector<4x1x42xf32>
    %312 = tpu.reciprocal %311 {approx = true} : vector<4x1x42xf32> -> vector<4x1x42xf32>
    %313 = arith.mulf %304, %312 : vector<4x1x42xf32>
    %314 = vector.shape_cast %313 : vector<4x1x42xf32> to vector<1x4x1x42xf32>
    %cst_106 = arith.constant dense<0.000000e+00> : vector<1xf32>
    %315 = vector.multi_reduction <add>, %314, %cst_106 [1, 2, 3] : vector<1x4x1x42xf32> to vector<1xf32>
    %316 = vector.shape_cast %315 : vector<1xf32> to vector<1x1x1x1xf32>
    %317 = vector.extract %316[0, 0, 0, 0] : f32 from vector<1x1x1x1xf32>
    %318 = tpu.iota {dimensions = array<i32: 0>} : vector<8x128xi32>
    %c0_i32 = arith.constant 0 : i32
    %319 = vector.broadcast %c0_i32 : i32 to vector<8x128xi32>
    %320 = arith.cmpi eq, %318, %319 : vector<8x128xi32>
    %cst_107 = arith.constant 0.000000e+00 : f32
    %321 = vector.broadcast %317 : f32 to vector<8x128xf32>
    %322 = vector.broadcast %cst_107 : f32 to vector<8x128xf32>
    %323 = arith.select %320, %321, %322 : vector<8x128xi1>, vector<8x128xf32>
    %c1_i32 = arith.constant 1 : i32
    %324 = vector.broadcast %c1_i32 : i32 to vector<8x128xi32>
    %325 = arith.cmpi eq, %318, %324 : vector<8x128xi32>
    %326 = vector.broadcast %27 : f32 to vector<8x128xf32>
    %327 = arith.select %325, %326, %323 : vector<8x128xi1>, vector<8x128xf32>
    %c2_i32 = arith.constant 2 : i32
    %328 = vector.broadcast %c2_i32 : i32 to vector<8x128xi32>
    %329 = arith.cmpi eq, %318, %328 : vector<8x128xi32>
    %330 = vector.broadcast %34 : f32 to vector<8x128xf32>
    %331 = arith.select %329, %330, %327 : vector<8x128xi1>, vector<8x128xf32>
    %c0_108 = arith.constant 0 : index
    %c0_109 = arith.constant 0 : index
    %c0_110 = arith.constant 0 : index
    %332 = vector.load %arg4[%c0_108, %c0_109, %c0_110] : memref<1x8x128xf32, #tpu.memory_space<vmem>>, vector<1x8x128xf32>
    %333 = vector.shape_cast %332 : vector<1x8x128xf32> to vector<8x128xf32>
    %334 = vector.shape_cast %331 : vector<8x128xf32> to vector<1x8x128xf32>
    tpu.vector_store %arg4[%c0_108, %c0_109, %c0_110], %334 {strides = array<i32>} : memref<1x8x128xf32, #tpu.memory_space<vmem>>, vector<1x8x128xf32>,
    return
  }
  func.func @transform_0(%arg0: i32) -> (i32, i32, i32) {
    %c0_i32 = arith.constant 0 : i32
    %c0_i32_0 = arith.constant 0 : i32
    %c0_i32_1 = arith.constant 0 : i32
    return %arg0, %c0_i32, %c0_i32_0 : i32, i32, i32
  }
  func.func @transform_1(%arg0: i32) -> (i32, i32, i32) {
    %c0_i32 = arith.constant 0 : i32
    %c0_i32_0 = arith.constant 0 : i32
    %c0_i32_1 = arith.constant 0 : i32
    return %arg0, %c0_i32, %c0_i32_0 : i32, i32, i32
  }
  func.func @transform_2(%arg0: i32) -> (i32, i32, i32) {
    %c0_i32 = arith.constant 0 : i32
    %c0_i32_0 = arith.constant 0 : i32
    %c0_i32_1 = arith.constant 0 : i32
    return %arg0, %c0_i32, %c0_i32_0 : i32, i32, i32
  }
  func.func @transform_3(%arg0: i32) -> (i32, i32, i32) {
    %c0_i32 = arith.constant 0 : i32
    %c0_i32_0 = arith.constant 0 : i32
    %c0_i32_1 = arith.constant 0 : i32
    return %arg0, %c0_i32, %c0_i32_0 : i32, i32, i32
  }
}

</mosaic_0001>

<bundles_post_ra>
// kernel: tpu_custom_call.1
= control target key start
LH: loop header
LB: loop body
LE: loop exit
PB: predicated region body
PF: predicated region fallthrough
CT: control target
= control target key end

     0   :  { %s4886_s0 = inlined_call_operand.hbm [shape: f32[8,16,16], index: 0, kind: input, shape index: {}]   ;;  %s4887_s1 = inlined_call_operand.hbm [shape: f32[8,16,16], index: 1, kind: input, shape index: {}]   ;;  %s4888_s2 = inlined_call_operand.hbm [shape: f32[8,16,16], index: 2, kind: input, shape index: {}]   ;;  %s4889_s3 = inlined_call_operand.hbm [shape: f32[2,8,128], index: 3, kind: output, shape index: {}]  }
   0x1   :  { %4901 = sst [smem:[#allocation20_spill]] %s4886_s0 }
   0x2   :  { %4902 = sst [smem:[#allocation21_spill]] %s4887_s1 }
   0x3   :  { %8 = vsyncpa [#allocation4], 0 }
   0x4   :  { %10 = vsyncpa [#allocation4 + $0x1], 0 }
   0x5   :  { %11 = vsyncpa [#allocation7], 0 }
   0x6   :  { %13 = vsyncpa [#allocation7 + $0x1], 0 }
   0x7   :  { %14 = vsyncpa [#allocation5], 0 }
   0x8   :  { %16 = vsyncpa [#allocation5 + $0x1], 0  ;;  %s2894_s12 = smov 0   ;;  %s2896_s13 = smov 0  }
   0x9   :  { %s2898_s14 = smov 0   ;;  %s2900_s15 = smov 0  }
   0xa LB: > { %s2915_s16 = sadd.s32 4294967295, %s2850_s15   ;;  %s2568_s17 = sadd.s32 4294967294, %s2850_s15   ;;  %s2850_s15 = sphi %s2900_s15, %s4971_s15   ;;  %s2846_s14 = sphi %s2898_s14, %s4970_s14   ;;  %s2842_s13 = sphi %s2896_s13, %s4969_s13   ;;  %s2838_s12 = sphi %s2894_s12, %s4968_s12  }
   0xb   : > { %s2919_s18 = sadd.s32 1, %s2850_s15   ;;  %s29_s19 = sadd.s32 1, %s2846_s14 }
   0xc   : > { %s26_s20 = ssub.s32 %s2850_s15, %s2919_s18  ;;  %p36_p0 = scmp.ne.s32.totalorder %s2846_s14, %s2842_s13 }
   0xd   : > { %p27_p1 = scmp.eq.s32.totalorder %s26_s20, 0  ;;  %p37_p2 = scmp.eq.s32.totalorder %s2850_s15, 0 }
   0xe   : > { %p42_p3 = scmp.ne.s32.totalorder %s2842_s13, %s2838_s12  ;;  %p43_p4 = scmp.eq.s32.totalorder %s2915_s16, 0 }
   0xf   : > { %s2931_s21 = scalar_select %p27_p1, %s2846_s14, %s29_s19  }
  0x10   : > { %p38_p5 = por %p37_p2, %p36_p0  ;;  %p2933_p6 = por %p43_p4, %p42_p3 }
  0x11   : > { %4903 = sst [smem:[#allocation13_spill]] %s2931_s21  ;;  %p118_p7 = scmp.eq.s32.totalorder %s2915_s16, 1 }
  0x12   : > { %p124_p8 = scmp.eq.s32.totalorder %s2568_s17, 1  ;;  %p2570_p9 = scmp.ge.s32.totalorder %s2850_s15, 2 }
  0x13   : > { %p2626_p10 = scmp.lt.s32.totalorder %s2850_s15, 2  ;;  %p2940_p11 = por %p118_p7, %p36_p0 }
  0x14   : > { %p2944_p12 = por %p124_p8, %p42_p3  ;;  %s144_s25 = sand.u32 1, %s2846_s14  }
  0x15   : > { %s2950_s26 = sshll.u32 %s2850_s15, 6  ;;  %s2954_s27 = sshll.u32 %s144_s25, 6 }
  0x16   : > { %p2956_p13 = pnand %p2626_p10, %p38_p5  ;;  %s167_s29 = sand.u32 1, %s2850_s15  }
  0x17   : > { %s4908_s1 = sld [smem:[#allocation21_spill]]  ;;  %s171_s6 = scalar_lea.vmem [#allocation6], %s2954_s27 }
  0x18   : > { %s180_s7 = sshll.u32 %s171_s6, 4  ;;  %p2583_p0 = scmp.ge.s32.totalorder %s2850_s15, 1  ;;  %s181_s7 = int_to_ptr.vmem [resolvable:$true] %s180_s7 }
  0x19   : > { %s2967_s9 = scalar_lea.sflag [#allocation7], %s167_s29  ;;  %p2694_p2 = pneg %p2956_p13 }
  0x1d   : > { %s177_s5 = scalar_lea.hbm %s4908_s1, %s2950_s26  ;;  %s2697_s20 = scalar_lea.hbm %s4908_s1, 128 }
  0x1e   : > { %s178_s8 = sshll.u32 %s177_s5, 4  ;;  %s179_s8 = int_to_ptr.hbm [resolvable:$true] %s178_s8 }
  0x1f   : > { %s2690_s10 = sshra.s32 %s179_s8, 4  ;;  %s2691_s10 = int_to_ptr.hbm [resolvable:$true] %s2690_s10 }
  0x20   : > { %s2692_s11 = scalar_lea.hbm %s2691_s10, 64  ;;  %p2698_p5 = scmp.lt.s32.totalorder %s2691_s10, %s4908_s1 }
  0x21   : > { %p2693_p1 = scmp.ne.s32.totalorder %s2691_s10, %s2692_s11  ;;  %p2699_p7 = scmp.lt.s32.totalorder %s2697_s20, %s2692_s11 }
  0x23   : > { %p2695_p3 = pnand %p2694_p2, %p2693_p1  ;;  %p2700_p8 = por %p2699_p7, %p2698_p5 }
  0x25   : > { %p2696_p4 = pneg %p2695_p3 }
  0x27   : > { %p2701_p10 = pnand %p2700_p8, %p2696_p4 }
  0x29   : > { %2704 = shalt.err (!%p2701_p10)
}
  0x2a   : > { %s4890_s29 = smov 128   ;;  %s2853_s5 = smov 8  }
  0x2b   : > { %2618 = dma.hbm_to_vmem [thread:$0]  (!%p2956_p13), %s179_s8, 1024, %s181_s7, %s2967_s9, %s4890_s29, %s4890_s29, %s2853_s5  }
  0x2c   : > { %p211_p1 = scmp.lt.s32.totalorder %s2850_s15, 3  ;;  %s4909_s0 = sld [smem:[#allocation20_spill]] }
  0x2d   : > { %s148_s20 = scalar_lea.vmem [#allocation3], %s2954_s27  ;;  %s145_s4 = scalar_lea.sflag [#allocation4], %s144_s25 }
  0x2e   : > { %p2993_p3 = pnand %p2583_p0, %p211_p1  ;;  %s157_s30 = sshll.u32 %s148_s20, 4  ;;  %s158_s30 = int_to_ptr.vmem [resolvable:$true] %s157_s30 }
  0x32   : > { %s154_s11 = scalar_lea.hbm %s4909_s0, %s2950_s26  ;;  %s2727_s10 = scalar_lea.hbm %s4909_s0, 128 }
  0x33   : > { %s155_s19 = sshll.u32 %s154_s11, 4  ;;  %s156_s19 = int_to_ptr.hbm [resolvable:$true] %s155_s19 }
  0x34   : > { %s2720_s1 = sshra.s32 %s156_s19, 4  ;;  %s2721_s1 = int_to_ptr.hbm [resolvable:$true] %s2720_s1 }
  0x35   : > { %s2722_s7 = scalar_lea.hbm %s2721_s1, 64  ;;  %p2728_p0 = scmp.lt.s32.totalorder %s2721_s1, %s4909_s0 }
  0x36   : > { %p2723_p4 = scmp.ne.s32.totalorder %s2721_s1, %s2722_s7  ;;  %p2729_p8 = scmp.lt.s32.totalorder %s2727_s10, %s2722_s7 }
  0x38   : > { %p2725_p5 = pnand %p2723_p4, %p2694_p2  ;;  %p2730_p10 = por %p2729_p8, %p2728_p0 }
  0x3a   : > { %p2726_p7 = pneg %p2725_p5 }
  0x3c   : > { %p2731_p1 = pnand %p2730_p10, %p2726_p7 }
  0x3e   : > { %2734 = shalt.err (!%p2731_p1)
}
  0x3f   : > { %s4911_s25 = smov 128   ;;  %s200_s6 = scalar_lea.hbm %s4888_s2, %s2950_s26 }
  0x40   : > { %2615 = dma.hbm_to_vmem [thread:$0]  (!%p2956_p13), %s156_s19, 1024, %s158_s30, %s145_s4, %s4911_s25, %s4911_s25, %s2853_s5  }
  0x41   : > { %s194_s21 = scalar_lea.vmem [#allocation8], %s2954_s27  ;;  %s201_s1 = sshll.u32 %s200_s6, 4  ;;  %s202_s1 = int_to_ptr.hbm [resolvable:$true] %s201_s1 }
  0x42   : > { %s203_s29 = sshll.u32 %s194_s21, 4  ;;  %s2750_s7 = sshra.s32 %s202_s1, 4  ;;  %s204_s29 = int_to_ptr.vmem [resolvable:$true] %s203_s29  ;;  %s2751_s7 = int_to_ptr.hbm [resolvable:$true] %s2750_s7 }
  0x43   : > { %s2752_s10 = scalar_lea.hbm %s2751_s7, 64  ;;  %s2757_s19 = scalar_lea.hbm %s4888_s2, 128 }
  0x44   : > { %p2753_p4 = scmp.ne.s32.totalorder %s2751_s7, %s2752_s10  ;;  %p2758_p0 = scmp.lt.s32.totalorder %s2751_s7, %s4888_s2 }
  0x45   : > { %p2759_p8 = scmp.lt.s32.totalorder %s2757_s19, %s2752_s10 }
  0x46   : > { %p2755_p5 = pnand %p2753_p4, %p2694_p2 }
  0x47   : > { %p2760_p10 = por %p2759_p8, %p2758_p0 }
  0x48   : > { %p2756_p7 = pneg %p2755_p5 }
  0x4a   : > { %p2761_p1 = pnand %p2760_p10, %p2756_p7 }
  0x4c   : > { %2764 = shalt.err (!%p2761_p1)
}
  0x4d   : > { %2621 = dma.hbm_to_vmem [thread:$0]  (!%p2956_p13), %s202_s1, 1024, %s204_s29, %s2967_s9, %s4911_s25, %s4911_s25, %s2853_s5  }
  0x4e   : > { %215 = sbr.rel (%p2993_p3) target bundleno = 1286 (0x506), region = 32 }
  0x53   : > { %s3037_s0 = sand.u32 1, %s2842_s13  }
  0x54   : > { %s3040_s21 = sshll.u32 %s3037_s0, 6  ;;  %s218_s26 = scalar_lea.sflag [#allocation4], %s3037_s0 }
  0x55   : > { %s3044_s27 = scalar_lea.vmem [#allocation3], %s3040_s21 }
  0x56   : > { %2825 = dma.done.wait (%p2933_p6), %s218_s26, 1024  }
  0x57   : > { %2827 = vsyncadd (%p2933_p6), %s218_s26, 4294966272  ;;  %s227_s28 = sand.u32 1, %s2915_s16   ;;  %s3052_s5 = scalar_lea.vmem [#allocation6], %s3040_s21 }
  0x58   : > { %s228_s9 = scalar_lea.sflag [#allocation7], %s227_s28 }
  0x59   : > { %2829 = dma.done.wait (%p2933_p6), %s228_s9, 2048  }
  0x5a   : > { %2831 = vsyncadd (%p2933_p6), %s228_s9, 4294965248  ;;  %v3059_v0 = vld [vmem:[%s3044_s27 + $0x10] sm:$0xff]  ;;  %v3062_v1 = vld [vmem:[%s3044_s27] sm:$0xff]  ;;  %s2854_s17 = smov 1   ;;  %vm310_vm0 = vcmask 1040384   ;;  %vm751_vm1 = vcmask 1045504  }
  0x5b   : > { %v3065_v2 = vld [vmem:[%s3044_s27 + $0x20] sm:$0xff]  ;;  %415 = vrot.lane.b32.xlu1 %v3059_v0, %s2854_s17  ;;  %411 = vrot.lane.b32.xlu0 %v3062_v1, %s2854_s17  ;;  %v314_v3 = vrot.slane %v3059_v0, 7  ;;  %v311_v4 = vrot.slane %v3062_v1, 7  ;;  %v3076_v5 = vld [vmem:[%s3044_s27 + $0x18] sm:$0xff]  ;;  %vm772_vm2 = vcmask 1044480   ;;  %vm793_vm3 = vcmask 1043456  }
  0x5c   : > { %419 = vrot.lane.b32.xlu2 %v3065_v2, %s2854_s17  ;;  %v3079_v6 = vld [vmem:[%s3044_s27 + $0x8] sm:$0xff]  ;;  %v315_v7 = vrot.slane %v3076_v5, 7  ;;  %v317_v9 = vrot.slane %v3065_v2, 7  ;;  %v3088_v11 = vld [vmem:[%s3052_s5] sm:$0xff]  ;;  %v3099_v16 = vld [vmem:[%s3052_s5 + $0x10] sm:$0xff]  ;;  %vm814_vm4 = vcmask 1042432  }
  0x5d   : > { %v312_v8 = vrot.slane %v3079_v6, 7  ;;  %v3085_v10 = vld [vmem:[%s3044_s27 + $0x28] sm:$0xff]  ;;  %v3091_v12 = vsub.f32 %v3059_v0, %v314_v3  ;;  %v3094_v13 = vsub.f32 %v3062_v1, %v311_v4  ;;  %v347_v15 = vrot.slane %v3088_v11, 7  ;;  %v3109_v22 = vld [vmem:[%s3052_s5 + $0x18] sm:$0xff]  ;;  %v3150_v39 = vld [vmem:[%s3052_s5 + $0x20] sm:$0xff]  ;;  %s3249_s22 = scalar_lea.vmem [#allocation8], %s3040_s21 }
  0x5e   : > { %v318_v14 = vrot.slane %v3085_v10, 7  ;;  %v3102_v17 = vld [vmem:[%s3052_s5 + $0x8] sm:$0xff]  ;;  %v316_v18 = vsel %vm310_vm0, %v314_v3, %v315_v7  ;;  %v350_v20 = vrot.slane %v3099_v16, 7  ;;  %v351_v25 = vrot.slane %v3109_v22, 7  ;;  %v3166_v49 = vld [vmem:[%s3044_s27 + $0x38] sm:$0xff]  ;;  %v3169_v50 = vld [vmem:[%s3044_s27 + $0x30] sm:$0xff] }
  0x5f   : > { %v313_v19 = vsel %vm310_vm0, %v311_v4, %v312_v8  ;;  %v348_v21 = vrot.slane %v3102_v17, 7  ;;  %v667_v23 = vand.u32 2147483647, %v3094_v13  ;;  %v3113_v24 = vsub.f32 %v3088_v11, %v347_v15  ;;  %v3147_v38 = vld [vmem:[%s3052_s5 + $0x28] sm:$0xff]  ;;  %s2855_s25 = smov 127   ;;  %s2856_s20 = smov 126  }
  0x60   : > { %v669_v26 = vand.u32 2147483647, %v3091_v12  ;;  %v3118_v27 = vsub.f32 %v3065_v2, %v317_v9  ;;  %v3125_v28 = vsub.f32 %v3099_v16, %v350_v20  ;;  %v3129_v30 = vsub.f32 %v3076_v5, %v316_v18  ;;  %s2857_s8 = smov 125   ;;  %s2858_s6 = smov 124  }
  0x61   : > { %v349_v29 = vsel %vm310_vm0, %v347_v15, %v348_v21  ;;  %v3132_v31 = vsub.f32 %v3079_v6, %v313_v19  ;;  %v675_v32 = vand.u32 2147483647, %v3113_v24  ;;  %v352_v33 = vsel %vm310_vm0, %v350_v20, %v351_v25  ;;  %s2859_s29 = smov 123   ;;  %s2860_s1 = smov 122  }
  0x62   : > { %v319_v34 = vsel %vm310_vm0, %v317_v9, %v318_v14  ;;  %v677_v35 = vand.u32 2147483647, %v3125_v28  ;;  %v3141_v36 = vsub.f32 %v3102_v17, %v349_v29  ;;  %v3144_v37 = vsub.f32 %v3109_v22, %v352_v33  ;;  %s2861_s7 = smov 121   ;;  %s2862_s10 = smov 120  }
  0x63   : > { %417 = vrot.lane.b32.xlu1 %v3076_v5, %s2854_s17  ;;  %413 = vrot.lane.b32.xlu0 %v3079_v6, %s2854_s17  ;;  %v670_v40 = vand.u32 2147483647, %v3129_v30  ;;  %v3153_v41 = vadd.f32 %v675_v32, %v667_v23  ;;  %v354_v42 = vrot.slane %v3147_v38, 7  ;;  %v353_v43 = vrot.slane %v3150_v39, 7  ;;  %s2863_s11 = smov 119   ;;  %s2864_s19 = smov 7  }
  0x64   : > { %421 = vrot.lane.b32.xlu2 %v3085_v10, %s2854_s17  ;;  %v668_v44 = vand.u32 2147483647, %v3132_v31  ;;  %v3158_v45 = vadd.f32 %v677_v35, %v669_v26  ;;  %v676_v46 = vand.u32 2147483647, %v3141_v36  ;;  %v678_v47 = vand.u32 2147483647, %v3144_v37 }
  0x65   : > { %v3163_v48 = vsub.f32 %v3085_v10, %v319_v34  ;;  %v735_v51 = vrot.slane %v3153_v41, 1  ;;  %v671_v52 = vand.u32 2147483647, %v3118_v27  ;;  %v752_v55 = vrot.slane %v3153_v41, 2  ;;  %s2865_s30 = smov 14   ;;  %s2866_s4 = smov 21  }
  0x66   : > { %v736_v53 = vrot.slane %v3158_v45, 1  ;;  %v773_v56 = vrot.slane %v3153_v41, 3  ;;  %vm835_vm5 = vcmask 1041408   ;;  %v355_v57 = vsel %vm310_vm0, %v353_v43, %v354_v42  ;;  %s2867_s21 = smov 28   ;;  %s2868_s26 = smov 35  }
  0x67   : > { %v672_v54 = vand.u32 2147483647, %v3163_v48  ;;  %v794_v58 = vrot.slane %v3153_v41, 4  ;;  %v815_v59 = vrot.slane %v3153_v41, 5  ;;  %v3184_v60 = vadd.f32 %v676_v46, %v668_v44  ;;  %s2869_s27 = smov 5   ;;  %s2870_s28 = smov 11  }
  0x68   : > { %v3186_v61 = vadd.f32 %v678_v47, %v670_v40  ;;  %v743_v62 = vadd.f32 %v735_v51, %v3153_v41  ;;  %v836_v63 = vrot.slane %v3153_v41, 6  ;;  %v755_v3 = vrot.slane %v3158_v45, 2  ;;  %s2871_s9 = smov 17  }
  0x69   : > { %v776_v4 = vrot.slane %v3158_v45, 3  ;;  %v744_v7 = vadd.f32 %v736_v53, %v3158_v45  ;;  %v753_v8 = vrot.slane %v3184_v60, 2  ;;  %v774_v9 = vrot.slane %v3184_v60, 3 }
  0x6a   : > { %v795_v14 = vrot.slane %v3184_v60, 4  ;;  %v797_v15 = vrot.slane %v3158_v45, 4  ;;  %v818_v18 = vrot.slane %v3158_v45, 5  ;;  %v839_v19 = vrot.slane %v3158_v45, 6 }
  0x6b   : > { %425 = vrot.lane.b32.xlu1 %v3166_v49, %s2854_s17  ;;  %423 = vrot.lane.b32.xlu0 %v3169_v50, %s2854_s17  ;;  %v756_v20 = vrot.slane %v3186_v61, 2  ;;  %v754_v21 = vsel %vm751_vm1, %v752_v55, %v753_v8  ;;  %v775_v23 = vsel %vm772_vm2, %v773_v56, %v774_v9  ;;  %v816_v25 = vrot.slane %v3184_v60, 5 }
  0x6c   : > { %443 = vrot.lane.b32.xlu2 %v3088_v11, %s2854_s17  ;;  %v3206_v26 = vsub.f32 %v3150_v39, %v353_v43  ;;  %v768_v29 = vadd.f32 %v754_v21, %v743_v62  ;;  %v837_v32 = vrot.slane %v3184_v60, 6  ;;  %v777_v34 = vrot.slane %v3186_v61, 3 }
  0x6d   : > { %v757_v33 = vsel %vm751_vm1, %v755_v3, %v756_v20  ;;  %v796_v35 = vsel %vm793_vm3, %v794_v58, %v795_v14  ;;  %v798_v41 = vrot.slane %v3186_v61, 4  ;;  %v819_v42 = vrot.slane %v3186_v61, 5  ;;  %v3232_v3 = vld [vmem:[%s3052_s5 + $0x30] sm:$0xff] }
  0x6e   : > { %v769_v40 = vadd.f32 %v757_v33, %v744_v7  ;;  %v789_v44 = vadd.f32 %v775_v23, %v768_v29  ;;  %v778_v45 = vsel %vm772_vm2, %v776_v4, %v777_v34  ;;  %v840_v43 = vrot.slane %v3186_v61, 6 }
  0x6f   : > { %v3217_v46 = vsub.f32 %v3147_v38, %v355_v57  ;;  %v817_v47 = vsel %vm814_vm4, %v815_v59, %v816_v25  ;;  %v799_v53 = vsel %vm793_vm3, %v797_v15, %v798_v41  ;;  %v679_v55 = vand.u32 2147483647, %v3206_v26 }
  0x70   : > { %v790_v51 = vadd.f32 %v778_v45, %v769_v40  ;;  %v4893_v56 = vrot.slane %v3169_v50, 7  ;;  %v810_v58 = vadd.f32 %v796_v35, %v789_v44  ;;  %v820_v57 = vsel %vm814_vm4, %v818_v18, %v819_v42 }
  0x71   : > { %v680_v62 = vand.u32 2147483647, %v3217_v46  ;;  %v838_v4 = vsel %vm835_vm5, %v836_v63, %v837_v32  ;;  %v3235_v7 = vadd.f32 %v679_v55, %v671_v52  ;;  %v356_v8 = vrot.slane %v3232_v3, 7 }
  0x72   : > { %v811_v59 = vadd.f32 %v799_v53, %v790_v51  ;;  %v831_v9 = vadd.f32 %v817_v47, %v810_v58  ;;  %v856_v14 = vrot.slane %v3184_v60, 7  ;;  %v841_v15 = vsel %vm835_vm5, %v839_v19, %v840_v43  ;;  %v3252_v19 = vld [vmem:[%s3249_s22] sm:$0xff] }
  0x73   : > { %447 = vrot.lane.b32.xlu1 %v3099_v16, %s2854_s17  ;;  %445 = vrot.lane.b32.xlu0 %v3102_v17, %s2854_s17  ;;  %v3240_v20 = vadd.f32 %v680_v62, %v672_v54  ;;  %v857_v21 = vrot.slane %v3186_v61, 7  ;;  %v737_v23 = vrot.slane %v3235_v7, 1  ;;  %v758_v63 = vrot.slane %v3235_v7, 2  ;;  %4912 = vst [vmem:[#allocation14_spill] sm:$0xff] %v3252_v19 }
  0x74   : > { %449 = vrot.lane.b32.xlu2 %v3109_v22, %s2854_s17  ;;  %v832_v18 = vadd.f32 %v820_v57, %v811_v59  ;;  %v852_v25 = vadd.f32 %v838_v4, %v831_v9  ;;  %v779_v29 = vrot.slane %v3235_v7, 3  ;;  %v337_v54 = vsub.f32 %v3169_v50, %v4893_v56 }
  0x75   : > { %v759_v52 = vrot.slane %v3240_v20, 2  ;;  %v780_v32 = vrot.slane %v3240_v20, 3  ;;  %v745_v34 = vadd.f32 %v737_v23, %v3235_v7  ;;  %v383_v35 = vrot.slane %v3252_v19, 7 }
  0x76   : > { %v853_v33 = vadd.f32 %v841_v15, %v832_v18  ;;  %v864_v40 = vadd.f32 %v856_v14, %v852_v25  ;;  %v673_v42 = vand.u32 2147483647, %v337_v54  ;;  %v800_v47 = vrot.slane %v3235_v7, 4  ;;  %v3279_v14 = vld [vmem:[%s3052_s5 + $0x38] sm:$0xff]  ;;  %s2872_s5 = smov 23  }
  0x77   : > { %v760_v41 = vsel %vm751_vm1, %v758_v63, %v759_v52  ;;  %v781_v43 = vsel %vm772_vm2, %v779_v29, %v780_v32  ;;  %v801_v51 = vrot.slane %v3240_v20, 4  ;;  %v373_v53 = vsub.f32 %v3232_v3, %v356_v8  ;;  %4913 = vst [vmem:[#allocation15_spill] sm:$0xff] %v3279_v14  ;;  %v3298_v52 = vld [vmem:[%s3249_s22 + $0x18] sm:$0xff] }
  0x78   : > { %v865_v44 = vadd.f32 %v857_v21, %v853_v33  ;;  %v770_v45 = vadd.f32 %v760_v41, %v745_v34  ;;  %v872_v58 = vrot.slane %v3184_v60, 1  ;;  %v403_v57 = vsub.f32 %v3252_v19, %v383_v35  ;;  %4914 = vst [vmem:[#allocation16_spill] sm:$0xff] %v3298_v52  ;;  %v3329_v34 = vld [vmem:[%s3249_s22 + $0x10] sm:$0xff] }
  0x79   : > { %v868_v62 = vadd.f32 %v864_v40, %v3184_v60  ;;  %v873_v59 = vrot.slane %v3186_v61, 1  ;;  %v681_v9 = vand.u32 2147483647, %v373_v53  ;;  %v507_v15 = vadd.f32 %v3113_v24, %v3094_v13  ;;  %4915 = vst [vmem:[#allocation17_spill] sm:$0xff] %v3329_v34 }
  0x7a   : > { %v869_v4 = vadd.f32 %v865_v44, %v3186_v61  ;;  %v791_v18 = vadd.f32 %v781_v43, %v770_v45  ;;  %v3283_v21 = vand.u32 2147483647, %v403_v57  ;;  %v357_v23 = vrot.slane %v3279_v14, 7  ;;  %v3338_v44 = vld [vmem:[%s3249_s22 + $0x30] sm:$0xff] }
  0x7b   : > { %453 = vrot.lane.b32.xlu1 %v3147_v38, %s2854_s17  ;;  %451 = vrot.lane.b32.xlu0 %v3150_v39, %s2854_s17  ;;  %v3288_v63 = vadd.f32 %v3125_v28, %v3091_v12  ;;  %v3292_v60 = vadd.f32 %v3141_v36, %v3132_v31  ;;  %v802_v61 = vsel %vm793_vm3, %v800_v47, %v801_v51  ;;  %v387_v28 = vrot.slane %v3298_v52, 7  ;;  %v3311_v31 = vld [vmem:[%s3249_s22 + $0x8] sm:$0xff] }
  0x7c   : > { %455 = vrot.lane.b32.xlu2 %v3232_v3, %s2854_s17  ;;  %v3295_v25 = vadd.f32 %v681_v9, %v673_v42  ;;  %v3302_v13 = vadd.f32 %v3144_v37, %v3129_v30  ;;  %v3306_v24 = vadd.f32 %v3206_v26, %v3118_v27  ;;  %v3313_v36 = vadd.f32 %v872_v58, %v868_v62 }
  0x7d   : > { %v3315_v29 = vadd.f32 %v873_v59, %v869_v4  ;;  %v3318_v33 = vadd.f32 %v373_v53, %v337_v54  ;;  %v3320_v30 = vadd.f32 %v802_v61, %v791_v18  ;;  %v1036_v27 = vrot.slane %v3283_v21, 1 }
  0x7e   : > { %v515_v37 = vsub.f32 %v507_v15, %v403_v57  ;;  %v358_v26 = vsel %vm310_vm0, %v356_v8, %v357_v23  ;;  %v738_v40 = vrot.slane %v3295_v25, 1  ;;  %v386_v42 = vrot.slane %v3329_v34, 7 }
  0x7f   : > { %v384_v43 = vrot.slane %v3311_v31, 7  ;;  %v4892_v47 = vrot.slane %v3338_v44, 7  ;;  %v1044_v23 = vadd.f32 %v1036_v27, %v3283_v21  ;;  %v3389_v45 = vsub.f32 %v3279_v14, %v358_v26 }
  0x80   : > { %v388_v58 = vsel %vm310_vm0, %v386_v42, %v387_v28  ;;  %v405_v57 = vsub.f32 %v3329_v34, %v386_v42  ;;  %v3355_v15 = vadd.f32 %v738_v40, %v3295_v25  ;;  %v3359_v28 = vand.u32 2147483647, %v515_v37  ;;  %v3371_v40 = vld [vmem:[%s3249_s22 + $0x20] sm:$0xff] }
  0x81   : > { %v3352_v9 = vsub.f32 %v3298_v52, %v388_v58  ;;  %v385_v12 = vsel %vm310_vm0, %v383_v35, %v384_v43  ;;  %v409_v58 = vsub.f32 %v3338_v44, %v4892_v47  ;;  %vm539_vm6 = vcmask 1046528  }
  0x82   : > { %v693_v61 = vand.u32 2147483647, %v405_v57  ;;  %v517_v32 = vsub.f32 %v3288_v63, %v405_v57  ;;  %v404_v57 = vsub.f32 %v3311_v31, %v385_v12  ;;  %v3394_v12 = vld [vmem:[%s3249_s22 + $0x28] sm:$0xff]  ;;  %vm560_vm7 = vcmask 130048  }
  0x83   : > { %475 = vrot.lane.b32.xlu1 %v3252_v19, %s2854_s17  ;;  %457 = vrot.lane.b32.xlu0 %v3279_v14, %s2854_s17  ;;  %v3362_v42 = vand.u32 2147483647, %v3352_v9  ;;  %vm562_vm8 = vcmask 129024   ;;  %vm642_vm9 = vcmask 121856   ;;  %vm1936_vm10 = vcmask 50177  }
  0x84   : > { %477 = vrot.lane.b32.xlu2 %v3311_v31, %s2854_s17  ;;  %v1037_v18 = vrot.slane %v693_v61, 1  ;;  %v1055_v27 = vrot.slane %v693_v61, 2  ;;  %v1075_v59 = vrot.slane %v693_v61, 3  ;;  %v1095_v62 = vrot.slane %v693_v61, 4 }
  0x85   : > { %v1056_v37 = vrot.slane %v3362_v42, 2  ;;  %v1076_v4 = vrot.slane %v3362_v42, 3  ;;  %v1096_v35 = vrot.slane %v3362_v42, 4  ;;  %v1115_v51 = vrot.slane %v693_v61, 5 }
  0x86   : > { %v1045_v43 = vadd.f32 %v1037_v18, %v693_v61  ;;  %v1116_v63 = vrot.slane %v3362_v42, 5  ;;  %v1135_v53 = vrot.slane %v693_v61, 6  ;;  %v1136_v41 = vrot.slane %v3362_v42, 6 }
  0x87   : > { %v1057_v47 = vsel %vm751_vm1, %v1055_v27, %v1056_v37  ;;  %v1077_v56 = vsel %vm772_vm2, %v1075_v59, %v1076_v4  ;;  %v1097_v55 = vsel %vm793_vm3, %v1095_v62, %v1096_v35  ;;  %v390_v4 = vrot.slane %v3394_v12, 7 }
  0x88   : > { %v1069_v8 = vadd.f32 %v1057_v47, %v1045_v43  ;;  %v1117_v18 = vsel %vm814_vm4, %v1115_v51, %v1116_v63  ;;  %v389_v62 = vrot.slane %v3371_v40, 7  ;;  %v3401_v59 = vand.u32 2147483647, %v517_v32  ;;  %v3410_v43 = vld [vmem:[%s3249_s22 + $0x38] sm:$0xff]  ;;  %s2587_s22 = sshll.u32 %s3037_s0, 3 }
  0x89   : > { %v1137_v47 = vsel %vm835_vm5, %v1135_v53, %v1136_v41  ;;  %v521_v61 = vsub.f32 %v3318_v33, %v409_v58  ;;  %v516_v32 = vsub.f32 %v3292_v60, %v404_v57  ;;  %v4916_v41 = vrot.slane %v3283_v21, 2 }
  0x8a   : > { %v1089_v26 = vadd.f32 %v1077_v56, %v1069_v8  ;;  %v3414_v56 = vand.u32 2147483647, %v409_v58  ;;  %v4917_v8 = vrot.slane %v3283_v21, 3  ;;  %v1153_v58 = vrot.slane %v3362_v42, 7 }
  0x8b   : > { %481 = vrot.lane.b32.xlu1 %v3298_v52, %s2854_s17  ;;  %479 = vrot.lane.b32.xlu0 %v3329_v34, %s2854_s17  ;;  %v3397_v34 = vand.u32 2147483647, %v404_v57  ;;  %v4918_v52 = vrot.slane %v3283_v21, 4  ;;  %vm1962_vm11 = vcmask 108602   ;;  %vm1999_vm12 = vcmask 167027  }
  0x8c   : > { %483 = vrot.lane.b32.xlu2 %v3371_v40, %s2854_s17  ;;  %v1109_v63 = vadd.f32 %v1097_v55, %v1089_v26  ;;  %v4919_v55 = vrot.slane %v3283_v21, 5  ;;  %vm2032_vm13 = vcmask 225452   ;;  %vm2065_vm14 = vcmask 283877  }
  0x8d   : > { %v1053_v51 = vrot.slane %v3397_v34, 2  ;;  %v1073_v27 = vrot.slane %v3397_v34, 3  ;;  %v1093_v37 = vrot.slane %v3397_v34, 4  ;;  %v1113_v35 = vrot.slane %v3397_v34, 5 }
  0x8e   : > { %v1133_v54 = vrot.slane %v3397_v34, 6  ;;  %v1129_v60 = vadd.f32 %v1117_v18, %v1109_v63  ;;  %v3441_v18 = vand.u32 2147483647, %v521_v61  ;;  %v524_v63 = vand.u32 2147483647, %v516_v32 }
  0x8f   : > { %v1054_v33 = vsel %vm751_vm1, %v4916_v41, %v1053_v51  ;;  %v1074_v53 = vsel %vm772_vm2, %v4917_v8, %v1073_v27  ;;  %v1094_v14 = vsel %vm793_vm3, %v4918_v52, %v1093_v37  ;;  %v1114_v26 = vsel %vm814_vm4, %v4919_v55, %v1113_v35 }
  0x90   : > { %v1068_v57 = vadd.f32 %v1054_v33, %v1044_v23  ;;  %v4920_v51 = vrot.slane %v3283_v21, 6  ;;  %v543_v27 = vrot.slane %v3401_v59, 1  ;;  %v1169_v37 = vrot.slane %v3362_v42, 1 }
  0x91   : > { %v1149_v35 = vadd.f32 %v1137_v47, %v1129_v60  ;;  %v1039_v21 = vrot.slane %v3414_v56, 1  ;;  %v407_v33 = vsub.f32 %v3371_v40, %v389_v62  ;;  %v393_v8 = vrot.slane %v3410_v43, 7 }
  0x92   : > { %v1134_v41 = vsel %vm835_vm5, %v4920_v51, %v1133_v54  ;;  %v1088_v23 = vadd.f32 %v1074_v53, %v1068_v57  ;;  %v391_v54 = vsel %vm310_vm0, %v389_v62, %v390_v4  ;;  %v4921_v55 = vrot.slane %v3166_v49, 7 }
  0x93   : > { %487 = vrot.lane.b32.xlu1 %v3338_v44, %s2854_s17  ;;  %485 = vrot.lane.b32.xlu0 %v3394_v12, %s2854_s17  ;;  %v4922_v51 = vrot.slane %v3169_v50, 7  ;;  %v1161_v52 = vadd.f32 %v1153_v58, %v1149_v35  ;;  %v1152_v47 = vrot.slane %v3397_v34, 7  ;;  %v519_v53 = vsub.f32 %v3306_v24, %v407_v33 }
  0x94   : > { %489 = vrot.lane.b32.xlu2 %v3410_v43, %s2854_s17  ;;  %v1108_v61 = vadd.f32 %v1094_v14, %v1088_v23  ;;  %v4923_v4 = vrot.slane %v3338_v44, 7  ;;  %v408_v60 = vsub.f32 %v3394_v12, %v391_v54  ;;  %v512_v57 = vadd.f32 %v3217_v46, %v3163_v48  ;;  %s2873_s17 = smov 29  }
  0x95   : > { %v322_v59 = vsel %vm310_vm0, %v4922_v51, %v4921_v55  ;;  %v1165_v19 = vadd.f32 %v1161_v52, %v3362_v42  ;;  %v1168_v35 = vrot.slane %v3397_v34, 1  ;;  %v541_v23 = vrot.slane %v524_v63, 1 }
  0x96   : > { %v338_v32 = vsub.f32 %v3166_v49, %v322_v59  ;;  %v394_v62 = vsel %vm310_vm0, %v4923_v4, %v393_v8  ;;  %v1128_v55 = vadd.f32 %v1114_v26, %v1108_v61  ;;  %v3466_v24 = vadd.f32 %v1039_v21, %v3414_v56 }
  0x97   : > { %v410_v14 = vsub.f32 %v3410_v43, %v394_v62  ;;  %v1061_v8 = vrot.slane %v3414_v56, 2  ;;  %v3469_v51 = vadd.f32 %v1169_v37, %v1165_v19  ;;  %v527_v26 = vand.u32 2147483647, %v519_v53 }
  0x98   : > { %v514_v58 = vadd.f32 %v3389_v45, %v338_v32  ;;  %v1148_v54 = vadd.f32 %v1134_v41, %v1128_v55  ;;  %v518_v52 = vsub.f32 %v3302_v13, %v3352_v9  ;;  %v520_v63 = vsub.f32 %v512_v57, %v408_v60 }
  0x99   : > { %4924 = vst [vmem:[#allocation18_spill] sm:$0xff] %v3469_v51  ;;  %v3478_v59 = vand.u32 2147483647, %v407_v33  ;;  %v546_v41 = vrot.slane %v527_v26, 1  ;;  %v4925_v4 = vrot.slane %v3359_v28, 1  ;;  %v4934_v51 = vrot.slane %v3414_v56, 4 }
  0x9a   : > { %v1160_v21 = vadd.f32 %v1152_v47, %v1148_v54  ;;  %v522_v19 = vsub.f32 %v514_v58, %v410_v14  ;;  %v526_v37 = vand.u32 2147483647, %v518_v52  ;;  %v528_v61 = vand.u32 2147483647, %v520_v63 }
  0x9b   : > { %v542_v62 = vsel %vm539_vm6, %v4925_v4, %v541_v23  ;;  %v563_v47 = vsel %vm562_vm8, %v541_v23, 0.0  ;;  %v674_v28 = vand.u32 2147483647, %v338_v32  ;;  %v1038_v54 = vrot.slane %v3478_v59, 1 }
  0x9c   : > { %888 = vrot.lane.b32.xlu2 %v3313_v36, %s2855_s25  ;;  %v1164_v55 = vadd.f32 %v1160_v21, %v3397_v34  ;;  %v3484_v42 = vand.u32 2147483647, %v522_v19  ;;  %v544_v13 = vrot.slane %v526_v37, 1  ;;  %v547_v9 = vrot.slane %v528_v61, 1 }
  0x9d   : > { %v561_v33 = vsel %vm560_vm7, %v542_v62, 0.0  ;;  %v1058_v34 = vrot.slane %v3478_v59, 2  ;;  %v549_v63 = vrot.slane %v3441_v18, 1  ;;  %v1078_v32 = vrot.slane %v3478_v59, 3 }
  0x9e   : > { %v3488_v53 = vadd.f32 %v1168_v35, %v1164_v55  ;;  %v564_v58 = vadd.f32 %v563_v47, %v561_v33  ;;  %v545_v26 = vsel %vm539_vm6, %v543_v27, %v544_v13  ;;  %v548_v52 = vsel %vm539_vm6, %v546_v41, %v547_v9 }
  0x9f   : > { %v4898_v21 = vrot.slane %v3484_v42, 1  ;;  %v565_v23 = vsel %vm560_vm7, %v545_v26, 0.0  ;;  %v567_v35 = vsel %vm562_vm8, %v544_v13, 0.0  ;;  %v1098_v19 = vrot.slane %v3478_v59, 4 }
  0xa0   : > { %4926 = vst [vmem:[#allocation19_spill] sm:$0xff] %v3488_v53  ;;  %v566_v37 = vadd.f32 %v565_v23, %v564_v58  ;;  %v4927_v27 = vand.u32 2147483647, %v3389_v45  ;;  %v1118_v18 = vrot.slane %v3478_v59, 5  ;;  %v569_v41 = vsel %vm560_vm7, %v548_v52, 0.0 }
  0xa1   : > { %v3509_v4 = vand.u32 2147483647, %v408_v60  ;;  %v3511_v62 = vand.u32 2147483647, %v410_v14  ;;  %v1046_v58 = vadd.f32 %v1038_v54, %v3478_v59  ;;  %v1138_v45 = vrot.slane %v3478_v59, 6 }
  0xa2   : > { %v3505_v61 = vadd.f32 %v4927_v27, %v674_v28  ;;  %v568_v55 = vadd.f32 %v567_v35, %v566_v37  ;;  %v551_v28 = vsel %vm539_vm6, %v549_v63, %v4898_v21  ;;  %v571_v60 = vsel %vm562_vm8, %v547_v9, 0.0 }
  0xa3   : > { %v4928_v14 = vrot.slane %v3295_v25, 2  ;;  %v4929_v52 = vrot.slane %v3295_v25, 3  ;;  %v1059_v63 = vrot.slane %v3509_v4, 2  ;;  %v4930_v9 = vrot.slane %v3295_v25, 4 }
  0xa4   : > { %890 = vrot.lane.b32.xlu2 %v3315_v29, %s2855_s25  ;;  %v762_v13 = vrot.slane %v3505_v61, 2  ;;  %v783_v33 = vrot.slane %v3505_v61, 3  ;;  %v804_v47 = vrot.slane %v3505_v61, 4  ;;  %v825_v35 = vrot.slane %v3505_v61, 5 }
  0xa5   : > { %v846_v54 = vrot.slane %v3505_v61, 6  ;;  %v570_v37 = vadd.f32 %v569_v41, %v568_v55  ;;  %v859_v27 = vrot.slane %v3505_v61, 7  ;;  %v1060_v57 = vsel %vm751_vm1, %v1058_v34, %v1059_v63 }
  0xa6   : > { %v763_v26 = vsel %vm751_vm1, %v4928_v14, %v762_v13  ;;  %v784_v23 = vsel %vm772_vm2, %v4929_v52, %v783_v33  ;;  %v805_v21 = vsel %vm793_vm3, %v4930_v9, %v804_v47  ;;  %v1062_v13 = vrot.slane %v3511_v62, 2 }
  0xa7   : > { %v771_v59 = vadd.f32 %v763_v26, %v3355_v15  ;;  %v1079_v14 = vrot.slane %v3509_v4, 3  ;;  %v1082_v33 = vrot.slane %v3511_v62, 3  ;;  %v1099_v41 = vrot.slane %v3509_v4, 4 }
  0xa8   : > { %v1102_v15 = vrot.slane %v3511_v62, 4  ;;  %v4931_v55 = vrot.slane %v3295_v25, 5  ;;  %v1063_v47 = vsel %vm751_vm1, %v1061_v8, %v1062_v13  ;;  %v1070_v9 = vadd.f32 %v1060_v57, %v1046_v58 }
  0xa9   : > { %v792_v52 = vadd.f32 %v784_v23, %v771_v59  ;;  %v1080_v46 = vsel %vm772_vm2, %v1078_v32, %v1079_v14  ;;  %v1071_v23 = vadd.f32 %v1063_v47, %v3466_v24  ;;  %v4932_v34 = vrot.slane %v3414_v56, 3 }
  0xaa   : > { %v826_v26 = vsel %vm814_vm4, %v4931_v55, %v825_v35  ;;  %v1100_v63 = vsel %vm793_vm3, %v1098_v19, %v1099_v41  ;;  %v4933_v53 = vrot.slane %v3295_v25, 6  ;;  %v1090_v55 = vadd.f32 %v1080_v46, %v1070_v9 }
  0xab   : > { %v813_v48 = vadd.f32 %v805_v21, %v792_v52  ;;  %v1083_v59 = vsel %vm772_vm2, %v4932_v34, %v1082_v33  ;;  %v1103_v8 = vsel %vm793_vm3, %v4934_v51, %v1102_v15  ;;  %v1119_v57 = vrot.slane %v3509_v4, 5 }
  0xac   : > { %v847_v35 = vsel %vm835_vm5, %v4933_v53, %v846_v54  ;;  %v1091_v32 = vadd.f32 %v1083_v59, %v1071_v23  ;;  %v1122_v24 = vrot.slane %v3511_v62, 5  ;;  %v1139_v58 = vrot.slane %v3509_v4, 6 }
  0xad   : > { %v834_v21 = vadd.f32 %v826_v26, %v813_v48  ;;  %v572_v13 = vadd.f32 %v571_v60, %v570_v37  ;;  %v1110_v14 = vadd.f32 %v1100_v63, %v1090_v55  ;;  %v1120_v19 = vsel %vm814_vm4, %v1118_v18, %v1119_v57 }
  0xae   : > { %v1142_v25 = vrot.slane %v3511_v62, 6  ;;  %v1111_v46 = vadd.f32 %v1103_v8, %v1091_v32  ;;  %v4935_v54 = vrot.slane %v3414_v56, 5  ;;  %v1140_v33 = vsel %vm835_vm5, %v1138_v45, %v1139_v58 }
  0xaf   : > { %v855_v53 = vadd.f32 %v847_v35, %v834_v21  ;;  %v573_v48 = vsel %vm560_vm7, %v551_v28, 0.0  ;;  %v1130_v52 = vadd.f32 %v1120_v19, %v1110_v14  ;;  %v4936_v41 = vrot.slane %v3414_v56, 6 }
  0xb0   : > { %v1123_v51 = vsel %vm814_vm4, %v4935_v54, %v1122_v24  ;;  %v1154_v37 = vrot.slane %v3509_v4, 7  ;;  %v875_v15 = vrot.slane %v3505_v61, 1  ;;  %v1155_v47 = vrot.slane %v3511_v62, 7 }
  0xb1   : > { %v1143_v60 = vsel %vm835_vm5, %v4936_v41, %v1142_v25  ;;  %v867_v18 = vadd.f32 %v859_v27, %v855_v53  ;;  %v1131_v26 = vadd.f32 %v1123_v51, %v1111_v46  ;;  %v4937_v9 = vrot.slane %v3240_v20, 5 }
  0xb2   : > { %v4938_v23 = vrot.slane %v3235_v7, 5  ;;  %v842_v28 = vrot.slane %v3235_v7, 6  ;;  %v843_v56 = vrot.slane %v3240_v20, 6  ;;  %v1150_v34 = vadd.f32 %v1140_v33, %v1130_v52 }
  0xb3   : > { %v574_v63 = vadd.f32 %v573_v48, %v572_v13  ;;  %v871_v27 = vadd.f32 %v867_v18, %v3505_v61  ;;  %v1151_v35 = vadd.f32 %v1143_v60, %v1131_v26  ;;  %v4939_v55 = vrot.slane %v3484_v42, 1 }
  0xb4   : > { %v823_v45 = vsel %vm814_vm4, %v4938_v23, %v4937_v9  ;;  %v1162_v57 = vadd.f32 %v1154_v37, %v1150_v34  ;;  %v1170_v21 = vrot.slane %v3509_v4, 1  ;;  %v1171_v58 = vrot.slane %v3511_v62, 1 }
  0xb5   : > { %v575_v8 = vsel %vm562_vm8, %v4939_v55, 0.0  ;;  %v833_v32 = vadd.f32 %v823_v45, %v3320_v30  ;;  %v3589_v24 = vadd.f32 %v875_v15, %v871_v27  ;;  %v1163_v7 = vadd.f32 %v1155_v47, %v1151_v35 }
  0xb6   : > { %v420_v59 = vpop.permute.xlu2 %419  ;;  %v844_v14 = vsel %vm835_vm5, %v842_v28, %v843_v56  ;;  %v1166_v13 = vadd.f32 %v1162_v57, %v3509_v4  ;;  %v576_v61 = vadd.f32 %v575_v8, %v574_v63  ;;  %v858_v30 = vrot.slane %v3240_v20, 7 }
  0xb7   : > { %v1167_v19 = vadd.f32 %v1163_v7, %v3511_v62  ;;  %894 = vrot.lane.b32.xlu2 %v3589_v24, %s2855_s25  ;;  %v854_v25 = vadd.f32 %v844_v14, %v833_v32  ;;  %v874_v62 = vrot.slane %v3240_v20, 1  ;;  %v3624_v34 = vsub.f32 %v3065_v2, %v420_v59 }
  0xb8   : > { %v3597_v42 = vadd.f32 %v1170_v21, %v1166_v13  ;;  %vm2098_vm15 = vcmask 342302   ;;  %vm2337_vm6 = vcmask 342310   ;;  %vm2410_vm7 = vcmask 335872  }
  0xb9   : > { %v3600_v53 = vadd.f32 %v1171_v58, %v1167_v19  ;;  %v866_v54 = vadd.f32 %v858_v30, %v854_v25  ;;  %v703_v57 = vand.u32 2147483647, %v3624_v34 }
  0xbb   : > { %v870_v4 = vadd.f32 %v866_v54, %v3240_v20 }
  0xbd   : > { %577 = vadd.xlane.f32.xlu0 %v576_v61  ;;  %v3606_v33 = vadd.f32 %v874_v62, %v870_v4 }
  0xbe   : > { %v422_v46 = vpop.permute.xlu2 %421 }
  0xbf   : > { %904 = vrot.lane.b32.xlu2 %v3313_v36, %s2856_s20  ;;  %v3627_v63 = vsub.f32 %v3085_v10, %v422_v46 }
  0xc1   : > { %v704_v59 = vand.u32 2147483647, %v3627_v63 }
  0xc6   : > { %v444_v51 = vpop.permute.xlu2 %443 }
  0xc7   : > { %v467_v48 = vsub.f32 %v3088_v11, %v444_v51  ;;  %908 = vrot.lane.b32.xlu2 %v3606_v33, %s2856_s20 }
  0xc9   : > { %v707_v60 = vand.u32 2147483647, %v467_v48 }
  0xcd   : > { %v416_v52 = vpop.permute.xlu1 %415  ;;  %v412_v41 = vpop.permute.xlu0 %411 }
  0xce   : > { %v435_v37 = vsub.f32 %v3062_v1, %v412_v41  ;;  %v450_v18 = vpop.permute.xlu2 %449 }
  0xcf   : > { %v470_v20 = vsub.f32 %v3109_v22, %v450_v18  ;;  %v3630_v22 = vsub.f32 %v3059_v0, %v416_v52 }
  0xd0   : > { %v699_v15 = vand.u32 2147483647, %v435_v37  ;;  %v3638_v32 = vadd.f32 %v467_v48, %v435_v37 }
  0xd1   : > { %892 = vrot.lane.b32.xlu0 %v3606_v33, %s2855_s25  ;;  %v710_v11 = vand.u32 2147483647, %v470_v20  ;;  %v701_v10 = vand.u32 2147483647, %v3630_v22 }
  0xd2   : > { %v3612_v26 = vadd.f32 %v707_v60, %v699_v15 }
  0xd4   : > { %v1332_v21 = vrot.slane %v3612_v26, 1  ;;  %v1348_v7 = vrot.slane %v3612_v26, 2  ;;  %v1388_v58 = vrot.slane %v3612_v26, 4  ;;  %v1428_v13 = vrot.slane %v3612_v26, 6 }
  0xd5   : > { %v418_v47 = vpop.permute.xlu1 %417  ;;  %v414_v9 = vpop.permute.xlu0 %413  ;;  %v1448_v25 = vrot.slane %v3612_v26, 7 }
  0xd6   : > { %v438_v23 = vsub.f32 %v3076_v5, %v418_v47  ;;  %v456_v45 = vpop.permute.xlu2 %455  ;;  %v1340_v19 = vadd.f32 %v1332_v21, %v3612_v26 }
  0xd7   : > { %v473_v1 = vsub.f32 %v3232_v3, %v456_v45  ;;  %v436_v3 = vsub.f32 %v3079_v6, %v414_v9  ;;  %v1408_v6 = vrot.slane %v3612_v26, 5 }
  0xd8   : > { %v702_v28 = vand.u32 2147483647, %v438_v23  ;;  %v3660_v30 = vadd.f32 %v470_v20, %v438_v23 }
  0xd9   : > { %906 = vrot.lane.b32.xlu0 %v3315_v29, %s2856_s20  ;;  %v713_v35 = vand.u32 2147483647, %v473_v1  ;;  %v700_v46 = vand.u32 2147483647, %v436_v3 }
  0xda   : > { %v3618_v56 = vadd.f32 %v710_v11, %v702_v28 }
  0xdc   : > { %v1352_v54 = vrot.slane %v3618_v56, 2  ;;  %v1372_v4 = vrot.slane %v3618_v56, 3  ;;  %v1392_v62 = vrot.slane %v3618_v56, 4  ;;  %v1412_v51 = vrot.slane %v3618_v56, 5 }
  0xdd   : > { %v426_v27 = vpop.permute.xlu1 %425  ;;  %v424_v5 = vpop.permute.xlu0 %423  ;;  %v1432_v52 = vrot.slane %v3618_v56, 6  ;;  %v1452_v41 = vrot.slane %v3618_v56, 7 }
  0xde   : > { %v441_v55 = vsub.f32 %v3169_v50, %v424_v5  ;;  %v478_v8 = vpop.permute.xlu2 %477  ;;  %v1368_v50 = vrot.slane %v3612_v26, 3  ;;  %v3653_v61 = vsub.f32 %v3166_v49, %v426_v27 }
  0xdf   : > { %v3641_v0 = vsub.f32 %v3311_v31, %v478_v8 }
  0xe0   : > { %v705_v2 = vand.u32 2147483647, %v441_v55  ;;  %v3674_v20 = vadd.f32 %v473_v1, %v441_v55 }
  0xe1   : > { %910 = vrot.lane.b32.xlu0 %v3589_v24, %s2856_s20  ;;  %v3656_v31 = vand.u32 2147483647, %v3641_v0 }
  0xe2   : > { %v3646_v14 = vadd.f32 %v713_v35, %v705_v2 }
  0xe3   : > { %v1753_v26 = vrot.slane %v3656_v31, 7 }
  0xe5   : > { %v448_v49 = vpop.permute.xlu1 %447  ;;  %v446_v48 = vpop.permute.xlu0 %445 }
  0xe6   : > { %v3669_v60 = vsub.f32 %v3099_v16, %v448_v49  ;;  %v468_v37 = vsub.f32 %v3102_v17, %v446_v48  ;;  %v484_v28 = vpop.permute.xlu2 %483  ;;  %v1335_v16 = vrot.slane %v3646_v14, 1 }
  0xe7   : > { %v3693_v48 = vsub.f32 %v3371_v40, %v484_v28 }
  0xe8   : > { %v709_v9 = vand.u32 2147483647, %v3669_v60  ;;  %v708_v11 = vand.u32 2147483647, %v468_v37  ;;  %v587_v49 = vadd.f32 %v468_v37, %v436_v3 }
  0xe9   : > { %924 = vrot.lane.b32.xlu0 %v3606_v33, %s2857_s8 }
  0xea   : > { %v717_v55 = vadd.f32 %v709_v9, %v701_v10  ;;  %v3686_v8 = vadd.f32 %v708_v11, %v700_v46 }
  0xec   : > { %v1333_v27 = vrot.slane %v717_v55, 1  ;;  %v1351_v17 = vrot.slane %v717_v55, 2  ;;  %v1371_v1 = vrot.slane %v717_v55, 3  ;;  %v1391_v15 = vrot.slane %v717_v55, 4 }
  0xed   : > { %v1411_v35 = vrot.slane %v717_v55, 5  ;;  %v1431_v10 = vrot.slane %v717_v55, 6  ;;  %v1451_v46 = vrot.slane %v717_v55, 7  ;;  %v1349_v9 = vrot.slane %v3686_v8, 2  ;;  %v454_v11 = vpop.permute.xlu1 %453  ;;  %v452_v5 = vpop.permute.xlu0 %451 }
  0xee   : > { %v1341_v45 = vadd.f32 %v1333_v27, %v717_v55  ;;  %v1353_v21 = vsel %vm751_vm1, %v1351_v17, %v1352_v54  ;;  %v1373_v2 = vsel %vm772_vm2, %v1371_v1, %v1372_v4  ;;  %v1393_v3 = vsel %vm793_vm3, %v1391_v15, %v1392_v62  ;;  %v490_v55 = vpop.permute.xlu2 %489 }
  0xef   : > { %v1413_v40 = vsel %vm814_vm4, %v1411_v35, %v1412_v51  ;;  %v1433_v37 = vsel %vm835_vm5, %v1431_v10, %v1432_v52  ;;  %v1453_v28 = vsel %vm310_vm0, %v1451_v46, %v1452_v41  ;;  %v1350_v23 = vsel %vm751_vm1, %v1348_v7, %v1349_v9 }
  0xf0   : > { %v1365_v47 = vadd.f32 %v1353_v21, %v1341_v45  ;;  %v1364_v18 = vadd.f32 %v1350_v23, %v1340_v19  ;;  %v1369_v27 = vrot.slane %v3686_v8, 3  ;;  %v1389_v54 = vrot.slane %v3686_v8, 4 }
  0xf1   : > { %v1409_v4 = vrot.slane %v3686_v8, 5  ;;  %v1429_v62 = vrot.slane %v3686_v8, 6  ;;  %v1449_v51 = vrot.slane %v3686_v8, 7  ;;  %v595_v52 = vsub.f32 %v587_v49, %v3641_v0  ;;  %936 = vrot.lane.b32.xlu0 %v3313_v36, %s2858_s6 }
  0xf2   : > { %v1385_v15 = vadd.f32 %v1373_v2, %v1365_v47  ;;  %v1370_v41 = vsel %vm772_vm2, %v1368_v50, %v1369_v27  ;;  %v1390_v7 = vsel %vm793_vm3, %v1388_v58, %v1389_v54  ;;  %v472_v19 = vsub.f32 %v3147_v38, %v454_v11 }
  0xf3   : > { %v1384_v23 = vadd.f32 %v1370_v41, %v1364_v18  ;;  %v1410_v0 = vsel %vm814_vm4, %v1408_v6, %v1409_v4  ;;  %v1430_v47 = vsel %vm835_vm5, %v1428_v13, %v1429_v62  ;;  %v1450_v50 = vsel %vm310_vm0, %v1448_v25, %v1449_v51 }
  0xf4   : > { %v1405_v58 = vadd.f32 %v1393_v3, %v1385_v15  ;;  %v1733_v38 = vrot.slane %v3656_v31, 6  ;;  %v712_v45 = vand.u32 2147483647, %v472_v19  ;;  %v471_v17 = vsub.f32 %v3150_v39, %v452_v5 }
  0xf5   : > { %v3732_v18 = vadd.f32 %v1335_v16, %v3646_v14  ;;  %v1404_v1 = vadd.f32 %v1390_v7, %v1384_v23  ;;  %v603_v35 = vand.u32 2147483647, %v595_v52  ;;  %v3735_v6 = vand.u32 2147483647, %v3693_v48  ;;  %v476_v2 = vpop.permute.xlu1 %475  ;;  %v458_v10 = vpop.permute.xlu0 %457 }
  0xf6   : > { %v1425_v13 = vadd.f32 %v1413_v40, %v1405_v58  ;;  %v3740_v25 = vadd.f32 %v712_v45, %v704_v59  ;;  %v711_v21 = vand.u32 2147483647, %v471_v17  ;;  %v3744_v39 = vadd.f32 %v3669_v60, %v3630_v22 }
  0xf7   : > { %v1424_v16 = vadd.f32 %v1410_v0, %v1404_v1  ;;  %v1472_v5 = vrot.slane %v3686_v8, 1  ;;  %v1776_v49 = vrot.slane %v3656_v31, 1  ;;  %620 = vrot.lane.b32.xlu2 %v603_v35, %s2855_s25  ;;  %v3750_v9 = vadd.f32 %v472_v19, %v3627_v63 }
  0xf8   : > { %v1445_v46 = vadd.f32 %v1433_v37, %v1425_v13  ;;  %v3753_v59 = vadd.f32 %v471_v17, %v3624_v34  ;;  %v3756_v11 = vsub.f32 %v3410_v43, %v490_v55  ;;  %v1355_v60 = vrot.slane %v3740_v25, 2 }
  0xf9   : > { %v1444_v22 = vadd.f32 %v1430_v47, %v1424_v16  ;;  %v1638_v3 = vrot.slane %v3735_v6, 1  ;;  %v1658_v40 = vrot.slane %v3735_v6, 2  ;;  %v1375_v54 = vrot.slane %v3740_v25, 3  ;;  %940 = vrot.lane.b32.xlu0 %v3606_v33, %s2858_s6 }
  0xfa   : > { %v1465_v27 = vadd.f32 %v1453_v28, %v1445_v46  ;;  %v1395_v37 = vrot.slane %v3740_v25, 4  ;;  %v719_v63 = vadd.f32 %v711_v21, %v703_v57  ;;  %v1415_v4 = vrot.slane %v3740_v25, 5 }
  0xfb   : > { %v1464_v43 = vadd.f32 %v1450_v50, %v1444_v22  ;;  %v1435_v62 = vrot.slane %v3740_v25, 6  ;;  %v1455_v51 = vrot.slane %v3740_v25, 7  ;;  %v4940_v23 = vrot.slane %v3618_v56, 1 }
  0xfc   : > { %v1469_v52 = vadd.f32 %v1465_v27, %v3618_v56  ;;  %v1334_v28 = vrot.slane %v719_v63, 1  ;;  %v1354_v15 = vrot.slane %v719_v63, 2  ;;  %v1374_v41 = vrot.slane %v719_v63, 3 }
  0xfd   : > { %v1468_v7 = vadd.f32 %v1464_v43, %v3686_v8  ;;  %v1394_v19 = vrot.slane %v719_v63, 4  ;;  %v1414_v34 = vrot.slane %v719_v63, 5  ;;  %v1434_v57 = vrot.slane %v719_v63, 6  ;;  %v482_v21 = vpop.permute.xlu1 %481 }
  0xfe   : > { %v3774_v0 = vadd.f32 %v4940_v23, %v1469_v52  ;;  %v1342_v47 = vadd.f32 %v1334_v28, %v719_v63  ;;  %v1356_v50 = vsel %vm751_vm1, %v1354_v15, %v1355_v60  ;;  %v1376_v58 = vsel %vm772_vm2, %v1374_v41, %v1375_v54  ;;  %v4942_v60 = vld [vmem:[#allocation15_spill] sm:$0xff]  ;;  %v480_v54 = vpop.permute.xlu0 %479 }
  0xff   : > { %v3778_v45 = vadd.f32 %v1472_v5, %v1468_v7  ;;  %v1396_v17 = vsel %vm793_vm3, %v1394_v19, %v1395_v37  ;;  %v1416_v1 = vsel %vm814_vm4, %v1414_v34, %v1415_v4  ;;  %v1436_v8 = vsel %vm835_vm5, %v1434_v57, %v1435_v62  ;;  %v4941_v5 = vld [vmem:[#allocation14_spill] sm:$0xff]  ;;  %v4944_v7 = vld [vmem:[#allocation17_spill] sm:$0xff] }
 0x100   : > { %v1474_v35 = vrot.slane %v3740_v25, 1  ;;  %v1366_v55 = vadd.f32 %v1356_v50, %v1342_v47  ;;  %v1454_v13 = vrot.slane %v719_v63, 7  ;;  %v598_v16 = vsub.f32 %v3753_v59, %v3693_v48 }
 0x101   : > { %v3789_v22 = vsub.f32 %v4941_v5, %v476_v2  ;;  %v3792_v27 = vsub.f32 %v4942_v60, %v458_v10  ;;  %954 = vrot.lane.b32.xlu0 %v3315_v29, %s2859_s29  ;;  %v3802_v52 = vand.u32 2147483647, %v3756_v11  ;;  %v4943_v10 = vld [vmem:[#allocation16_spill] sm:$0xff]  ;;  %v3811_v19 = vsub.f32 %v4944_v7, %v480_v54 }
 0x102   : > { %v1386_v37 = vadd.f32 %v1376_v58, %v1366_v55  ;;  %v1456_v43 = vsel %vm310_vm0, %v1454_v13, %v1455_v51  ;;  %v3805_v28 = vsub.f32 %v4943_v10, %v482_v21  ;;  %v4945_v21 = vrot.slane %v3656_v31, 2 }
 0x103   : > { %v723_v2 = vand.u32 2147483647, %v3789_v22  ;;  %v594_v51 = vsub.f32 %v3638_v32, %v3789_v22  ;;  %v714_v41 = vand.u32 2147483647, %v3792_v27  ;;  %v4946_v32 = vrot.slane %v3656_v31, 3 }
 0x104   : > { %v1406_v15 = vadd.f32 %v1396_v17, %v1386_v37  ;;  %v4947_v60 = vrot.slane %v3656_v31, 4  ;;  %v4948_v10 = vrot.slane %v3656_v31, 5 }
 0x105   : > { %v1636_v34 = vrot.slane %v723_v2, 1  ;;  %v1652_v57 = vrot.slane %v723_v2, 2  ;;  %v1672_v23 = vrot.slane %v723_v2, 3  ;;  %v1692_v47 = vrot.slane %v723_v2, 4  ;;  %v488_v4 = vpop.permute.xlu1 %487 }
 0x106   : > { %v1426_v50 = vadd.f32 %v1416_v1, %v1406_v15  ;;  %v1712_v58 = vrot.slane %v723_v2, 5  ;;  %v1732_v55 = vrot.slane %v723_v2, 6  ;;  %v1752_v13 = vrot.slane %v723_v2, 7 }
 0x107   : > { %v1644_v5 = vadd.f32 %v1636_v34, %v723_v2  ;;  %v1654_v17 = vsel %vm751_vm1, %v1652_v57, %v4945_v21  ;;  %v1674_v22 = vsel %vm772_vm2, %v1672_v23, %v4946_v32  ;;  %v1694_v54 = vsel %vm793_vm3, %v1692_v47, %v4947_v60 }
 0x108   : > { %v1446_v37 = vadd.f32 %v1436_v8, %v1426_v50  ;;  %v1714_v1 = vsel %vm814_vm4, %v1712_v58, %v4948_v10  ;;  %v1734_v2 = vsel %vm835_vm5, %v1732_v55, %v1733_v38  ;;  %v1754_v15 = vsel %vm310_vm0, %v1752_v13, %v1753_v26 }
 0x109   : > { %v1668_v7 = vadd.f32 %v1654_v17, %v1644_v5  ;;  %v4949_v34 = vand.u32 2147483647, %v3653_v61  ;;  %v1662_v23 = vrot.slane %v3802_v52, 2  ;;  %v1682_v8 = vrot.slane %v3802_v52, 3  ;;  %968 = vrot.lane.b32.xlu0 %v3313_v36, %s2860_s1 }
 0x10a   : > { %v1466_v47 = vadd.f32 %v1456_v43, %v1446_v37  ;;  %v1702_v50 = vrot.slane %v3802_v52, 4  ;;  %v1722_v58 = vrot.slane %v3802_v52, 5  ;;  %v1742_v38 = vrot.slane %v3802_v52, 6 }
 0x10b   : > { %v3833_v57 = vadd.f32 %v714_v41, %v4949_v34  ;;  %v1688_v26 = vadd.f32 %v1674_v22, %v1668_v7  ;;  %v4950_v60 = vrot.slane %v3646_v14, 2  ;;  %v4951_v22 = vrot.slane %v3646_v14, 3 }
 0x10c   : > { %v1470_v5 = vadd.f32 %v1466_v47, %v3740_v25  ;;  %v4952_v7 = vrot.slane %v3646_v14, 4  ;;  %v1762_v25 = vrot.slane %v3802_v52, 7 }
 0x10d   : > { %v1358_v55 = vrot.slane %v3833_v57, 2  ;;  %v1378_v41 = vrot.slane %v3833_v57, 3  ;;  %v1398_v13 = vrot.slane %v3833_v57, 4  ;;  %v1418_v43 = vrot.slane %v3833_v57, 5 }
 0x10e   : > { %v1438_v21 = vrot.slane %v3833_v57, 6  ;;  %v1458_v17 = vrot.slane %v3833_v57, 7  ;;  %v1708_v32 = vadd.f32 %v1694_v54, %v1688_v26  ;;  %v3860_v47 = vadd.f32 %v1474_v35, %v1470_v5  ;;  %v486_v5 = vpop.permute.xlu0 %485 }
 0x10f   : > { %v1359_v37 = vsel %vm751_vm1, %v4950_v60, %v1358_v55  ;;  %v1379_v10 = vsel %vm772_vm2, %v4951_v22, %v1378_v41  ;;  %v1399_v34 = vsel %vm793_vm3, %v4952_v7, %v1398_v13  ;;  %v4953_v54 = vrot.slane %v3646_v14, 5 }
 0x110   : > { %v1367_v62 = vadd.f32 %v1359_v37, %v3732_v18  ;;  %v4954_v55 = vrot.slane %v3646_v14, 6  ;;  %v1728_v41 = vadd.f32 %v1714_v1, %v1708_v32  ;;  %v4955_v22 = vrot.slane %v3646_v14, 7 }
 0x111   : > { %v1419_v26 = vsel %vm814_vm4, %v4953_v54, %v1418_v43  ;;  %v602_v35 = vand.u32 2147483647, %v594_v51  ;;  %v1475_v18 = vrot.slane %v3833_v57, 1  ;;  %v597_v43 = vsub.f32 %v3660_v30, %v3805_v28  ;;  %974 = vrot.lane.b32.xlu0 %v3589_v24, %s2860_s1 }
 0x112   : > { %v1439_v60 = vsel %vm835_vm5, %v4954_v55, %v1438_v21  ;;  %v1459_v13 = vsel %vm310_vm0, %v4955_v22, %v1458_v17  ;;  %v1387_v7 = vadd.f32 %v1379_v10, %v1367_v62  ;;  %v3877_v37 = vand.u32 2147483647, %v3805_v28 }
 0x113   : > { %v1748_v21 = vadd.f32 %v1734_v2, %v1728_v41  ;;  %618 = vrot.lane.b32.xlu1 %v602_v35, %s2855_s25  ;;  %v596_v14 = vsub.f32 %v3744_v39, %v3811_v19  ;;  %v725_v1 = vand.u32 2147483647, %v3811_v19  ;;  %v3884_v51 = vsub.f32 %v3338_v44, %v488_v4 }
 0x114   : > { %v1407_v62 = vadd.f32 %v1399_v34, %v1387_v7  ;;  %v1656_v17 = vrot.slane %v3877_v37, 2  ;;  %v1676_v32 = vrot.slane %v3877_v37, 3  ;;  %v504_v30 = vsub.f32 %v3394_v12, %v486_v5 }
 0x115   : > { %v1768_v28 = vadd.f32 %v1754_v15, %v1748_v21  ;;  %v1696_v2 = vrot.slane %v3877_v37, 4  ;;  %v1716_v39 = vrot.slane %v3877_v37, 5  ;;  %v1736_v19 = vrot.slane %v3877_v37, 6 }
 0x116   : > { %v1427_v10 = vadd.f32 %v1419_v26, %v1407_v62  ;;  %v1756_v44 = vrot.slane %v3877_v37, 7  ;;  %v1637_v4 = vrot.slane %v725_v1, 1  ;;  %v1655_v34 = vrot.slane %v725_v1, 2 }
 0x117   : > { %v1772_v54 = vadd.f32 %v1768_v28, %v3656_v31  ;;  %v1675_v55 = vrot.slane %v725_v1, 3  ;;  %v1695_v41 = vrot.slane %v725_v1, 4  ;;  %v1715_v12 = vrot.slane %v725_v1, 5 }
 0x118   : > { %v1447_v22 = vadd.f32 %v1439_v60, %v1427_v10  ;;  %v1645_v35 = vadd.f32 %v1637_v4, %v725_v1  ;;  %v1657_v15 = vsel %vm751_vm1, %v1655_v34, %v1656_v17  ;;  %v1735_v5 = vrot.slane %v725_v1, 6 }
 0x119   : > { %v3899_v7 = vadd.f32 %v1776_v49, %v1772_v54  ;;  %v1677_v26 = vsel %vm772_vm2, %v1675_v55, %v1676_v32  ;;  %v1697_v21 = vsel %vm793_vm3, %v1695_v41, %v1696_v2  ;;  %v1717_v62 = vsel %vm814_vm4, %v1715_v12, %v1716_v39  ;;  %988 = vrot.lane.b32.xlu0 %v3606_v33, %s2861_s7 }
 0x11a   : > { %v1467_v63 = vadd.f32 %v1459_v13, %v1447_v22  ;;  %v1669_v28 = vadd.f32 %v1657_v15, %v1645_v35  ;;  %v1737_v46 = vsel %vm835_vm5, %v1735_v5, %v1736_v19  ;;  %v1755_v56 = vrot.slane %v725_v1, 7 }
 0x11b   : > { %v1646_v60 = vadd.f32 %v1638_v3, %v3735_v6  ;;  %v604_v17 = vand.u32 2147483647, %v596_v14  ;;  %v605_v10 = vand.u32 2147483647, %v597_v43  ;;  %v729_v31 = vand.u32 2147483647, %v3884_v51 }
 0x11c   : > { %v1471_v49 = vadd.f32 %v1467_v63, %v3833_v57  ;;  %v1689_v32 = vadd.f32 %v1677_v26, %v1669_v28  ;;  %v1757_v2 = vsel %vm310_vm0, %v1755_v56, %v1756_v44  ;;  %v599_v39 = vsub.f32 %v3750_v9, %v504_v30 }
 0x11d   : > { %622 = vrot.lane.b32.xlu1 %v604_v17, %s2855_s25  ;;  %624 = vrot.lane.b32.xlu2 %v605_v10, %s2855_s25  ;;  %v1639_v3 = vrot.slane %v729_v31, 1  ;;  %v1661_v13 = vrot.slane %v729_v31, 2  ;;  %v1681_v43 = vrot.slane %v729_v31, 3  ;;  %v1701_v14 = vrot.slane %v729_v31, 4 }
 0x11e   : > { %v3916_v1 = vadd.f32 %v1475_v18, %v1471_v49  ;;  %v1709_v63 = vadd.f32 %v1697_v21, %v1689_v32  ;;  %v1721_v57 = vrot.slane %v729_v31, 5  ;;  %v1741_v19 = vrot.slane %v729_v31, 6 }
 0x11f   : > { %v1647_v56 = vadd.f32 %v1639_v3, %v729_v31  ;;  %v1663_v9 = vsel %vm751_vm1, %v1661_v13, %v1662_v23  ;;  %v1683_v44 = vsel %vm772_vm2, %v1681_v43, %v1682_v8  ;;  %v1703_v4 = vsel %vm793_vm3, %v1701_v14, %v1702_v50 }
 0x120   : > { %v1729_v34 = vadd.f32 %v1717_v62, %v1709_v63  ;;  %v1723_v18 = vsel %vm814_vm4, %v1721_v57, %v1722_v58  ;;  %v1743_v54 = vsel %vm835_vm5, %v1741_v19, %v1742_v38  ;;  %v1761_v55 = vrot.slane %v729_v31, 7 }
 0x121   : > { %v593_v23 = vadd.f32 %v3792_v27, %v3653_v61  ;;  %v1671_v41 = vadd.f32 %v1663_v9, %v1647_v56  ;;  %v728_v12 = vand.u32 2147483647, %v504_v30  ;;  %v606_v8 = vand.u32 2147483647, %v598_v16  ;;  %1002 = vrot.lane.b32.xlu0 %v3315_v29, %s2862_s10 }
 0x122   : > { %v1777_v50 = vrot.slane %v3877_v37, 1  ;;  %v1749_v22 = vadd.f32 %v1737_v46, %v1729_v34  ;;  %v1763_v58 = vsel %vm310_vm0, %v1761_v55, %v1762_v25  ;;  %v607_v35 = vand.u32 2147483647, %v599_v39 }
 0x123   : > { %v1691_v15 = vadd.f32 %v1683_v44, %v1671_v41  ;;  %v1659_v38 = vrot.slane %v728_v12, 2  ;;  %v1679_v5 = vrot.slane %v728_v12, 3  ;;  %v1699_v26 = vrot.slane %v728_v12, 4  ;;  %v4962_v41 = vld [vmem:[#allocation19_spill] sm:$0xff] }
 0x124   : > { %v1769_v21 = vadd.f32 %v1757_v2, %v1749_v22  ;;  %v1719_v61 = vrot.slane %v728_v12, 5  ;;  %v1739_v27 = vrot.slane %v728_v12, 6  ;;  %v1759_v30 = vrot.slane %v728_v12, 7 }
 0x125   : > { %v1711_v48 = vadd.f32 %v1703_v4, %v1691_v15  ;;  %v1660_v59 = vsel %vm751_vm1, %v1658_v40, %v1659_v38  ;;  %v4956_v16 = vrot.slane %v3735_v6, 3  ;;  %v4957_v25 = vrot.slane %v3735_v6, 4  ;;  %626 = vrot.lane.b32.xlu1 %v606_v8, %s2855_s25  ;;  %628 = vrot.lane.b32.xlu2 %v607_v35, %s2855_s25 }
 0x126   : > { %v1773_v28 = vadd.f32 %v1769_v21, %v3877_v37  ;;  %v1670_v17 = vadd.f32 %v1660_v59, %v1646_v60  ;;  %v4958_v10 = vrot.slane %v3735_v6, 5  ;;  %v4959_v49 = vrot.slane %v3735_v6, 6 }
 0x127   : > { %v1680_v46 = vsel %vm772_vm2, %v4956_v16, %v1679_v5  ;;  %v1700_v62 = vsel %vm793_vm3, %v4957_v25, %v1699_v26  ;;  %v600_v32 = vsub.f32 %v3674_v20, %v3884_v51  ;;  %v1731_v2 = vadd.f32 %v1723_v18, %v1711_v48  ;;  %v3988_v18 = vpop.permute.xlu2 %888 }
 0x128   : > { %v1720_v31 = vsel %vm814_vm4, %v4958_v10, %v1719_v61  ;;  %v1740_v40 = vsel %vm835_vm5, %v4959_v49, %v1739_v27  ;;  %v4960_v39 = vrot.slane %v3735_v6, 7  ;;  %v601_v37 = vsub.f32 %v593_v23, %v3756_v11 }
 0x129   : > { %v3968_v60 = vadd.f32 %v1777_v50, %v1773_v28  ;;  %v1690_v13 = vadd.f32 %v1680_v46, %v1670_v17  ;;  %v1751_v43 = vadd.f32 %v1743_v54, %v1731_v2  ;;  %v1779_v63 = vrot.slane %v3802_v52, 1  ;;  %1016 = vrot.lane.b32.xlu0 %v3313_v36, %s2863_s11  ;;  %v4961_v54 = vld [vmem:[#allocation18_spill] sm:$0xff] }
 0x12a   : > { %v1760_v3 = vsel %vm310_vm0, %v4960_v39, %v1759_v30  ;;  %v608_v19 = vand.u32 2147483647, %v600_v32  ;;  %v609_v9 = vand.u32 2147483647, %v601_v37  ;;  %v1778_v44 = vrot.slane %v728_v12, 1 }
 0x12b   : > { %v1710_v14 = vadd.f32 %v1700_v62, %v1690_v13  ;;  %v1771_v57 = vadd.f32 %v1763_v58, %v1751_v43  ;;  %vm2135_vm0 = vcmask 40960   ;;  %vm2172_vm1 = vcmask 91185  }
 0x12c   : > { %vm2205_vm2 = vcmask 141410   ;;  %vm2238_vm3 = vcmask 191635   ;;  %vm2271_vm4 = vcmask 241860   ;;  %vm2304_vm5 = vcmask 292085  }
 0x12d   : > { %v1730_v56 = vadd.f32 %v1720_v31, %v1710_v14  ;;  %v1775_v20 = vadd.f32 %v1771_v57, %v3802_v52  ;;  %630 = vrot.lane.b32.xlu1 %v608_v19, %s2855_s25  ;;  %632 = vrot.lane.b32.xlu2 %v609_v9, %s2855_s25 }
 0x12f   : > { %v1750_v6 = vadd.f32 %v1740_v40, %v1730_v56  ;;  %v3976_v11 = vadd.f32 %v1779_v63, %v1775_v20  ;;  %v4002_v23 = vpop.permute.xlu2 %890 }
 0x130   : > { %v578_v52 = vpop.xlane.xlu0 %577 }
 0x131   : > { %v1770_v51 = vadd.f32 %v1760_v3, %v1750_v6  ;;  %1022 = vrot.lane.b32.xlu0 %v3589_v24, %s2863_s11  ;;  %v579_v16 = vrot.slane %v578_v52, 4 }
 0x133   : > { %v1774_v4 = vadd.f32 %v1770_v51, %v728_v12  ;;  %v580_v46 = vadd.f32 %v579_v16, %v578_v52 }
 0x135   : > { %v3978_v34 = vadd.f32 %v1778_v44, %v1774_v4  ;;  %922 = vrot.lane.b32.xlu1 %v3315_v29, %s2857_s8  ;;  %920 = vrot.lane.b32.xlu2 %v3313_v36, %s2857_s8  ;;  %v581_v17 = vrot.slane %v580_v46, 2 }
 0x137   : > { %v4012_v8 = vpop.permute.xlu2 %894  ;;  %v582_v10 = vadd.f32 %v581_v17, %v580_v46 }
 0x139   : > { %1188 = vrot.lane.b32.xlu0 %v3597_v42, %s2855_s25  ;;  %v583_v31 = vrot.slane %v582_v10, 1 }
 0x13b   : > { %v584_v32 = vadd.f32 %v583_v31, %v582_v10 }
 0x13d   : > { %952 = vrot.lane.b32.xlu1 %v3313_v36, %s2859_s29  ;;  %926 = vrot.lane.b32.xlu2 %v3589_v24, %s2857_s8  ;;  %2598 = vpush %v584_v32 }
 0x13f   : > { %v4022_v22 = vpop.permute.xlu2 %904 }
 0x141   : > { %1202 = vrot.lane.b32.xlu0 %v4961_v54, %s2856_s20 }
 0x143   : > { %v4000_v55 = vpop.permute.xlu0 %892 }
 0x145   : > { %958 = vrot.lane.b32.xlu1 %v3589_v24, %s2859_s29  ;;  %938 = vrot.lane.b32.xlu2 %v3315_v29, %s2858_s6 }
 0x147   : > { %v4034_v35 = vpop.permute.xlu2 %908 }
 0x149   : > { %1216 = vrot.lane.b32.xlu0 %v4962_v41, %s2857_s8 }
 0x14b   : > { %v4010_v12 = vpop.permute.xlu0 %906 }
 0x14d   : > { %972 = vrot.lane.b32.xlu1 %v3606_v33, %s2860_s1  ;;  %942 = vrot.lane.b32.xlu2 %v3589_v24, %s2858_s6 }
 0x151   : > { %1222 = vrot.lane.b32.xlu0 %v3600_v53, %s2857_s8  ;;  %v621_v5 = vpop.permute.xlu2 %620 }
 0x152   : > { %v644_v9 = vsel %vm642_vm9, %v621_v5, 0.0 }
 0x153   : > { %v4020_v50 = vpop.permute.xlu0 %910 }
 0x155   : > { %986 = vrot.lane.b32.xlu1 %v3315_v29, %s2861_s7  ;;  %956 = vrot.lane.b32.xlu2 %v3606_v33, %s2859_s29 }
 0x159   : > { %1236 = vrot.lane.b32.xlu0 %v3597_v42, %s2858_s6 }
 0x15b   : > { %v4030_v58 = vpop.permute.xlu0 %924 }
 0x15d   : > { %1000 = vrot.lane.b32.xlu1 %v3313_v36, %s2862_s10  ;;  %970 = vrot.lane.b32.xlu2 %v3315_v29, %s2860_s1 }
 0x161   : > { %1250 = vrot.lane.b32.xlu0 %v4961_v54, %s2859_s29 }
 0x163   : > { %v4040_v15 = vpop.permute.xlu0 %936 }
 0x165   : > { %1006 = vrot.lane.b32.xlu1 %v3589_v24, %s2862_s10  ;;  %984 = vrot.lane.b32.xlu2 %v3313_v36, %s2861_s7 }
 0x169   : > { %1264 = vrot.lane.b32.xlu0 %v4962_v41, %s2860_s1 }
 0x16b   : > { %v4048_v38 = vpop.permute.xlu0 %940 }
 0x16d   : > { %1020 = vrot.lane.b32.xlu1 %v3606_v33, %s2863_s11  ;;  %990 = vrot.lane.b32.xlu2 %v3589_v24, %s2861_s7 }
 0x171   : > { %1270 = vrot.lane.b32.xlu0 %v3600_v53, %s2860_s1 }
 0x173   : > { %v4056_v26 = vpop.permute.xlu0 %954 }
 0x175   : > { %1186 = vrot.lane.b32.xlu1 %v4961_v54, %s2855_s25  ;;  %1004 = vrot.lane.b32.xlu2 %v3606_v33, %s2862_s10 }
 0x177   : > { %v625_v21 = vpop.permute.xlu2 %624 }
 0x178   : > { %v648_v52 = vsel %vm642_vm9, %v625_v21, 0.0 }
 0x179   : > { %1284 = vrot.lane.b32.xlu0 %v3597_v42, %s2861_s7 }
 0x17b   : > { %v4064_v61 = vpop.permute.xlu0 %968 }
 0x17d   : > { %1200 = vrot.lane.b32.xlu1 %v4962_v41, %s2856_s20  ;;  %1018 = vrot.lane.b32.xlu2 %v3315_v29, %s2863_s11 }
 0x17f   : > { %v629_v27 = vpop.permute.xlu2 %628 }
 0x180   : > { %v652_v17 = vsel %vm642_vm9, %v629_v27, 0.0  ;;  %v903_v27 = vadd.f32 %v4012_v8, %v3589_v24  ;;  %v902_v24 = vadd.f32 %v4000_v55, %v3606_v33 }
 0x181   : > { %1298 = vrot.lane.b32.xlu0 %v4961_v54, %s2862_s10 }
 0x182   : > { %v919_v8 = vadd.f32 %v4020_v50, %v903_v27 }
 0x183   : > { %v4072_v48 = vpop.permute.xlu0 %974 }
 0x185   : > { %1206 = vrot.lane.b32.xlu1 %v3600_v53, %s2856_s20  ;;  %v619_v30 = vpop.permute.xlu1 %618  ;;  %1184 = vrot.lane.b32.xlu2 %v4962_v41, %s2855_s25 }
 0x186   : > { %v643_v19 = vsel %vm642_vm9, %v619_v30, 0.0 }
 0x187   : > { %v4074_v59 = vpop.permute.xlu2 %632  ;;  %v645_v6 = vadd.f32 %v644_v9, %v643_v19 }
 0x189   : > { %1312 = vrot.lane.b32.xlu0 %v4962_v41, %s2863_s11 }
 0x18b   : > { %v4082_v25 = vpop.permute.xlu0 %988 }
 0x18d   : > { %1220 = vrot.lane.b32.xlu1 %v3597_v42, %s2857_s8  ;;  %1190 = vrot.lane.b32.xlu2 %v3600_v53, %s2855_s25 }
 0x18f   : > { %v623_v62 = vpop.permute.xlu1 %622  ;;  %v921_v28 = vpop.permute.xlu2 %920 }
 0x190   : > { %v646_v20 = vsel %vm642_vm9, %v623_v62, 0.0  ;;  %v900_v62 = vadd.f32 %v3988_v18, %v3313_v36  ;;  %v901_v36 = vadd.f32 %v4002_v23, %v3315_v29 }
 0x191   : > { %1318 = vrot.lane.b32.xlu0 %v3600_v53, %s2863_s11  ;;  %v647_v51 = vadd.f32 %v646_v20, %v645_v6 }
 0x192   : > { %v916_v32 = vadd.f32 %v4022_v22, %v900_v62  ;;  %v917_v20 = vadd.f32 %v4010_v12, %v901_v36  ;;  %v918_v12 = vadd.f32 %v4034_v35, %v902_v24 }
 0x193   : > { %v4090_v49 = vpop.permute.xlu0 %1002  ;;  %v649_v46 = vadd.f32 %v648_v52, %v647_v51 }
 0x194   : > { %v932_v9 = vadd.f32 %v921_v28, %v916_v32 }
 0x195   : > { %1234 = vrot.lane.b32.xlu1 %v4961_v54, %s2858_s6  ;;  %1204 = vrot.lane.b32.xlu2 %v3597_v42, %s2856_s20 }
 0x196   : > { %v948_v22 = vadd.f32 %v4040_v15, %v932_v9 }
 0x197   : > { %v627_v40 = vpop.permute.xlu1 %626  ;;  %v4092_v2 = vpop.permute.xlu2 %926 }
 0x198   : > { %v650_v30 = vsel %vm642_vm9, %v627_v40, 0.0  ;;  %v935_v15 = vadd.f32 %v4092_v2, %v919_v8 }
 0x199   : > { %1492 = vrot.lane.b32.xlu0 %v3860_v47, %s2855_s25  ;;  %v651_v5 = vadd.f32 %v650_v30, %v649_v46 }
 0x19b   : > { %v4100_v39 = vpop.permute.xlu0 %1016  ;;  %v653_v21 = vadd.f32 %v652_v17, %v651_v5 }
 0x19d   : > { %1248 = vrot.lane.b32.xlu1 %v4962_v41, %s2859_s29  ;;  %1218 = vrot.lane.b32.xlu2 %v4961_v54, %s2857_s8 }
 0x19f   : > { %v631_v3 = vpop.permute.xlu1 %630  ;;  %v939_v37 = vpop.permute.xlu2 %938 }
 0x1a0   : > { %v654_v10 = vsel %vm642_vm9, %v631_v3, 0.0  ;;  %v656_v3 = vsel %vm642_vm9, %v4074_v59, 0.0 }
 0x1a1   : > { %1506 = vrot.lane.b32.xlu0 %v3774_v0, %s2856_s20  ;;  %v655_v18 = vadd.f32 %v654_v10, %v653_v21 }
 0x1a3   : > { %v4106_v13 = vpop.permute.xlu0 %1022  ;;  %v657_v6 = vadd.f32 %v656_v3, %v655_v18 }
 0x1a5   : > { %1232 = vrot.lane.b32.xlu2 %v4962_v41, %s2858_s6 }
 0x1a7   : > { %v923_v43 = vpop.permute.xlu1 %922  ;;  %v943_v14 = vpop.permute.xlu2 %942 }
 0x1a8   : > { %v933_v23 = vadd.f32 %v923_v43, %v917_v20  ;;  %v951_v43 = vadd.f32 %v943_v14, %v935_v15 }
 0x1a9   : > { %1520 = vrot.lane.b32.xlu0 %v3778_v45, %s2857_s8 }
 0x1aa   : > { %v949_v52 = vadd.f32 %v939_v37, %v933_v23  ;;  %v934_v37 = vadd.f32 %v4030_v58, %v918_v12 }
 0x1ab   : > { %v4112_v63 = vpop.permute.xlu0 %1188 }
 0x1ac   : > { %v965_v55 = vadd.f32 %v4056_v26, %v949_v52  ;;  %v950_v62 = vadd.f32 %v4048_v38, %v934_v37 }
 0x1ad   : > { %1238 = vrot.lane.b32.xlu2 %v3600_v53, %s2858_s6 }
 0x1af   : > { %v953_v57 = vpop.permute.xlu1 %952  ;;  %v4115_v56 = vpop.permute.xlu2 %956 }
 0x1b0   : > { %v964_v59 = vadd.f32 %v953_v57, %v948_v22  ;;  %v966_v58 = vadd.f32 %v4115_v56, %v950_v62 }
 0x1b1   : > { %1526 = vrot.lane.b32.xlu0 %v3916_v1, %s2857_s8 }
 0x1b2   : > { %v980_v30 = vadd.f32 %v4064_v61, %v964_v59 }
 0x1b3   : > { %v4123_v44 = vpop.permute.xlu0 %1202 }
 0x1b5   : > { %1252 = vrot.lane.b32.xlu2 %v3597_v42, %s2859_s29 }
 0x1b7   : > { %v959_v4 = vpop.permute.xlu1 %958  ;;  %v971_v16 = vpop.permute.xlu2 %970 }
 0x1b8   : > { %v967_v35 = vadd.f32 %v959_v4, %v951_v43  ;;  %v981_v5 = vadd.f32 %v971_v16, %v965_v55 }
 0x1b9   : > { %1540 = vrot.lane.b32.xlu0 %v3860_v47, %s2858_s6 }
 0x1ba   : > { %v983_v17 = vadd.f32 %v4072_v48, %v967_v35 }
 0x1bb   : > { %v4135_v31 = vpop.permute.xlu0 %1216 }
 0x1bd   : > { %1266 = vrot.lane.b32.xlu2 %v4961_v54, %s2860_s1 }
 0x1bf   : > { %v973_v40 = vpop.permute.xlu1 %972  ;;  %v985_v19 = vpop.permute.xlu2 %984 }
 0x1c0   : > { %v996_v46 = vadd.f32 %v985_v19, %v980_v30  ;;  %v982_v38 = vadd.f32 %v973_v40, %v966_v58 }
 0x1c1   : > { %1554 = vrot.lane.b32.xlu0 %v3774_v0, %s2859_s29 }
 0x1c2   : > { %v998_v56 = vadd.f32 %v4082_v25, %v982_v38 }
 0x1c3   : > { %v4150_v29 = vpop.permute.xlu0 %1222 }
 0x1c5   : > { %1280 = vrot.lane.b32.xlu2 %v4962_v41, %s2861_s7 }
 0x1c7   : > { %v987_v28 = vpop.permute.xlu1 %986  ;;  %658 = vadd.xlane.f32.xlu1 %v657_v6  ;;  %v991_v51 = vpop.permute.xlu2 %990 }
 0x1c8   : > { %v997_v14 = vadd.f32 %v987_v28, %v981_v5  ;;  %v999_v26 = vadd.f32 %v991_v51, %v983_v17 }
 0x1c9   : > { %1568 = vrot.lane.b32.xlu0 %v3778_v45, %s2860_s1 }
 0x1ca   : > { %v1013_v16 = vadd.f32 %v4090_v49, %v997_v14 }
 0x1cb   : > { %v4162_v33 = vpop.permute.xlu0 %1236 }
 0x1cd   : > { %1286 = vrot.lane.b32.xlu2 %v3600_v53, %s2861_s7 }
 0x1cf   : > { %v1001_v50 = vpop.permute.xlu1 %1000  ;;  %v1005_v2 = vpop.permute.xlu2 %1004 }
 0x1d0   : > { %v1012_v57 = vadd.f32 %v1001_v50, %v996_v46  ;;  %v1014_v49 = vadd.f32 %v1005_v2, %v998_v56 }
 0x1d1   : > { %1574 = vrot.lane.b32.xlu0 %v3916_v1, %s2860_s1 }
 0x1d2   : > { %v4167_v61 = vadd.f32 %v4100_v39, %v1012_v57 }
 0x1d3   : > { %v4178_v4 = vpop.permute.xlu0 %1250 }
 0x1d4   : > { %1937 = vst.msk [vmem:[#allocation2 - $0x1] sm:$0x2] %vm1936_vm10, %v4167_v61 }
 0x1d5   : > { %1300 = vrot.lane.b32.xlu2 %v3597_v42, %s2862_s10 }
 0x1d7   : > { %v1007_v39 = vpop.permute.xlu1 %1006  ;;  %v1019_v48 = vpop.permute.xlu2 %1018 }
 0x1d8   : > { %v1015_v10 = vadd.f32 %v1007_v39, %v999_v26  ;;  %v4181_v21 = vadd.f32 %v1019_v48, %v1013_v16 }
 0x1d9   : > { %1588 = vrot.lane.b32.xlu0 %v3860_v47, %s2861_s7 }
 0x1da   : > { %v4184_v32 = vadd.f32 %v4106_v13, %v1015_v10  ;;  %1938 = vst.msk [vmem:[#allocation2 + $0x1] sm:$0x2] %vm1936_vm10, %v4181_v21 }
 0x1db   : > { %v4195_v40 = vpop.permute.xlu0 %1264 }
 0x1dc   : > { %1940 = vst.msk [vmem:[#allocation2 + $0x5] sm:$0x2] %vm1936_vm10, %v4184_v32 }
 0x1dd   : > { %1314 = vrot.lane.b32.xlu2 %v4961_v54, %s2863_s11 }
 0x1df   : > { %v1021_v19 = vpop.permute.xlu1 %1020  ;;  %v4199_v36 = vpop.permute.xlu2 %1184 }
 0x1e0   : > { %v4197_v13 = vadd.f32 %v1021_v19, %v1014_v49  ;;  %1254 = vrot.lane.b32.xlu1 %v3600_v53, %s2859_s29 }
 0x1e1   : > { %1602 = vrot.lane.b32.xlu0 %v3774_v0, %s2862_s10 }
 0x1e2   : > { %1939 = vst.msk [vmem:[#allocation2 + $0x3] sm:$0x2] %vm1936_vm10, %v4197_v13 }
 0x1e3   : > { %v4209_v25 = vpop.permute.xlu0 %1270 }
 0x1e5   : > { %1488 = vrot.lane.b32.xlu2 %v3778_v45, %s2855_s25 }
 0x1e7   : > { %v4211_v18 = vpop.permute.xlu2 %1190  ;;  %v4241_v22 = vpop.permute.xlu1 %1186 }
 0x1e8   : > { %1268 = vrot.lane.b32.xlu1 %v3597_v42, %s2860_s1 }
 0x1e9   : > { %1616 = vrot.lane.b32.xlu0 %v3778_v45, %s2863_s11 }
 0x1eb   : > { %v4219_v9 = vpop.permute.xlu0 %1284 }
 0x1ed   : > { %1494 = vrot.lane.b32.xlu2 %v3916_v1, %s2855_s25 }
 0x1ef   : > { %v4221_v27 = vpop.permute.xlu2 %1204  ;;  %v4257_v8 = vpop.permute.xlu1 %1200 }
 0x1f0   : > { %1282 = vrot.lane.b32.xlu1 %v4961_v54, %s2861_s7 }
 0x1f1   : > { %1622 = vrot.lane.b32.xlu0 %v3916_v1, %s2863_s11 }
 0x1f3   : > { %v4229_v3 = vpop.permute.xlu0 %1298 }
 0x1f5   : > { %1508 = vrot.lane.b32.xlu2 %v3860_v47, %s2856_s20 }
 0x1f7   : > { %v4231_v20 = vpop.permute.xlu2 %1218  ;;  %v4269_v52 = vpop.permute.xlu1 %1206 }
 0x1f8   : > { %1296 = vrot.lane.b32.xlu1 %v4962_v41, %s2862_s10 }
 0x1f9   : > { %1796 = vrot.lane.b32.xlu0 %v3978_v34, %s2855_s25 }
 0x1fb   : > { %v4239_v6 = vpop.permute.xlu0 %1312 }
 0x1fd   : > { %1522 = vrot.lane.b32.xlu2 %v3774_v0, %s2857_s8 }
 0x1ff   : > { %v4243_v23 = vpop.permute.xlu2 %1232  ;;  %v4283_v30 = vpop.permute.xlu1 %1220 }
 0x200   : > { %1302 = vrot.lane.b32.xlu1 %v3600_v53, %s2862_s10 }
 0x201   : > { %1810 = vrot.lane.b32.xlu0 %v3968_v60, %s2856_s20 }
 0x203   : > { %v4251_v28 = vpop.permute.xlu0 %1318 }
 0x205   : > { %1536 = vrot.lane.b32.xlu2 %v3778_v45, %s2858_s6 }
 0x207   : > { %v4253_v24 = vpop.permute.xlu2 %1238  ;;  %v1235_v50 = vpop.permute.xlu1 %1234 }
 0x208   : > { %1316 = vrot.lane.b32.xlu1 %v3597_v42, %s2863_s11 }
 0x209   : > { %1824 = vrot.lane.b32.xlu0 %v3899_v7, %s2857_s8 }
 0x20b   : > { %v4263_v59 = vpop.permute.xlu0 %1492 }
 0x20d   : > { %1542 = vrot.lane.b32.xlu2 %v3916_v1, %s2858_s6 }
 0x20f   : > { %v4265_v51 = vpop.permute.xlu2 %1252  ;;  %v1249_v2 = vpop.permute.xlu1 %1248 }
 0x210   : > { %1490 = vrot.lane.b32.xlu1 %v3774_v0, %s2855_s25 }
 0x211   : > { %1830 = vrot.lane.b32.xlu0 %v3976_v11, %s2857_s8 }
 0x213   : > { %v4275_v12 = vpop.permute.xlu0 %1506 }
 0x215   : > { %1556 = vrot.lane.b32.xlu2 %v3860_v47, %s2859_s29 }
 0x217   : > { %v4277_v15 = vpop.permute.xlu2 %1266 }
 0x218   : > { %1504 = vrot.lane.b32.xlu1 %v3778_v45, %s2856_s20 }
 0x219   : > { %1844 = vrot.lane.b32.xlu0 %v3978_v34, %s2858_s6 }
 0x21b   : > { %v4287_v43 = vpop.permute.xlu0 %1520 }
 0x21d   : > { %1570 = vrot.lane.b32.xlu2 %v3774_v0, %s2860_s1 }
 0x21f   : > { %v4289_v46 = vpop.permute.xlu2 %1280 }
 0x220   : > { %1510 = vrot.lane.b32.xlu1 %v3916_v1, %s2856_s20 }
 0x221   : > { %1858 = vrot.lane.b32.xlu0 %v3968_v60, %s2859_s29 }
 0x223   : > { %v4297_v55 = vpop.permute.xlu0 %1526 }
 0x225   : > { %1584 = vrot.lane.b32.xlu2 %v3778_v45, %s2861_s7 }
 0x227   : > { %v4299_v37 = vpop.permute.xlu2 %1286 }
 0x228   : > { %1524 = vrot.lane.b32.xlu1 %v3860_v47, %s2857_s8 }
 0x229   : > { %1872 = vrot.lane.b32.xlu0 %v3899_v7, %s2860_s1 }
 0x22b   : > { %v4307_v35 = vpop.permute.xlu0 %1540 }
 0x22d   : > { %1590 = vrot.lane.b32.xlu2 %v3916_v1, %s2861_s7 }
 0x22f   : > { %v4309_v57 = vpop.permute.xlu2 %1300 }
 0x230   : > { %1538 = vrot.lane.b32.xlu1 %v3774_v0, %s2858_s6 }
 0x231   : > { %1878 = vrot.lane.b32.xlu0 %v3976_v11, %s2860_s1 }
 0x233   : > { %v4317_v5 = vpop.permute.xlu0 %1554 }
 0x235   : > { %1604 = vrot.lane.b32.xlu2 %v3860_v47, %s2862_s10 }
 0x237   : > { %v1315_v14 = vpop.permute.xlu2 %1314 }
 0x238   : > { %1552 = vrot.lane.b32.xlu1 %v3778_v45, %s2859_s29 }
 0x239   : > { %1892 = vrot.lane.b32.xlu0 %v3978_v34, %s2861_s7 }
 0x23a   : > { %v659_v62 = vpop.xlane.xlu1 %658 }
 0x23b   : > { %v660_v17 = vrot.slane %v659_v62, 4  ;;  %v4325_v26 = vpop.permute.xlu0 %1568 }
 0x23c   : > { %4963 = vst [vmem:[#allocation14_spill] sm:$0xff] %v4325_v26 }
 0x23d   : > { %v661_v58 = vadd.f32 %v660_v17, %v659_v62  ;;  %1618 = vrot.lane.b32.xlu2 %v3774_v0, %s2863_s11 }
 0x23f   : > { %v662_v39 = vrot.slane %v661_v58, 2  ;;  %v4327_v16 = vpop.permute.xlu2 %1488 }
 0x240   : > { %1558 = vrot.lane.b32.xlu1 %v3916_v1, %s2859_s29 }
 0x241   : > { %v663_v38 = vadd.f32 %v662_v39, %v661_v58  ;;  %1906 = vrot.lane.b32.xlu0 %v3968_v60, %s2862_s10  ;;  %v1197_v58 = vadd.f32 %v4241_v22, %v4961_v54 }
 0x243   : > { %v664_v10 = vrot.slane %v663_v38, 1  ;;  %v4335_v56 = vpop.permute.xlu0 %1574 }
 0x244   : > { %4964 = vst [vmem:[#allocation15_spill] sm:$0xff] %v4335_v56 }
 0x245   : > { %v665_v48 = vadd.f32 %v664_v10, %v663_v38  ;;  %1792 = vrot.lane.b32.xlu2 %v3899_v7, %s2855_s25  ;;  %v1196_v38 = vadd.f32 %v4199_v36, %v4962_v41  ;;  %v1213_v10 = vadd.f32 %v4123_v44, %v1197_v58  ;;  %v1199_v41 = vadd.f32 %v4211_v18, %v3600_v53 }
 0x247   : > { %2600 = vpush %v665_v48  ;;  %v4337_v49 = vpop.permute.xlu2 %1494  ;;  %v1229_v54 = vadd.f32 %v4231_v20, %v1213_v10  ;;  %v1212_v56 = vadd.f32 %v4257_v8, %v1196_v38  ;;  %v1198_v8 = vadd.f32 %v4112_v63, %v3597_v42 }
 0x248   : > { %1572 = vrot.lane.b32.xlu1 %v3860_v47, %s2860_s1 }
 0x249   : > { %1920 = vrot.lane.b32.xlu0 %v3899_v7, %s2863_s11  ;;  %v1245_v26 = vadd.f32 %v1235_v50, %v1229_v54  ;;  %v1228_v36 = vadd.f32 %v4135_v31, %v1212_v56  ;;  %v1215_v50 = vadd.f32 %v4269_v52, %v1199_v41  ;;  %v1214_v31 = vadd.f32 %v4221_v27, %v1198_v8 }
 0x24b   : > { %v4345_v19 = vpop.permute.xlu0 %1588  ;;  %v1261_v20 = vadd.f32 %v4178_v4, %v1245_v26  ;;  %v1244_v53 = vadd.f32 %v4243_v23, %v1228_v36  ;;  %v1231_v4 = vadd.f32 %v4150_v29, %v1215_v50  ;;  %v1230_v29 = vadd.f32 %v4283_v30, %v1214_v31 }
 0x24d   : > { %1798 = vrot.lane.b32.xlu2 %v3976_v11, %s2855_s25  ;;  %v1277_v18 = vadd.f32 %v4277_v15, %v1261_v20  ;;  %v1260_v10 = vadd.f32 %v1249_v2, %v1244_v53  ;;  %v1247_v42 = vadd.f32 %v4253_v24, %v1231_v4  ;;  %v1246_v15 = vadd.f32 %v4162_v33, %v1230_v29 }
 0x24f   : > { %v4347_v62 = vpop.permute.xlu2 %1508  ;;  %v1276_v63 = vadd.f32 %v4195_v40, %v1260_v10 }
 0x250   : > { %1586 = vrot.lane.b32.xlu1 %v3774_v0, %s2861_s7 }
 0x251   : > { %1926 = vrot.lane.b32.xlu0 %v3976_v11, %s2863_s11  ;;  %v1292_v27 = vadd.f32 %v4289_v46, %v1276_v63  ;;  %v1262_v46 = vadd.f32 %v4265_v51, %v1246_v15  ;;  %v1502_v15 = vadd.f32 %v4263_v59, %v3860_v47 }
 0x252   : > { %v1255_v17 = vpop.permute.xlu1 %1254 }
 0x253   : > { %v4357_v39 = vpop.permute.xlu0 %1602 }
 0x255   : > { %1812 = vrot.lane.b32.xlu2 %v3978_v34, %s2856_s20 }
 0x257   : > { %v4362_v48 = vpop.permute.xlu2 %1522 }
 0x258   : > { %1600 = vrot.lane.b32.xlu1 %v3778_v45, %s2862_s10 }
 0x259   : > { %1954 = vrot.lane.b32.xlu0 %v4197_v13, %s2864_s19 }
 0x25a   : > { %v1269_v22 = vpop.permute.xlu1 %1268 }
 0x25b   : > { %v4374_v44 = vpop.permute.xlu0 %1616  ;;  %v1278_v33 = vadd.f32 %v1269_v22, %v1262_v46  ;;  %v1518_v46 = vadd.f32 %v4347_v62, %v1502_v15 }
 0x25d   : > { %1826 = vrot.lane.b32.xlu2 %v3968_v60, %s2857_s8  ;;  %v1294_v36 = vadd.f32 %v4219_v9, %v1278_v33 }
 0x25f   : > { %v4378_v58 = vpop.permute.xlu2 %1536  ;;  %v1310_v22 = vadd.f32 %v4309_v57, %v1294_v36 }
 0x260   : > { %1606 = vrot.lane.b32.xlu1 %v3916_v1, %s2862_s10 }
 0x262   : > { %v1283_v38 = vpop.permute.xlu1 %1282 }
 0x263   : > { %v1293_v54 = vadd.f32 %v1283_v38, %v1277_v18  ;;  %v4392_v56 = vpop.permute.xlu0 %1622 }
 0x265   : > { %v1309_v26 = vadd.f32 %v4229_v3, %v1293_v54  ;;  %1840 = vrot.lane.b32.xlu2 %v3899_v7, %s2858_s6  ;;  %v1263_v3 = vadd.f32 %v1255_v17, %v1247_v42 }
 0x267   : > { %v4396_v23 = vadd.f32 %v1315_v14, %v1309_v26  ;;  %v4398_v52 = vpop.permute.xlu2 %1542  ;;  %v1279_v2 = vadd.f32 %v4209_v25, %v1263_v3 }
 0x268   : > { %1620 = vrot.lane.b32.xlu1 %v3860_v47, %s2863_s11 }
 0x269   : > { %1973 = vrot.lane.b32.xlu0 %v4396_v23, %s2864_s19  ;;  %1943 = vst.msk [vmem:[#allocation2 + $0x9] sm:$0x2] %vm1936_vm10, %v4396_v23  ;;  %v1295_v25 = vadd.f32 %v4299_v37, %v1279_v2 }
 0x26a   : > { %v1297_v24 = vpop.permute.xlu1 %1296 }
 0x26b   : > { %v1308_v40 = vadd.f32 %v1297_v24, %v1292_v27  ;;  %v4415_v30 = vpop.permute.xlu0 %1796 }
 0x26d   : > { %v4411_v14 = vadd.f32 %v4239_v6, %v1308_v40  ;;  %1846 = vrot.lane.b32.xlu2 %v3976_v11, %s2858_s6 }
 0x26f   : > { %1942 = vst.msk [vmem:[#allocation2 + $0x7] sm:$0x2] %vm1936_vm10, %v4411_v14  ;;  %v4420_v17 = vpop.permute.xlu2 %1556 }
 0x270   : > { %1794 = vrot.lane.b32.xlu1 %v3968_v60, %s2855_s25 }
 0x271   : > { %1987 = vrot.lane.b32.xlu0 %v4167_v61, %s2865_s30 }
 0x272   : > { %v1303_v6 = vpop.permute.xlu1 %1302 }
 0x273   : > { %v1311_v41 = vadd.f32 %v1303_v6, %v1295_v25  ;;  %v4433_v20 = vpop.permute.xlu0 %1810  ;;  %v1806_v25 = vadd.f32 %v4415_v30, %v3978_v34 }
 0x275   : > { %v4429_v51 = vadd.f32 %v4251_v28, %v1311_v41  ;;  %1860 = vrot.lane.b32.xlu2 %v3978_v34, %s2859_s29 }
 0x277   : > { %1945 = vst.msk [vmem:[#allocation2 + $0xd] sm:$0x2] %vm1936_vm10, %v4429_v51  ;;  %v4437_v37 = vpop.permute.xlu2 %1570 }
 0x278   : > { %1808 = vrot.lane.b32.xlu1 %v3899_v7, %s2856_s20 }
 0x279   : > { %1993 = vrot.lane.b32.xlu0 %v4184_v32, %s2865_s30 }
 0x27a   : > { %v1317_v9 = vpop.permute.xlu1 %1316 }
 0x27b   : > { %v4444_v28 = vadd.f32 %v1317_v9, %v1310_v22  ;;  %v4450_v8 = vpop.permute.xlu0 %1824 }
 0x27d   : > { %1944 = vst.msk [vmem:[#allocation2 + $0xb] sm:$0x2] %vm1936_vm10, %v4444_v28  ;;  %1874 = vrot.lane.b32.xlu2 %v3968_v60, %s2860_s1 }
 0x27f   : > { %v4452_v50 = vpop.permute.xlu2 %1584 }
 0x280   : > { %1814 = vrot.lane.b32.xlu1 %v3976_v11, %s2856_s20 }
 0x281   : > { %2008 = vrot.lane.b32.xlu0 %v4444_v28, %s2865_s30 }
 0x282   : > { %v1491_v57 = vpop.permute.xlu1 %1490 }
 0x283   : > { %v4460_v53 = vpop.permute.xlu0 %1830  ;;  %v1501_v33 = vadd.f32 %v1491_v57, %v3774_v0  ;;  %v1500_v0 = vadd.f32 %v4327_v16, %v3778_v45 }
 0x285   : > { %1888 = vrot.lane.b32.xlu2 %v3899_v7, %s2861_s7  ;;  %v1517_v59 = vadd.f32 %v4275_v12, %v1501_v33 }
 0x287   : > { %v4462_v18 = vpop.permute.xlu2 %1590  ;;  %v1533_v9 = vadd.f32 %v4362_v48, %v1517_v59 }
 0x288   : > { %1828 = vrot.lane.b32.xlu1 %v3978_v34, %s2857_s8 }
 0x289   : > { %2022 = vrot.lane.b32.xlu0 %v4181_v21, %s2866_s4 }
 0x28a   : > { %v1505_v38 = vpop.permute.xlu1 %1504 }
 0x28b   : > { %v4470_v10 = vpop.permute.xlu0 %1844  ;;  %v1516_v22 = vadd.f32 %v1505_v38, %v1500_v0  ;;  %v1503_v38 = vadd.f32 %v4337_v49, %v3916_v1 }
 0x28d   : > { %1894 = vrot.lane.b32.xlu2 %v3976_v11, %s2861_s7 }
 0x28f   : > { %v1605_v54 = vpop.permute.xlu2 %1604 }
 0x290   : > { %1842 = vrot.lane.b32.xlu1 %v3968_v60, %s2858_s6 }
 0x291   : > { %2037 = vrot.lane.b32.xlu0 %v4411_v14, %s2866_s4 }
 0x292   : > { %v1511_v31 = vpop.permute.xlu1 %1510 }
 0x293   : > { %v4478_v4 = vpop.permute.xlu0 %1858 }
 0x295   : > { %1908 = vrot.lane.b32.xlu2 %v3978_v34, %s2862_s10 }
 0x297   : > { %v4480_v26 = vpop.permute.xlu2 %1618 }
 0x298   : > { %1856 = vrot.lane.b32.xlu1 %v3899_v7, %s2859_s29 }
 0x299   : > { %2043 = vrot.lane.b32.xlu0 %v4429_v51, %s2866_s4 }
 0x29a   : > { %v1525_v42 = vpop.permute.xlu1 %1524 }
 0x29b   : > { %v4488_v63 = vpop.permute.xlu0 %1872  ;;  %v1534_v41 = vadd.f32 %v1525_v42, %v1518_v46 }
 0x29d   : > { %1922 = vrot.lane.b32.xlu2 %v3968_v60, %s2863_s11  ;;  %v1550_v62 = vadd.f32 %v4307_v35, %v1534_v41  ;;  %v1532_v35 = vadd.f32 %v4287_v43, %v1516_v22 }
 0x29f   : > { %v4490_v29 = vpop.permute.xlu2 %1792  ;;  %v1566_v12 = vadd.f32 %v4420_v17, %v1550_v62  ;;  %v1519_v17 = vadd.f32 %v1511_v31, %v1503_v38  ;;  %v1548_v46 = vadd.f32 %v4378_v58, %v1532_v35 }
 0x2a0   : > { %1862 = vrot.lane.b32.xlu1 %v3976_v11, %s2859_s29  ;;  %v1804_v38 = vadd.f32 %v4490_v29, %v3899_v7  ;;  %s2599_s29 = spop %2598 }
 0x2a1   : > { %2057 = vrot.lane.b32.xlu0 %v4197_v13, %s2867_s21  ;;  %v1535_v49 = vadd.f32 %v4297_v55, %v1519_v17 }
 0x2a2   : > { %v1539_v27 = vpop.permute.xlu1 %1538 }
 0x2a3   : > { %v4498_v3 = vpop.permute.xlu0 %1878  ;;  %v1549_v42 = vadd.f32 %v1539_v27, %v1533_v9 }
 0x2a5   : > { %1950 = vrot.lane.b32.xlu2 %v4167_v61, %s2864_s19  ;;  %v1565_v48 = vadd.f32 %v4317_v5, %v1549_v42 }
 0x2a7   : > { %v4500_v24 = vpop.permute.xlu2 %1798  ;;  %v1581_v1 = vadd.f32 %v4437_v37, %v1565_v48 }
 0x2a8   : > { %1876 = vrot.lane.b32.xlu1 %v3978_v34, %s2860_s1  ;;  %s2601_s1 = spop %2600 }
 0x2a9   : > { %2072 = vrot.lane.b32.xlu0 %v4396_v23, %s2867_s21 }
 0x2aa   : > { %v1553_v40 = vpop.permute.xlu1 %1552 }
 0x2ab   : > { %v4510_v2 = vpop.permute.xlu0 %1892  ;;  %v1564_v43 = vadd.f32 %v1553_v40, %v1548_v46 }
 0x2ad   : > { %1956 = vrot.lane.b32.xlu2 %v4184_v32, %s2864_s19 }
 0x2af   : > { %v1813_v6 = vpop.permute.xlu2 %1812 }
 0x2b0   : > { %1890 = vrot.lane.b32.xlu1 %v3968_v60, %s2861_s7  ;;  %v4518_v36 = vadd.f32 %v1813_v6, %v1806_v25  ;;  %v4965_v6 = vld [vmem:[#allocation14_spill] sm:$0xff]  ;;  %s274_s7 = scalar_lea.vmem [#allocation9], %s2587_s22 }
 0x2b1   : > { %2086 = vrot.lane.b32.xlu0 %v4167_v61, %s2868_s26  ;;  %v1580_v41 = vadd.f32 %v4965_v6, %v1564_v43  ;;  %v1807_v43 = vadd.f32 %v4500_v24, %v3976_v11 }
 0x2b2   : > { %v1559_v47 = vpop.permute.xlu1 %1558 }
 0x2b3   : > { %v4528_v30 = vpop.permute.xlu0 %1906  ;;  %v1596_v59 = vadd.f32 %v4452_v50, %v1580_v41 }
 0x2b5   : > { %1975 = vrot.lane.b32.xlu2 %v4444_v28, %s2864_s19 }
 0x2b7   : > { %v4531_v57 = vpop.permute.xlu2 %1826 }
 0x2b8   : > { %1904 = vrot.lane.b32.xlu1 %v3899_v7, %s2862_s10 }
 0x2b9   : > { %2092 = vrot.lane.b32.xlu0 %v4184_v32, %s2868_s26 }
 0x2ba   : > { %v1573_v45 = vpop.permute.xlu1 %1572 }
 0x2bb   : > { %v1582_v16 = vadd.f32 %v1573_v45, %v1566_v12  ;;  %v4545_v27 = vpop.permute.xlu0 %1920 }
 0x2bd   : > { %v1598_v15 = vadd.f32 %v4345_v19, %v1582_v16  ;;  %1989 = vrot.lane.b32.xlu2 %v4181_v21, %s2865_s30 }
 0x2bf   : > { %v1614_v33 = vadd.f32 %v1605_v54, %v1598_v15  ;;  %v1841_v25 = vpop.permute.xlu2 %1840  ;;  %v1551_v54 = vadd.f32 %v4398_v52, %v1535_v49 }
 0x2c0   : > { %1910 = vrot.lane.b32.xlu1 %v3976_v11, %s2862_s10  ;;  %s2452_s10 = sshll.u32 %s274_s7, 4  ;;  %s2453_s10 = int_to_ptr.vmem [resolvable:$true] %s2452_s10 }
 0x2c1   : > { %2107 = vrot.lane.b32.xlu0 %v4444_v28, %s2868_s26  ;;  %v1567_v55 = vadd.f32 %v1559_v47, %v1551_v54 }
 0x2c2   : > { %v1587_v5 = vpop.permute.xlu1 %1586 }
 0x2c3   : > { %v1597_v19 = vadd.f32 %v1587_v5, %v1581_v1  ;;  %v4558_v58 = vpop.permute.xlu0 %1926 }
 0x2c5   : > { %v1613_v31 = vadd.f32 %v4357_v39, %v1597_v19  ;;  %2004 = vrot.lane.b32.xlu2 %v4411_v14, %s2865_s30  ;;  %v4966_v39 = vld [vmem:[#allocation15_spill] sm:$0xff] }
 0x2c6   : > { %v1583_v22 = vadd.f32 %v4966_v39, %v1567_v55 }
 0x2c7   : > { %v4562_v37 = vadd.f32 %v4480_v26, %v1613_v31  ;;  %v1847_v40 = vpop.permute.xlu2 %1846 }
 0x2c8   : > { %1924 = vrot.lane.b32.xlu1 %v3978_v34, %s2863_s11  ;;  %v1599_v34 = vadd.f32 %v4462_v18, %v1583_v22 }
 0x2ca   : > { %v1601_v0 = vpop.permute.xlu1 %1600 }
 0x2cb   : > { %v4567_v62 = vadd.f32 %v1601_v0, %v1596_v59  ;;  %v1955_v52 = vpop.permute.xlu0 %1954 }
 0x2cc   : > { %1965 = vst.msk [vmem:[#allocation2 + $0x2] sm:$0x4] %vm1962_vm11, %v1955_v52 }
 0x2cd   : > { %2010 = vrot.lane.b32.xlu2 %v4429_v51, %s2865_s30 }
 0x2cf   : > { %v1861_v26 = vpop.permute.xlu2 %1860 }
 0x2d0   : > { %1952 = vrot.lane.b32.xlu1 %v4181_v21, %s2864_s19 }
 0x2d2   : > { %v1607_v47 = vpop.permute.xlu1 %1606 }
 0x2d3   : > { %v4576_v50 = vadd.f32 %v1607_v47, %v1599_v34 }
 0x2d5   : > { %2024 = vrot.lane.b32.xlu2 %v4197_v13, %s2866_s4 }
 0x2d7   : > { %v1875_v9 = vpop.permute.xlu2 %1874 }
 0x2d8   : > { %1971 = vrot.lane.b32.xlu1 %v4411_v14, %s2864_s19 }
 0x2da   : > { %v1621_v42 = vpop.permute.xlu1 %1620 }
 0x2db   : > { %v4582_v12 = vadd.f32 %v1621_v42, %v1614_v33  ;;  %v1974_v45 = vpop.permute.xlu0 %1973 }
 0x2dc   : > { %1984 = vst.msk [vmem:[#allocation2 + $0x8] sm:$0x4] %vm1962_vm11, %v1974_v45 }
 0x2dd   : > { %2039 = vrot.lane.b32.xlu2 %v4396_v23, %s2866_s4 }
 0x2df   : > { %v1889_v18 = vpop.permute.xlu2 %1888 }
 0x2e0   : > { %1977 = vrot.lane.b32.xlu1 %v4429_v51, %s2864_s19 }
 0x2e2   : > { %v1795_v35 = vpop.permute.xlu1 %1794 }
 0x2e3   : > { %v1805_v29 = vadd.f32 %v1795_v35, %v3968_v60  ;;  %v1988_v11 = vpop.permute.xlu0 %1987 }
 0x2e5   : > { %2053 = vrot.lane.b32.xlu2 %v4167_v61, %s2867_s21  ;;  %v1821_v6 = vadd.f32 %v4433_v20, %v1805_v29 }
 0x2e7   : > { %v1895_v16 = vpop.permute.xlu2 %1894  ;;  %v1837_v60 = vadd.f32 %v4531_v57, %v1821_v6  ;;  %v4707_v6 = vadd.f32 %v4374_v44, %v4567_v62 }
 0x2e8   : > { %1991 = vrot.lane.b32.xlu1 %v4197_v13, %s2865_s30 }
 0x2ea   : > { %v1809_v48 = vpop.permute.xlu1 %1808 }
 0x2eb   : > { %v1820_v15 = vadd.f32 %v1809_v48, %v1804_v38 }
 0x2ed   : > { %v1836_v17 = vadd.f32 %v4450_v8, %v1820_v15  ;;  %2059 = vrot.lane.b32.xlu2 %v4184_v32, %s2867_s21 }
 0x2ef   : > { %v1852_v46 = vadd.f32 %v1841_v25, %v1836_v17  ;;  %v1909_v33 = vpop.permute.xlu2 %1908 }
 0x2f0   : > { %2006 = vrot.lane.b32.xlu1 %v4396_v23, %s2865_s30 }
 0x2f2   : > { %v1815_v1 = vpop.permute.xlu1 %1814 }
 0x2f3   : > { %v1823_v5 = vadd.f32 %v1815_v1, %v1807_v43 }
 0x2f5   : > { %v1839_v49 = vadd.f32 %v4460_v53, %v1823_v5  ;;  %2074 = vrot.lane.b32.xlu2 %v4444_v28, %s2867_s21 }
 0x2f7   : > { %v1855_v7 = vadd.f32 %v1847_v40, %v1839_v49  ;;  %v1923_v8 = vpop.permute.xlu2 %1922 }
 0x2f8   : > { %2020 = vrot.lane.b32.xlu1 %v4167_v61, %s2866_s4 }
 0x2fa   : > { %v1829_v25 = vpop.permute.xlu1 %1828 }
 0x2fb   : > { %v1838_v19 = vadd.f32 %v1829_v25, %v4518_v36 }
 0x2fd   : > { %v1854_v24 = vadd.f32 %v4470_v10, %v1838_v19  ;;  %2088 = vrot.lane.b32.xlu2 %v4181_v21, %s2868_s26  ;;  %v1994_v10 = vpop.permute.xlu0 %1993 }
 0x2ff   : > { %v1870_v53 = vadd.f32 %v1861_v26, %v1854_v24  ;;  %v1951_v41 = vpop.permute.xlu2 %1950 }
 0x300   : > { %2026 = vrot.lane.b32.xlu1 %v4184_v32, %s2866_s4  ;;  %1963 = vst.msk [vmem:[#allocation2 - $0x2] sm:$0x4] %vm1962_vm11, %v1951_v41 }
 0x301   : > { %2000 = vst.msk [vmem:[#allocation2 - $0x3] sm:$0x8] %vm1999_vm12, %v1988_v11 }
 0x302   : > { %v1843_v61 = vpop.permute.xlu1 %1842 }
 0x303   : > { %v1853_v20 = vadd.f32 %v1843_v61, %v1837_v60 }
 0x305   : > { %v1869_v36 = vadd.f32 %v4478_v4, %v1853_v20  ;;  %2103 = vrot.lane.b32.xlu2 %v4411_v14, %s2868_s26  ;;  %v2009_v59 = vpop.permute.xlu0 %2008 }
 0x307   : > { %v1885_v31 = vadd.f32 %v1875_v9, %v1869_v36  ;;  %v1957_v54 = vpop.permute.xlu2 %1956 }
 0x308   : > { %2041 = vrot.lane.b32.xlu1 %v4444_v28, %s2866_s4  ;;  %1966 = vst.msk [vmem:[#allocation2 + $0x4] sm:$0x4] %vm1962_vm11, %v1957_v54 }
 0x309   : > { %2003 = vst.msk [vmem:[#allocation2 + $0x3] sm:$0x8] %vm1999_vm12, %v1994_v10  ;;  %v4746_v10 = vadd.f32 %v4392_v56, %v4576_v50 }
 0x30a   : > { %v1857_v32 = vpop.permute.xlu1 %1856 }
 0x30b   : > { %v1868_v57 = vadd.f32 %v1857_v32, %v1852_v46 }
 0x30d   : > { %v1884_v40 = vadd.f32 %v4488_v63, %v1868_v57  ;;  %2109 = vrot.lane.b32.xlu2 %v4429_v51, %s2868_s26  ;;  %v2023_v35 = vpop.permute.xlu0 %2022 }
 0x30f   : > { %v1900_v4 = vadd.f32 %v1889_v18, %v1884_v40  ;;  %v1976_v55 = vpop.permute.xlu2 %1975 }
 0x310   : > { %2055 = vrot.lane.b32.xlu1 %v4181_v21, %s2867_s21  ;;  %1985 = vst.msk [vmem:[#allocation2 + $0xa] sm:$0x4] %vm1962_vm11, %v1976_v55 }
 0x311   : > { %2018 = vst.msk [vmem:[#allocation2 + $0x9] sm:$0x8] %vm1999_vm12, %v2009_v59 }
 0x312   : > { %v1863_v28 = vpop.permute.xlu1 %1862 }
 0x313   : > { %v1871_v0 = vadd.f32 %v1863_v28, %v1855_v7 }
 0x315   : > { %v1887_v39 = vadd.f32 %v4498_v3, %v1871_v0 }
 0x317   : > { %v1903_v22 = vadd.f32 %v1895_v16, %v1887_v39  ;;  %v1990_v26 = vpop.permute.xlu2 %1989 }
 0x318   : > { %2070 = vrot.lane.b32.xlu1 %v4411_v14, %s2867_s21 }
 0x31a   : > { %v1877_v63 = vpop.permute.xlu1 %1876 }
 0x31b   : > { %v1886_v52 = vadd.f32 %v1877_v63, %v1870_v53 }
 0x31d   : > { %v1902_v34 = vadd.f32 %v4510_v2, %v1886_v52 }
 0x31f   : > { %v1918_v47 = vadd.f32 %v1909_v33, %v1902_v34  ;;  %v2005_v45 = vpop.permute.xlu2 %2004 }
 0x320   : > { %2076 = vrot.lane.b32.xlu1 %v4429_v51, %s2867_s21 }
 0x322   : > { %v1891_v21 = vpop.permute.xlu1 %1890 }
 0x323   : > { %v1901_v9 = vadd.f32 %v1891_v21, %v1885_v31 }
 0x325   : > { %v1917_v42 = vadd.f32 %v4528_v30, %v1901_v9 }
 0x327   : > { %v4639_v18 = vadd.f32 %v1923_v8, %v1917_v42  ;;  %v2011_v51 = vpop.permute.xlu2 %2010 }
 0x328   : > { %2090 = vrot.lane.b32.xlu1 %v4197_v13, %s2868_s26 }
 0x329   : > { %2146 = vrot.lane.b32.xlu0 %v4639_v18, %s2855_s25 }
 0x32a   : > { %v1905_v14 = vpop.permute.xlu1 %1904 }
 0x32b   : > { %v1916_v3 = vadd.f32 %v1905_v14, %v1900_v4 }
 0x32d   : > { %v1932_v2 = vadd.f32 %v4545_v27, %v1916_v3  ;;  %v2038_v27 = vpop.permute.xlu0 %2037 }
 0x32f   : > { %2177 = vrot.lane.b32.xlu2 %v1932_v2, %s2869_s27  ;;  %v2025_v16 = vpop.permute.xlu2 %2024 }
 0x330   : > { %2105 = vrot.lane.b32.xlu1 %v4396_v23, %s2868_s26 }
 0x332   : > { %v1911_v30 = vpop.permute.xlu1 %1910 }
 0x333   : > { %v1919_v15 = vadd.f32 %v1911_v30, %v1903_v22 }
 0x335   : > { %v2044_v17 = vpop.permute.xlu0 %2043  ;;  %v4668_v33 = vadd.f32 %v4558_v58, %v1919_v15 }
 0x337   : > { %2210 = vrot.lane.b32.xlu2 %v1932_v2, %s2870_s28  ;;  %v2040_v48 = vpop.permute.xlu2 %2039 }
 0x338   : > { %2144 = vrot.lane.b32.xlu1 %v1932_v2, %s2855_s25 }
 0x33a   : > { %v1925_v13 = vpop.permute.xlu1 %1924 }
 0x33b   : > { %v4651_v38 = vadd.f32 %v1925_v13, %v1918_v47 }
 0x33d   : > { %2148 = vrot.lane.b32.xlu0 %v4651_v38, %s2855_s25  ;;  %v2058_v58 = vpop.permute.xlu0 %2057 }
 0x33f   : > { %2243 = vrot.lane.b32.xlu2 %v1932_v2, %s2871_s9  ;;  %v2054_v43 = vpop.permute.xlu2 %2053 }
 0x340   : > { %2179 = vrot.lane.b32.xlu1 %v4639_v18, %s2869_s27 }
 0x342   : > { %v1953_v23 = vpop.permute.xlu1 %1952 }
 0x343   : > { %1964 = vst.msk [vmem:[#allocation2] sm:$0x4] %vm1962_vm11, %v1953_v23 }
 0x344   : > { %2001 = vst.msk [vmem:[#allocation2 - $0x1] sm:$0x8] %vm1999_vm12, %v1990_v26 }
 0x345   : > { %2181 = vrot.lane.b32.xlu0 %v4651_v38, %s2869_s27  ;;  %2034 = vst.msk [vmem:[#allocation2 - $0x2] sm:$0x10] %vm2032_vm13, %v2023_v35  ;;  %v2073_v7 = vpop.permute.xlu0 %2072 }
 0x347   : > { %2214 = vrot.lane.b32.xlu2 %v4651_v38, %s2870_s28  ;;  %v2060_v5 = vpop.permute.xlu2 %2059 }
 0x348   : > { %2212 = vrot.lane.b32.xlu1 %v4639_v18, %s2870_s28 }
 0x34a   : > { %v1972_v46 = vpop.permute.xlu1 %1971 }
 0x34b   : > { %1983 = vst.msk [vmem:[#allocation2 + $0x6] sm:$0x4] %vm1962_vm11, %v1972_v46 }
 0x34c   : > { %2016 = vst.msk [vmem:[#allocation2 + $0x5] sm:$0x8] %vm1999_vm12, %v2005_v45 }
 0x34d   : > { %2150 = vrot.lane.b32.xlu0 %v4668_v33, %s2855_s25  ;;  %2049 = vst.msk [vmem:[#allocation2 + $0x4] sm:$0x10] %vm2032_vm13, %v2038_v27  ;;  %v2087_v25 = vpop.permute.xlu0 %2086 }
 0x34f   : > { %2183 = vrot.lane.b32.xlu2 %v4668_v33, %s2869_s27  ;;  %v2075_v29 = vpop.permute.xlu2 %2074 }
 0x350   : > { %2245 = vrot.lane.b32.xlu1 %v4639_v18, %s2871_s9 }
 0x352   : > { %v1978_v1 = vpop.permute.xlu1 %1977 }
 0x353   : > { %1986 = vst.msk [vmem:[#allocation2 + $0xc] sm:$0x4] %vm1962_vm11, %v1978_v1 }
 0x354   : > { %2019 = vst.msk [vmem:[#allocation2 + $0xb] sm:$0x8] %vm1999_vm12, %v2011_v51 }
 0x355   : > { %2278 = vrot.lane.b32.xlu0 %v4639_v18, %s2872_s5  ;;  %2052 = vst.msk [vmem:[#allocation2 + $0xa] sm:$0x10] %vm2032_vm13, %v2044_v17  ;;  %v2093_v24 = vpop.permute.xlu0 %2092 }
 0x357   : > { %2311 = vrot.lane.b32.xlu2 %v4639_v18, %s2873_s17  ;;  %v2089_v11 = vpop.permute.xlu2 %2088 }
 0x358   : > { %2276 = vrot.lane.b32.xlu1 %v1932_v2, %s2872_s5 }
 0x35a   : > { %v1992_v49 = vpop.permute.xlu1 %1991 }
 0x35b   : > { %2002 = vst.msk [vmem:[#allocation2 + $0x1] sm:$0x8] %vm1999_vm12, %v1992_v49 }
 0x35c   : > { %2035 = vst.msk [vmem:[#allocation2] sm:$0x10] %vm2032_vm13, %v2025_v16 }
 0x35d   : > { %2309 = vrot.lane.b32.xlu0 %v1932_v2, %s2873_s17  ;;  %2068 = vst.msk [vmem:[#allocation2 - $0x1] sm:$0x20] %vm2065_vm14, %v2058_v58  ;;  %v2108_v41 = vpop.permute.xlu0 %2107 }
 0x35f   : > { %2342 = vrot.lane.b32.xlu2 %v1932_v2, %s2868_s26  ;;  %v2104_v44 = vpop.permute.xlu2 %2103 }
 0x360   : > { %2247 = vrot.lane.b32.xlu1 %v4651_v38, %s2871_s9 }
 0x362   : > { %v2007_v8 = vpop.permute.xlu1 %2006 }
 0x363   : > { %2017 = vst.msk [vmem:[#allocation2 + $0x7] sm:$0x8] %vm1999_vm12, %v2007_v8 }
 0x364   : > { %2050 = vst.msk [vmem:[#allocation2 + $0x6] sm:$0x10] %vm2032_vm13, %v2040_v48 }
 0x365   : > { %2280 = vrot.lane.b32.xlu0 %v4651_v38, %s2872_s5  ;;  %2083 = vst.msk [vmem:[#allocation2 + $0x5] sm:$0x20] %vm2065_vm14, %v2073_v7 }
 0x367   : > { %2313 = vrot.lane.b32.xlu2 %v4651_v38, %s2873_s17  ;;  %v2110_v60 = vpop.permute.xlu2 %2109 }
 0x368   : > { %2216 = vrot.lane.b32.xlu1 %v4668_v33, %s2870_s28 }
 0x36a   : > { %v2021_v19 = vpop.permute.xlu1 %2020 }
 0x36b   : > { %2033 = vst.msk [vmem:[#allocation2 - $0x4] sm:$0x10] %vm2032_vm13, %v2021_v19 }
 0x36c   : > { %2066 = vst.msk [vmem:[#allocation2 - $0x5] sm:$0x20] %vm2065_vm14, %v2054_v43 }
 0x36d   : > { %2099 = vst.msk [vmem:[#allocation2 - $0x6] sm:$0x40] %vm2098_vm15, %v2087_v25  ;;  %2249 = vrot.lane.b32.xlu0 %v4668_v33, %s2871_s9 }
 0x36f   : > { %2123 = vrot.lane.b32.xlu2 %v4707_v6, %s2855_s25 }
 0x370   : > { %2344 = vrot.lane.b32.xlu1 %v4639_v18, %s2868_s26 }
 0x372   : > { %v2027_v53 = vpop.permute.xlu1 %2026 }
 0x373   : > { %2036 = vst.msk [vmem:[#allocation2 + $0x2] sm:$0x10] %vm2032_vm13, %v2027_v53 }
 0x374   : > { %2069 = vst.msk [vmem:[#allocation2 + $0x1] sm:$0x20] %vm2065_vm14, %v2060_v5 }
 0x375   : > { %2102 = vst.msk [vmem:[#allocation2] sm:$0x40] %vm2098_vm15, %v2093_v24  ;;  %2346 = vrot.lane.b32.xlu0 %v4651_v38, %s2868_s26 }
 0x377   : > { %2160 = vrot.lane.b32.xlu2 %v4707_v6, %s2869_s27 }
 0x378   : > { %2282 = vrot.lane.b32.xlu1 %v4668_v33, %s2872_s5 }
 0x37a   : > { %v2042_v62 = vpop.permute.xlu1 %2041 }
 0x37b   : > { %2051 = vst.msk [vmem:[#allocation2 + $0x8] sm:$0x10] %vm2032_vm13, %v2042_v62 }
 0x37c   : > { %2084 = vst.msk [vmem:[#allocation2 + $0x7] sm:$0x20] %vm2065_vm14, %v2075_v29 }
 0x37d   : > { %2117 = vst.msk [vmem:[#allocation2 + $0x6] sm:$0x40] %vm2098_vm15, %v2108_v41  ;;  %2315 = vrot.lane.b32.xlu0 %v4668_v33, %s2873_s17 }
 0x37f   : > { %2127 = vrot.lane.b32.xlu2 %v4582_v12, %s2855_s25 }
 0x380   : > { %2125 = vrot.lane.b32.xlu1 %v4562_v37, %s2855_s25 }
 0x382   : > { %v2056_v61 = vpop.permute.xlu1 %2055 }
 0x383   : > { %2067 = vst.msk [vmem:[#allocation2 - $0x3] sm:$0x20] %vm2065_vm14, %v2056_v61 }
 0x384   : > { %2100 = vst.msk [vmem:[#allocation2 - $0x4] sm:$0x40] %vm2098_vm15, %v2089_v11 }
 0x385   : > { %2348 = vrot.lane.b32.xlu0 %v4668_v33, %s2868_s26 }
 0x387   : > { %2164 = vrot.lane.b32.xlu2 %v4582_v12, %s2869_s27 }
 0x388   : > { %2162 = vrot.lane.b32.xlu1 %v4562_v37, %s2869_s27 }
 0x389   : > { %v2178_v20 = vpop.permute.xlu2 %2177 }
 0x38a   : > { %v2071_v36 = vpop.permute.xlu1 %2070 }
 0x38b   : > { %2082 = vst.msk [vmem:[#allocation2 + $0x3] sm:$0x20] %vm2065_vm14, %v2071_v36 }
 0x38c   : > { %2115 = vst.msk [vmem:[#allocation2 + $0x2] sm:$0x40] %vm2098_vm15, %v2104_v44 }
 0x38d   : > { %2195 = vrot.lane.b32.xlu0 %v4562_v37, %s2870_s28 }
 0x38f   : > { %2129 = vrot.lane.b32.xlu2 %v4746_v10, %s2855_s25  ;;  %s2589_s25 = sshll.u32 %s2915_s16, 3  ;;  %s2440_s16 = scalar_lea.sflag [#allocation5], %s3037_s0 }
 0x390   : > { %2193 = vrot.lane.b32.xlu1 %v4707_v6, %s2870_s28  ;;  %s2450_s6 = scalar_lea.hbm %s4889_s3, %s2589_s25 }
 0x391   : > { %v2211_v31 = vpop.permute.xlu2 %2210  ;;  %s2454_s19 = sshll.u32 %s2450_s6, 4  ;;  %s2455_s19 = int_to_ptr.hbm [resolvable:$true] %s2454_s19 }
 0x392   : > { %v2077_v54 = vpop.permute.xlu1 %2076  ;;  %s2794_s30 = sshra.s32 %s2455_s19, 4  ;;  %s2795_s30 = int_to_ptr.hbm [resolvable:$true] %s2794_s30 }
 0x393   : > { %2085 = vst.msk [vmem:[#allocation2 + $0x9] sm:$0x20] %vm2065_vm14, %v2077_v54  ;;  %s2796_s4 = scalar_lea.hbm %s2795_s30, 8  ;;  %p2801_p3 = scmp.lt.s32.totalorder %s2795_s30, %s4889_s3 }
 0x394   : > { %2118 = vst.msk [vmem:[#allocation2 + $0x8] sm:$0x40] %vm2098_vm15, %v2110_v60  ;;  %p2797_p6 = scmp.ne.s32.totalorder %s2795_s30, %s2796_s4 }
 0x395   : > { %2228 = vrot.lane.b32.xlu0 %v4562_v37, %s2871_s9 }
 0x396   : > { %p2798_p13 = pnand %p2797_p6, %p2940_p11 }
 0x397   : > { %2261 = vrot.lane.b32.xlu2 %v4562_v37, %s2872_s5 }
 0x398   : > { %2226 = vrot.lane.b32.xlu1 %v4707_v6, %s2871_s9  ;;  %p2799_p2 = pneg %p2798_p13 }
 0x399   : > { %v2244_v56 = vpop.permute.xlu2 %2243 }
 0x39a   : > { %v2091_v50 = vpop.permute.xlu1 %2090 }
 0x39b   : > { %2101 = vst.msk [vmem:[#allocation2 - $0x2] sm:$0x40] %vm2098_vm15, %v2091_v50  ;;  %v2147_v32 = vpop.permute.xlu0 %2146 }
 0x39c   : > { %2157 = vst.msk [vmem:[#allocation2 + $0xb] sm:$0x1] %vm2135_vm0, %v2147_v32 }
 0x39d   : > { %2259 = vrot.lane.b32.xlu0 %v4707_v6, %s2872_s5 }
 0x39f   : > { %2292 = vrot.lane.b32.xlu2 %v4707_v6, %s2873_s17 }
 0x3a0   : > { %2197 = vrot.lane.b32.xlu1 %v4582_v12, %s2870_s28 }
 0x3a1   : > { %v2215_v57 = vpop.permute.xlu2 %2214 }
 0x3a2   : > { %v2106_v40 = vpop.permute.xlu1 %2105 }
 0x3a3   : > { %2116 = vst.msk [vmem:[#allocation2 + $0x4] sm:$0x40] %vm2098_vm15, %v2106_v40 }
 0x3a5   : > { %2230 = vrot.lane.b32.xlu0 %v4582_v12, %s2871_s9 }
 0x3a7   : > { %2263 = vrot.lane.b32.xlu2 %v4582_v12, %s2872_s5 }
 0x3a8   : > { %2166 = vrot.lane.b32.xlu1 %v4746_v10, %s2869_s27  ;;  %s2800_s27 = scalar_lea.hbm %s4889_s3, 16 }
 0x3a9   : > { %v2184_v4 = vpop.permute.xlu2 %2183  ;;  %p2802_p4 = scmp.lt.s32.totalorder %s2800_s27, %s2796_s4 }
 0x3aa   : > { %v2145_v55 = vpop.permute.xlu1 %2144 }
 0x3ab   : > { %2156 = vst.msk [vmem:[#allocation2 + $0x9] sm:$0x1] %vm2135_vm0, %v2145_v55  ;;  %p2803_p5 = por %p2802_p4, %p2801_p3 }
 0x3ac   : > { %2189 = vst.msk [vmem:[#allocation2 + $0x8] sm:$0x2] %vm2172_vm1, %v2178_v20 }
 0x3ad   : > { %2222 = vst.msk [vmem:[#allocation2 + $0x7] sm:$0x4] %vm2205_vm2, %v2211_v31  ;;  %2199 = vrot.lane.b32.xlu0 %v4746_v10, %s2870_s28  ;;  %p2804_p7 = pnand %p2803_p5, %p2799_p2 }
 0x3ae   : > { %2255 = vst.msk [vmem:[#allocation2 + $0x6] sm:$0x8] %vm2238_vm3, %v2244_v56 }
 0x3af   : > { %2232 = vrot.lane.b32.xlu2 %v4746_v10, %s2871_s9  ;;  %v2149_v59 = vpop.permute.xlu0 %2148 }
 0x3b0   : > { %2158 = vst.msk [vmem:[#allocation2 + $0xd] sm:$0x1] %vm2135_vm0, %v2149_v59  ;;  %2294 = vrot.lane.b32.xlu1 %v4562_v37, %s2873_s17 }
 0x3b1   : > { %v2312_v28 = vpop.permute.xlu2 %2311 }
 0x3b2   : > { %v2180_v0 = vpop.permute.xlu1 %2179 }
 0x3b3   : > { %2190 = vst.msk [vmem:[#allocation2 + $0xa] sm:$0x2] %vm2172_vm1, %v2180_v0 }
 0x3b5   : > { %2327 = vrot.lane.b32.xlu0 %v4562_v37, %s2868_s26 }
 0x3b7   : > { %2329 = vrot.lane.b32.xlu2 %v4582_v12, %s2868_s26  ;;  %v2182_v39 = vpop.permute.xlu0 %2181 }
 0x3b8   : > { %2191 = vst.msk [vmem:[#allocation2 + $0xc] sm:$0x2] %vm2172_vm1, %v2182_v39  ;;  %2325 = vrot.lane.b32.xlu1 %v4707_v6, %s2868_s26 }
 0x3b9   : > { %2224 = vst.msk [vmem:[#allocation2 + $0xb] sm:$0x4] %vm2205_vm2, %v2215_v57  ;;  %v2343_v22 = vpop.permute.xlu2 %2342 }
 0x3ba   : > { %v2213_v63 = vpop.permute.xlu1 %2212 }
 0x3bb   : > { %2223 = vst.msk [vmem:[#allocation2 + $0x9] sm:$0x4] %vm2205_vm2, %v2213_v63 }
 0x3bd   : > { %2265 = vrot.lane.b32.xlu0 %v4746_v10, %s2872_s5 }
 0x3bf   : > { %v2151_v52 = vpop.permute.xlu0 %2150 }
 0x3c0   : > { %2159 = vst.msk [vmem:[#allocation2 + $0xf] sm:$0x1] %vm2135_vm0, %v2151_v52  ;;  %2296 = vrot.lane.b32.xlu1 %v4582_v12, %s2873_s17 }
 0x3c1   : > { %2192 = vst.msk [vmem:[#allocation2 + $0xe] sm:$0x2] %vm2172_vm1, %v2184_v4  ;;  %v2314_v37 = vpop.permute.xlu2 %2313 }
 0x3c2   : > { %v2246_v26 = vpop.permute.xlu1 %2245 }
 0x3c3   : > { %2256 = vst.msk [vmem:[#allocation2 + $0x8] sm:$0x8] %vm2238_vm3, %v2246_v26 }
 0x3c5   : > { %2331 = vrot.lane.b32.xlu0 %v4746_v10, %s2868_s26 }
 0x3c7   : > { %v2279_v34 = vpop.permute.xlu0 %2278 }
 0x3c8   : > { %2289 = vst.msk [vmem:[#allocation2 + $0x7] sm:$0x10] %vm2271_vm4, %v2279_v34  ;;  %2298 = vrot.lane.b32.xlu1 %v4746_v10, %s2873_s17 }
 0x3c9   : > { %v2124_v47 = vpop.permute.xlu2 %2123  ;;  %2322 = vst.msk [vmem:[#allocation2 + $0x6] sm:$0x20] %vm2304_vm5, %v2312_v28 }
 0x3ca   : > { %2136 = vst.msk [vmem:[#allocation2 + $0x1] sm:$0x1] %vm2135_vm0, %v2124_v47  ;;  %v2277_v12 = vpop.permute.xlu1 %2276 }
 0x3cb   : > { %2288 = vst.msk [vmem:[#allocation2 + $0x5] sm:$0x10] %vm2271_vm4, %v2277_v12 }
 0x3cf   : > { %v2310_v21 = vpop.permute.xlu0 %2309 }
 0x3d0   : > { %2321 = vst.msk [vmem:[#allocation2 + $0x4] sm:$0x20] %vm2304_vm5, %v2310_v21 }
 0x3d1   : > { %2354 = vst.msk [vmem:[#allocation2 + $0x3] sm:$0x40] %vm2337_vm6, %v2343_v22  ;;  %v2161_v9 = vpop.permute.xlu2 %2160 }
 0x3d2   : > { %2173 = vst.msk [vmem:[#allocation2] sm:$0x2] %vm2172_vm1, %v2161_v9  ;;  %v2248_v42 = vpop.permute.xlu1 %2247 }
 0x3d3   : > { %2257 = vst.msk [vmem:[#allocation2 + $0xa] sm:$0x8] %vm2238_vm3, %v2248_v42 }
 0x3d7   : > { %v2281_v45 = vpop.permute.xlu0 %2280 }
 0x3d8   : > { %2290 = vst.msk [vmem:[#allocation2 + $0x9] sm:$0x10] %vm2271_vm4, %v2281_v45  ;;  %v2362_v11 = vld [vmem:[#allocation2 + $0x8] sm:$0x3] }
 0x3d9   : > { %2323 = vst.msk [vmem:[#allocation2 + $0x8] sm:$0x20] %vm2304_vm5, %v2314_v37  ;;  %v2128_v18 = vpop.permute.xlu2 %2127  ;;  %v2386_v44 = vrot.slane %v2362_v11, 1 }
 0x3da   : > { %2138 = vst.msk [vmem:[#allocation2 + $0x5] sm:$0x1] %vm2135_vm0, %v2128_v18  ;;  %v2217_v14 = vpop.permute.xlu1 %2216 }
 0x3db   : > { %2225 = vst.msk [vmem:[#allocation2 + $0xd] sm:$0x4] %vm2205_vm2, %v2217_v14  ;;  %v2394_v61 = vadd.f32 %v2386_v44, %v2362_v11 }
 0x3dd   : > { %v2398_v32 = vadd.f32 0.0001, %v2394_v61 }
 0x3df   : > { %v2250_v3 = vpop.permute.xlu0 %2249  ;;  %2682 = vrcp.f32 %v2398_v32 }
 0x3e0   : > { %2258 = vst.msk [vmem:[#allocation2 + $0xc] sm:$0x8] %vm2238_vm3, %v2250_v3 }
 0x3e1   : > { %v2165_v2 = vpop.permute.xlu2 %2164 }
 0x3e2   : > { %2175 = vst.msk [vmem:[#allocation2 + $0x4] sm:$0x2] %vm2172_vm1, %v2165_v2  ;;  %v2345_v51 = vpop.permute.xlu1 %2344 }
 0x3e3   : > { %2355 = vst.msk [vmem:[#allocation2 + $0x5] sm:$0x40] %vm2337_vm6, %v2345_v51 }
 0x3e5   : > { %v2683_v47 = vpop.eup %2682 }
 0x3e7   : > { %v2347_v30 = vpop.permute.xlu0 %2346 }
 0x3e8   : > { %2356 = vst.msk [vmem:[#allocation2 + $0x7] sm:$0x40] %vm2337_vm6, %v2347_v30 }
 0x3e9   : > { %v2130_v35 = vpop.permute.xlu2 %2129 }
 0x3ea   : > { %2139 = vst.msk [vmem:[#allocation2 + $0x7] sm:$0x1] %vm2135_vm0, %v2130_v35  ;;  %v2283_v13 = vpop.permute.xlu1 %2282  ;;  %v2363_v24 = vld [vmem:[#allocation2 + $0xa] sm:$0x3] }
 0x3eb   : > { %2291 = vst.msk [vmem:[#allocation2 + $0xb] sm:$0x10] %vm2271_vm4, %v2283_v13  ;;  %v2387_v62 = vrot.slane %v2363_v24, 1 }
 0x3ed   : > { %v2395_v10 = vadd.f32 %v2387_v62, %v2363_v24 }
 0x3ef   : > { %v2316_v16 = vpop.permute.xlu0 %2315  ;;  %v2364_v53 = vld [vmem:[#allocation2 + $0xc] sm:$0x3]  ;;  %v2399_v57 = vadd.f32 0.0001, %v2395_v10 }
 0x3f0   : > { %2324 = vst.msk [vmem:[#allocation2 + $0xa] sm:$0x20] %vm2304_vm5, %v2316_v16  ;;  %v2388_v60 = vrot.slane %v2364_v53, 1 }
 0x3f1   : > { %v2262_v15 = vpop.permute.xlu2 %2261  ;;  %2684 = vrcp.f32 %v2399_v57 }
 0x3f2   : > { %v2126_v38 = vpop.permute.xlu1 %2125  ;;  %v2396_v54 = vadd.f32 %v2388_v60, %v2364_v53 }
 0x3f3   : > { %2137 = vst.msk [vmem:[#allocation2 + $0x3] sm:$0x1] %vm2135_vm0, %v2126_v38 }
 0x3f4   : > { %v2400_v4 = vadd.f32 0.0001, %v2396_v54 }
 0x3f6   : > { %2686 = vrcp.f32 %v2400_v4 }
 0x3f7   : > { %v2349_v27 = vpop.permute.xlu0 %2348  ;;  %v2685_v12 = vpop.eup %2684 }
 0x3f8   : > { %2357 = vst.msk [vmem:[#allocation2 + $0x9] sm:$0x40] %vm2337_vm6, %v2349_v27 }
 0x3f9   : > { %v2293_v43 = vpop.permute.xlu2 %2292 }
 0x3fa   : > { %v2163_v23 = vpop.permute.xlu1 %2162 }
 0x3fb   : > { %2174 = vst.msk [vmem:[#allocation2 + $0x2] sm:$0x2] %vm2172_vm1, %v2163_v23 }
 0x3fc   : > { %v2687_v9 = vpop.eup %2686 }
 0x3ff   : > { %v2196_v48 = vpop.permute.xlu0 %2195  ;;  %v2365_v36 = vld [vmem:[#allocation2 + $0xe] sm:$0x3] }
 0x400   : > { %2207 = vst.msk [vmem:[#allocation2 + $0x1] sm:$0x4] %vm2205_vm2, %v2196_v48  ;;  %v2389_v50 = vrot.slane %v2365_v36, 1 }
 0x401   : > { %v2264_v5 = vpop.permute.xlu2 %2263 }
 0x402   : > { %v2194_v17 = vpop.permute.xlu1 %2193  ;;  %v2397_v59 = vadd.f32 %v2389_v50, %v2365_v36 }
 0x403   : > { %2206 = vst.msk [vmem:[#allocation2 - $0x1] sm:$0x4] %vm2205_vm2, %v2194_v17 }
 0x404   : > { %v2401_v37 = vadd.f32 0.0001, %v2397_v59 }
 0x406   : > { %2688 = vrcp.f32 %v2401_v37 }
 0x407   : > { %v2229_v46 = vpop.permute.xlu0 %2228 }
 0x408   : > { %2240 = vst.msk [vmem:[#allocation2] sm:$0x8] %vm2238_vm3, %v2229_v46 }
 0x409   : > { %2273 = vst.msk [vmem:[#allocation2 - $0x1] sm:$0x10] %vm2271_vm4, %v2262_v15  ;;  %v2233_v29 = vpop.permute.xlu2 %2232 }
 0x40a   : > { %v2227_v33 = vpop.permute.xlu1 %2226 }
 0x40b   : > { %2239 = vst.msk [vmem:[#allocation2 - $0x2] sm:$0x8] %vm2238_vm3, %v2227_v33 }
 0x40c   : > { %v2689_v35 = vpop.eup %2688 }
 0x40f   : > { %v2260_v1 = vpop.permute.xlu0 %2259 }
 0x410   : > { %2272 = vst.msk [vmem:[#allocation2 - $0x3] sm:$0x10] %vm2271_vm4, %v2260_v1 }
 0x411   : > { %2305 = vst.msk [vmem:[#allocation2 - $0x4] sm:$0x20] %vm2304_vm5, %v2293_v43  ;;  %v2330_v31 = vpop.permute.xlu2 %2329 }
 0x412   : > { %v2198_v58 = vpop.permute.xlu1 %2197 }
 0x413   : > { %2208 = vst.msk [vmem:[#allocation2 + $0x3] sm:$0x4] %vm2205_vm2, %v2198_v58  ;;  %v2427_v58 = vlaneseq }
 0x417   : > { %v2231_v49 = vpop.permute.xlu0 %2230 }
 0x418   : > { %2241 = vst.msk [vmem:[#allocation2 + $0x2] sm:$0x8] %vm2238_vm3, %v2231_v49 }
 0x419   : > { %2274 = vst.msk [vmem:[#allocation2 + $0x1] sm:$0x10] %vm2271_vm4, %v2264_v5  ;;  %v2428_v5 = vshrl.u32 %v2427_v58, 7 }
 0x41a   : > { %v2167_v7 = vpop.permute.xlu1 %2166 }
 0x41b   : > { %2176 = vst.msk [vmem:[#allocation2 + $0x6] sm:$0x2] %vm2172_vm1, %v2167_v7  ;;  %vm2429_vm8 = vcmp.eq.s32.totalorder %v2428_v5, 0  ;;  %vm2432_vm9 = vcmp.eq.s32.totalorder %v2428_v5, 1  ;;  %vm2435_vm10 = vcmp.eq.s32.totalorder %v2428_v5, 2  ;;  %v2433_v7 = vstv %s2599_s29 }
 0x41f   : > { %v2200_v8 = vpop.permute.xlu0 %2199 }
 0x420   : > { %2209 = vst.msk [vmem:[#allocation2 + $0x5] sm:$0x4] %vm2205_vm2, %v2200_v8 }
 0x421   : > { %2242 = vst.msk [vmem:[#allocation2 + $0x4] sm:$0x8] %vm2238_vm3, %v2233_v29  ;;  %v2436_v29 = vstv %s2601_s1 }
 0x422   : > { %v2295_v25 = vpop.permute.xlu1 %2294 }
 0x423   : > { %2306 = vst.msk [vmem:[#allocation2 - $0x2] sm:$0x20] %vm2304_vm5, %v2295_v25 }
 0x427   : > { %v2328_v19 = vpop.permute.xlu0 %2327 }
 0x428   : > { %2339 = vst.msk [vmem:[#allocation2 - $0x3] sm:$0x40] %vm2337_vm6, %v2328_v19 }
 0x42a   : > { %v2326_v6 = vpop.permute.xlu1 %2325 }
 0x42b   : > { %2338 = vst.msk [vmem:[#allocation2 - $0x5] sm:$0x40] %vm2337_vm6, %v2326_v6 }
 0x42f   : > { %v2266_v41 = vpop.permute.xlu0 %2265  ;;  %v2359_v40 = vld [vmem:[#allocation2 + $0x2] sm:$0x3] }
 0x430   : > { %2275 = vst.msk [vmem:[#allocation2 + $0x3] sm:$0x10] %vm2271_vm4, %v2266_v41  ;;  %v2371_v0 = vrot.slane %v2359_v40, 1 }
 0x432   : > { %v2297_v20 = vpop.permute.xlu1 %2296  ;;  %v2358_v56 = vld [vmem:[#allocation2] sm:$0x3]  ;;  %v2379_v26 = vadd.f32 %v2371_v0, %v2359_v40 }
 0x433   : > { %2307 = vst.msk [vmem:[#allocation2] sm:$0x20] %vm2304_vm5, %v2297_v20  ;;  %v2370_v55 = vrot.slane %v2358_v56, 1 }
 0x434   : > { %2340 = vst.msk [vmem:[#allocation2 - $0x1] sm:$0x40] %vm2337_vm6, %v2330_v31  ;;  %v2407_v42 = vmul.f32 %v2685_v12, %v2379_v26 }
 0x435   : > { %v2378_v52 = vadd.f32 %v2370_v55, %v2358_v56 }
 0x436   : > { %v2412_v51 = vsel %vm2410_vm7, %v2407_v42, 0.0 }
 0x437   : > { %v2332_v39 = vpop.permute.xlu0 %2331  ;;  %v2406_v21 = vmul.f32 %v2683_v47, %v2378_v52 }
 0x439   : > { %v2411_v3 = vsel %vm2410_vm7, %v2406_v21, 0.0 }
 0x43a   : > { %v2299_v28 = vpop.permute.xlu1 %2298  ;;  %v2413_v13 = vadd.f32 %v2412_v51, %v2411_v3 }
 0x43b   : > { %2308 = vst.msk [vmem:[#allocation2 + $0x2] sm:$0x20] %vm2304_vm5, %v2299_v28  ;;  %v2360_v22 = vld [vmem:[#allocation2 + $0x4] sm:$0x3] }
 0x43c   : > { %2341 = vst.msk [vmem:[#allocation2 + $0x1] sm:$0x40] %vm2337_vm6, %v2332_v39  ;;  %v2372_v63 = vrot.slane %v2360_v22, 1 }
 0x43e   : > { %v2380_v34 = vadd.f32 %v2372_v63, %v2360_v22 }
 0x440   : > { %v2408_v45 = vmul.f32 %v2687_v9, %v2380_v34 }
 0x442   : > { %v2414_v30 = vsel %vm2410_vm7, %v2408_v45, 0.0 }
 0x443   : > { %v2361_v18 = vld [vmem:[#allocation2 + $0x6] sm:$0x3]  ;;  %v2415_v38 = vadd.f32 %v2414_v30, %v2413_v13 }
 0x444   : > { %v2373_v14 = vrot.slane %v2361_v18, 1 }
 0x446   : > { %v2381_v2 = vadd.f32 %v2373_v14, %v2361_v18 }
 0x448   : > { %v2409_v16 = vmul.f32 %v2689_v35, %v2381_v2 }
 0x44a   : > { %v2416_v27 = vsel %vm2410_vm7, %v2409_v16, 0.0 }
 0x44b   : > { %v2417_v23 = vadd.f32 %v2416_v27, %v2415_v38 }
 0x44d   : > { %2418 = vadd.xlane.f32.xlu2 %v2417_v23 }
 0x4c0   : > { %v2419_v48 = vpop.xlane.xlu2 %2418 }
 0x4c1   : > { %v2420_v15 = vrot.slane %v2419_v48, 4 }
 0x4c3   : > { %v2421_v17 = vadd.f32 %v2420_v15, %v2419_v48 }
 0x4c5   : > { %v2422_v46 = vrot.slane %v2421_v17, 2 }
 0x4c7   : > { %v2423_v33 = vadd.f32 %v2422_v46, %v2421_v17 }
 0x4c9   : > { %v2424_v43 = vrot.slane %v2423_v33, 1 }
 0x4cb   : > { %v2425_v1 = vadd.f32 %v2424_v43, %v2423_v33 }
 0x4cd   : > { %2602 = vpush %v2425_v1 }
 0x4fe   : > { %s2603_s11 = spop %2602 }
 0x4ff   : > { %v2430_v49 = vstv %s2603_s11 }
 0x500   : > { %v2431_v8 = vsel %vm2429_vm8, %v2430_v49, 0.0 }
 0x501   : > { %v2434_v25 = vsel %vm2432_vm9, %v2433_v7, %v2431_v8 }
 0x502   : > { %v2437_v19 = vsel %vm2435_vm10, %v2436_v29, %v2434_v25 }
 0x503   : > { %2438 = vst [vmem:[%s274_s7] sm:$0xff] %v2437_v19 }
 0x504   : > { %2807 = shalt.err (!%p2804_p7)
}
 0x505   : > { %2610 = dma.vmem_to_hbm [thread:$0]  (%p2940_p11), %s2453_s10, 128, %s2455_s19, %s2440_s16  }
 0x506 PF: > { %s2466_s0 = sand.u32 1, %s2838_s12   ;;  %p2623_p0 = pnand %p2570_p9, %p2944_p12 }
 0x507   : > { %s2467_s5 = scalar_lea.sflag [#allocation5], %s2466_s0 }
 0x508   : > { %p2624_p8 = pneg %p2623_p0 }
 0x50a   : > { %2833 = dma.done.wait (%p2624_p8), %s2467_s5, 128  }
 0x50b   : > { %2835 = vsyncadd (%p2624_p8), %s2467_s5, 4294967168  ;;  %s4967_s17 = sld [smem:[#allocation13_spill]]  ;;  %p19_p10 = scmp.ge.s32.totalorder %s2919_s18, 4  }
 0x50c   : > { %s4968_s12 = smov %s2842_s13  ;;  %s4969_s13 = smov %s2846_s14 }
 0x50d   : > { %s4971_s15 = smov %s2919_s18  ;;  %21 = sbr.rel (!%p19_p10) target bundleno = 10 (0xa), region = 102 }
 0x511   : > { %s4970_s14 = smov %s4967_s17 }
 0x512   :  { %2473 = vsyncpa [#allocation4], 1 }
 0x513   :  { %2475 = vsyncpa [#allocation4 + $0x1], 1 }
 0x514   :  { %2476 = vsyncpa [#allocation7], 1 }
 0x515   :  { %2478 = vsyncpa [#allocation7 + $0x1], 1 }
 0x516   :  { %2479 = vsyncpa [#allocation5], 1 }
 0x517   :  { %2481 = vsyncpa [#allocation5 + $0x1], 1 }

</bundles_post_ra>
